<compile_context>
chip_gen: v7x
topology: tpu7x:2x2x1
jax: 0.10.0
libtpu: 0.0.40
codegen_flags: <defaults>
</compile_context>

<pallas_src>
import math

import jax
import jax.numpy as jnp
from jax.experimental import pallas as pl
from jax.experimental.pallas import tpu as pltpu


# ----------------------- in-kernel building blocks --------------------------

def _layer_norm(z, g, b, eps):
    mean = jnp.mean(z, axis=-1, keepdims=True)
    var = jnp.mean((z - mean) ** 2, axis=-1, keepdims=True)
    return (z - mean) * jax.lax.rsqrt(var + eps) * g + b


def _project_heads(x, w3, b3, H):
    """x: (S, D); w3: (H, D, E); b3: (H, 1, E) -> (H, S, E).
    Head-batched projection: one single-batch-dim einsum instead of a per-head
    Python loop.  The broadcast only adds a leading (untiled) dim."""
    xb = jnp.broadcast_to(x[None], (H,) + x.shape)
    return jnp.einsum("hsd,hde->hse", xb, w3,
                      preferred_element_type=jnp.float32) + b3


def _mha_core(q, k, v, bias, wo3, bo):
    """q: (H, Sq, Dh); k, v: (H, Sk, Dh); bias: (Sq, Sk) additive (-1e9) or None;
    wo3: (H, Dh, D); bo: (1, D).  Returns (Sq, D).
    The head concat + single output matmul is replaced by a head-batched einsum
    followed by a leading-axis sum -> no lane-axis concatenate/relayout."""
    s = jnp.einsum("hqd,hkd->hqk", q, k, preferred_element_type=jnp.float32)
    if bias is not None:
        s = s + bias
    s = s - jnp.max(s, axis=-1, keepdims=True)          # stable softmax
    e = jnp.exp(s)
    w = e * pl.reciprocal(jnp.sum(e, axis=-1, keepdims=True), approx=True)
    o = jnp.einsum("hqk,hkd->hqd", w, v, preferred_element_type=jnp.float32)
    out = jnp.einsum("hqd,hdf->hqf", o, wo3, preferred_element_type=jnp.float32)
    return jnp.sum(out, axis=0) + bo


# ------------------------------ fused kernel --------------------------------

def _make_kernel(Ss, St, D, H, F, Le, Ld, has_e, has_s, has_c, eps):
    Dh = D // H
    Lt = Le + Ld

    def kernel(*refs):
        idx = 0
        x_ref = refs[idx]; idx += 1
        y_ref = refs[idx]; idx += 1
        emask_ref = smask_ref = cmask_ref = None
        if has_e:
            emask_ref = refs[idx]; idx += 1
        if has_s:
            smask_ref = refs[idx]; idx += 1
        if has_c:
            cmask_ref = refs[idx]; idx += 1
        (e_watt, e_batt, e_wo, e_wff, e_vec,
         d_watt, d_batt, d_wo, d_wff, d_vec,
         wf_ref, bf_ref) = refs[idx:idx + 12]
        out_ref = refs[idx + 12]
        enc_res = refs[idx + 13]          # VMEM residual stream, encoder side
        dec_res = refs[idx + 14]          # VMEM residual stream, decoder side

        layer = pl.program_id(1)

        @pl.when(layer == 0)
        def _init():
            enc_res[...] = x_ref[...]
            dec_res[...] = y_ref[...]

        # ----------------------------- encoder layer -----------------------------
        @pl.when(layer < Le)
        def _encoder_layer():
            x = enc_res[...]
            vec = e_vec[...]
            bo = vec[0:1, :D]
            b1 = vec[1:2, :F]
            b2 = vec[2:3, :D]
            g1, gb1 = vec[3:4, :D], vec[4:5, :D]
            g2, gb2 = vec[5:6, :D], vec[6:7, :D]

            qkv = _project_heads(x, e_watt[...], e_batt[...], H)      # (H, Ss, 3Dh)
            att = _mha_core(qkv[..., :Dh], qkv[..., Dh:2 * Dh], qkv[..., 2 * Dh:],
                            emask_ref[...] if has_e else None,
                            e_wo[...], bo)
            out1 = _layer_norm(x + att, g1, gb1, eps)

            W = e_wff[...]
            h1 = jnp.maximum(
                jnp.dot(out1, W[:D, :F], preferred_element_type=jnp.float32) + b1, 0.0)
            ffn = jnp.dot(h1, W[D:, :D], preferred_element_type=jnp.float32) + b2
            enc_res[...] = _layer_norm(out1 + ffn, g2, gb2, eps)

        # ----------------------------- decoder layer -----------------------------
        @pl.when(layer >= Le)
        def _decoder_layer():
            y = dec_res[...]
            enc = enc_res[...]                 # VMEM-resident encoder output
            vec = d_vec[...]
            bo1 = vec[0:1, :D]
            bo2 = vec[1:2, :D]
            b1 = vec[2:3, :F]
            b2 = vec[3:4, :D]
            g1, gb1 = vec[4:5, :D], vec[5:6, :D]
            g2, gb2 = vec[6:7, :D], vec[7:8, :D]
            g3, gb3 = vec[8:9, :D], vec[9:10, :D]

            Watt = d_watt[...]                 # (H, D, 6Dh): [q1 k1 v1 | q2 k2 v2]
            Batt = d_batt[...]
            Wo12 = d_wo[...]                   # (H, Dh, 2D): [wo1 | wo2]

            # masked self-attention
            qkv1 = _project_heads(y, Watt[..., :3 * Dh], Batt[..., :3 * Dh], H)
            att1 = _mha_core(qkv1[..., :Dh], qkv1[..., Dh:2 * Dh], qkv1[..., 2 * Dh:],
                             smask_ref[...] if has_s else None,
                             Wo12[..., :D], bo1)
            out1 = _layer_norm(y + att1, g1, gb1, eps)

            # cross-attention over the VMEM-resident encoder output
            q2 = _project_heads(out1, Watt[..., 3 * Dh:4 * Dh],
                                Batt[..., 3 * Dh:4 * Dh], H)
            kv2 = _project_heads(enc, Watt[..., 4 * Dh:], Batt[..., 4 * Dh:], H)
            att2 = _mha_core(q2, kv2[..., :Dh], kv2[..., Dh:],
                             cmask_ref[...] if has_c else None,
                             Wo12[..., D:], bo2)
            out2 = _layer_norm(out1 + att2, g2, gb2, eps)

            # feed-forward
            W = d_wff[...]
            h1 = jnp.maximum(
                jnp.dot(out2, W[:D, :F], preferred_element_type=jnp.float32) + b1, 0.0)
            ffn = jnp.dot(h1, W[D:, :D], preferred_element_type=jnp.float32) + b2
            dec_res[...] = _layer_norm(out2 + ffn, g3, gb3, eps)

        # ---- final vocab projection: computed ONCE, only on the last layer step ----
        @pl.when(layer == Lt - 1)
        def _finalize():
            logits = jnp.dot(dec_res[...], wf_ref[...],
                             preferred_element_type=jnp.float32)
            out_ref[...] = logits + bf_ref[...]

    return kernel


# ------------------------------ BlockSpecs ----------------------------------

def _batch_spec(shape):
    zeros = (0,) * len(shape)
    return pl.BlockSpec((None,) + tuple(shape), lambda b, l: (b,) + zeros)


def _enc_layer_spec(shape, Le):
    zeros = (0,) * len(shape)
    return pl.BlockSpec((None,) + tuple(shape),
                        lambda b, l: (jnp.minimum(l, Le - 1),) + zeros)


def _dec_layer_spec(shape, Le):
    zeros = (0,) * len(shape)
    return pl.BlockSpec((None,) + tuple(shape),
                        lambda b, l: (jnp.maximum(l - Le, 0),) + zeros)


def _const_spec(shape):
    zeros = (0,) * len(shape)
    return pl.BlockSpec(tuple(shape), lambda b, l: zeros)


# ------------------------------ Pallas forward -------------------------------

def _mask_bias(mask, B, Sq, Sk):
    """PyTorch semantics: logits += mask * -1e9 (1.0 == masked).  Pre-multiplied
    once here; the kernel sees one (Sq, Sk) slice per batch element."""
    if mask is None:
        return None
    m = jnp.broadcast_to(mask.astype(jnp.float32), (B, 1, Sq, Sk))
    return m.reshape(B, Sq, Sk) * (-1e9)


def transformer_forward_pallas(packed, cfg, src_ids, trg_ids,
                               src_padding_mask=None, trg_combined_mask=None):
    B, Ss = src_ids.shape
    _, St = trg_ids.shape
    D, H, F = cfg.dim, cfg.num_heads, cfg.ff_size
    Le, Ld = cfg.encoder_layers, cfg.decoder_layers
    Lt = Le + Ld
    V = cfg.trg_vocab_size
    Vp = packed["wf_pad"].shape[1]

    # TODO(synk): embedding gather + positional encoding stay in plain JAX.
    x = packed["src_emb"][src_ids] + packed["pe"][:, :Ss]       # (B, Ss, D)
    y = packed["trg_emb"][trg_ids] + packed["pe"][:, :St]       # (B, St, D)

    enc_bias = _mask_bias(src_padding_mask, B, Ss, Ss)
    self_bias = _mask_bias(trg_combined_mask, B, St, St)
    cross_bias = _mask_bias(src_padding_mask, B, St, Ss)
    has_e, has_s, has_c = (enc_bias is not None, self_bias is not None,
                           cross_bias is not None)

    inputs = [x, y]
    in_specs = [_batch_spec((Ss, D)), _batch_spec((St, D))]
    if has_e:
        inputs.append(enc_bias); in_specs.append(_batch_spec((Ss, Ss)))
    if has_s:
        inputs.append(self_bias); in_specs.append(_batch_spec((St, St)))
    if has_c:
        inputs.append(cross_bias); in_specs.append(_batch_spec((St, Ss)))

    for name in ("watt", "batt", "wo", "wff", "vec"):
        arr = packed["enc"][name]
        inputs.append(arr)
        in_specs.append(_enc_layer_spec(arr.shape[1:], Le))
    for name in ("watt", "batt", "wo", "wff", "vec"):
        arr = packed["dec"][name]
        inputs.append(arr)
        in_specs.append(_dec_layer_spec(arr.shape[1:], Le))
    inputs += [packed["wf_pad"], packed["bf_pad"]]
    in_specs += [_const_spec(packed["wf_pad"].shape),
                 _const_spec(packed["bf_pad"].shape)]

    kernel = _make_kernel(Ss, St, D, H, F, Le, Ld, has_e, has_s, has_c, cfg.ln_eps)

    logits = pl.pallas_call(
        kernel,
        grid=(B, Lt),
        in_specs=in_specs,
        out_specs=pl.BlockSpec((None, St, Vp), lambda b, l: (b, 0, 0)),
        out_shape=jax.ShapeDtypeStruct((B, St, Vp), jnp.float32),
        scratch_shapes=[pltpu.VMEM((Ss, D), jnp.float32),   # encoder residual/enc_out
                        pltpu.VMEM((St, D), jnp.float32)],  # decoder residual
        compiler_params=pltpu.CompilerParams(
            dimension_semantics=("parallel", "arbitrary")),
    )(*inputs)
    return logits[..., :V]                                   # (B, St, V)


# ------------------------ config / parameter handling -----------------------

class Cfg:
    dim = 32
    ff_size = 64
    num_heads = 4
    src_vocab_size = 50
    trg_vocab_size = 48
    encoder_layers = 2
    decoder_layers = 2
    drop_rate = 0.1            # dropout is identity in this eval-mode forward
    ln_eps = 1e-6              # matches the PyTorch module (LayerNorm eps=1e-06)


def positional_encoding(dim, max_len=64):
    position = jnp.arange(max_len, dtype=jnp.float32)[:, None]
    div_term = jnp.exp(jnp.arange(0, dim, 2, dtype=jnp.float32) *
                       (-(math.log(10000.0) / dim)))
    pe = jnp.zeros((max_len, dim), jnp.float32)
    pe = pe.at[:, 0::2].set(jnp.sin(position * div_term))
    pe = pe.at[:, 1::2].set(jnp.cos(position * div_term))
    return pe[None]            # (1, max_len, dim)


def init_linear(key, din, dout):
    kw, kb = jax.random.split(key)
    bound = 1.0 / math.sqrt(din)
    w = jax.random.uniform(kw, (din, dout), jnp.float32, -bound, bound)
    b = jax.random.uniform(kb, (dout,), jnp.float32, -bound, bound)
    return w, b


def init_mha(key, dim):
    ks = jax.random.split(key, 4)
    return {n: init_linear(k, dim, dim) for n, k in zip(("wq", "wk", "wv", "wo"), ks)}


def init_ffn(key, dim, ff):
    k1, k2 = jax.random.split(key)
    return {"l1": init_linear(k1, dim, ff), "l2": init_linear(k2, ff, dim)}


def init_enc_layer(key, cfg):
    k1, k2 = jax.random.split(key)
    return {"mha": init_mha(k1, cfg.dim), "ffn": init_ffn(k2, cfg.dim, cfg.ff_size),
            "ln1": (jnp.ones(cfg.dim), jnp.zeros(cfg.dim)),
            "ln2": (jnp.ones(cfg.dim), jnp.zeros(cfg.dim))}


def init_dec_layer(key, cfg):
    k1, k2, k3 = jax.random.split(key, 3)
    return {"mha1": init_mha(k1, cfg.dim), "mha2": init_mha(k2, cfg.dim),
            "ffn": init_ffn(k3, cfg.dim, cfg.ff_size),
            "ln1": (jnp.ones(cfg.dim), jnp.zeros(cfg.dim)),
            "ln2": (jnp.ones(cfg.dim), jnp.zeros(cfg.dim)),
            "ln3": (jnp.ones(cfg.dim), jnp.zeros(cfg.dim))}


def init_params(key, cfg):
    ks = jax.random.split(key, 5)
    return {
        "src_emb": jax.random.normal(ks[0], (cfg.src_vocab_size, cfg.dim), jnp.float32),
        "trg_emb": jax.random.normal(ks[1], (cfg.trg_vocab_size, cfg.dim), jnp.float32),
        "final": init_linear(ks[2], cfg.dim, cfg.trg_vocab_size),
        "pe": positional_encoding(cfg.dim),
        "enc": [init_enc_layer(k, cfg) for k in jax.random.split(ks[3], cfg.encoder_layers)],
        "dec": [init_dec_layer(k, cfg) for k in jax.random.split(ks[4], cfg.decoder_layers)],
    }


def pack_params(params, cfg):
    """Pack per-layer weights into a few stacked, head-major, pre-scaled slabs."""
    D, H, F = cfg.dim, cfg.num_heads, cfg.ff_size
    Dh = D // H
    VW = max(D, F)
    scale = 1.0 / math.sqrt(Dh)          # folded into the Q projection

    def hm_w(w, s=1.0):                  # (D, H*Dh) -> (H, D, Dh)
        return jnp.transpose((w * s).reshape(D, H, Dh), (1, 0, 2))

    def hm_b(b, s=1.0):                  # (H*Dh,) -> (H, 1, Dh)
        return (b * s).reshape(H, 1, Dh)

    def att_pack(mha):                   # -> (H, D, 3Dh), (H, 1, 3Dh), q pre-scaled
        w = jnp.concatenate([hm_w(mha["wq"][0], scale),
                             hm_w(mha["wk"][0]), hm_w(mha["wv"][0])], axis=-1)
        b = jnp.concatenate([hm_b(mha["wq"][1], scale),
                             hm_b(mha["wk"][1]), hm_b(mha["wv"][1])], axis=-1)
        return w, b

    def ffn_pack(ffn):                   # W1 rows [0,D), W2 rows [D,D+F)
        wff = jnp.zeros((D + F, VW), jnp.float32)
        return wff.at[:D, :F].set(ffn["l1"][0]).at[D:, :D].set(ffn["l2"][0])

    def vrow(v):
        return jnp.zeros((VW,), jnp.float32).at[:v.shape[0]].set(v)

    enc = {k: [] for k in ("watt", "batt", "wo", "wff", "vec")}
    for p in params["enc"]:
        w, b = att_pack(p["mha"])
        enc["watt"].append(w)
        enc["batt"].append(b)
        enc["wo"].append(p["mha"]["wo"][0].reshape(H, Dh, D))
        enc["wff"].append(ffn_pack(p["ffn"]))
        rows = [p["mha"]["wo"][1], p["ffn"]["l1"][1], p["ffn"]["l2"][1],
                p["ln1"][0], p["ln1"][1], p["ln2"][0], p["ln2"][1]]
        enc["vec"].append(jnp.stack([vrow(r) for r in rows]))
    enc = {k: jnp.stack(v) for k, v in enc.items()}

    dec = {k: [] for k in ("watt", "batt", "wo", "wff", "vec")}
    for p in params["dec"]:
        w1a, b1a = att_pack(p["mha1"])
        w2a, b2a = att_pack(p["mha2"])
        dec["watt"].append(jnp.concatenate([w1a, w2a], axis=-1))      # (H, D, 6Dh)
        dec["batt"].append(jnp.concatenate([b1a, b2a], axis=-1))      # (H, 1, 6Dh)
        dec["wo"].append(jnp.concatenate(
            [p["mha1"]["wo"][0].reshape(H, Dh, D),
             p["mha2"]["wo"][0].reshape(H, Dh, D)], axis=-1))          # (H, Dh, 2D)
        dec["wff"].append(ffn_pack(p["ffn"]))
        rows = [p["mha1"]["wo"][1], p["mha2"]["wo"][1],
                p["ffn"]["l1"][1], p["ffn"]["l2"][1],
                p["ln1"][0], p["ln1"][1], p["ln2"][0], p["ln2"][1],
                p["ln3"][0], p["ln3"][1]]
        dec["vec"].append(jnp.stack([vrow(r) for r in rows]))
    dec = {k: jnp.stack(v) for k, v in dec.items()}

    # final projection, zero-padded to a 128-lane-aligned vocab dim (dense stores)
    wf, bf = params["final"]
    V = cfg.trg_vocab_size
    Vp = ((V + 127) // 128) * 128
    wf_pad = jnp.zeros((D, Vp), jnp.float32).at[:, :V].set(wf)
    bf_pad = jnp.zeros((1, Vp), jnp.float32).at[:, :V].set(bf)

    return {"src_emb": params["src_emb"], "trg_emb": params["trg_emb"],
            "pe": params["pe"], "enc": enc, "dec": dec,
            "wf_pad": wf_pad, "bf_pad": bf_pad}


# --------------------------- pure-JAX reference ------------------------------

def _ref_layer_norm(x, g, b, eps=1e-6):
    m = x.mean(-1, keepdims=True)
    v = ((x - m) ** 2).mean(-1, keepdims=True)
    return (x - m) / jnp.sqrt(v + eps) * g + b


def _ref_mha(xq, xkv, p, mask, H):
    B, Sq, D = xq.shape
    Sk = xkv.shape[1]
    Dh = D // H
    q = xq @ p["wq"][0] + p["wq"][1]
    k = xkv @ p["wk"][0] + p["wk"][1]
    v = xkv @ p["wv"][0] + p["wv"][1]
    qh = q.reshape(B, Sq, H, Dh).transpose(0, 2, 1, 3)
    kh = k.reshape(B, Sk, H, Dh).transpose(0, 2, 1, 3)
    vh = v.reshape(B, Sk, H, Dh).transpose(0, 2, 1, 3)
    s = jnp.einsum("bhqd,bhkd->bhqk", qh, kh) / math.sqrt(Dh)
    if mask is not None:
        s = s + mask * (-1e9)
    w = jax.nn.softmax(s, axis=-1)
    o = jnp.einsum("bhqk,bhkd->bhqd", w, vh)
    concat = o.transpose(0, 2, 1, 3).reshape(B, Sq, D)
    return concat @ p["wo"][0] + p["wo"][1]


def _ref_ffn(x, p):
    return jnp.maximum(x @ p["l1"][0] + p["l1"][1], 0.0) @ p["l2"][0] + p["l2"][1]


def transformer_forward_ref(params, cfg, src_ids, trg_ids, src_mask, trg_mask):
    H = cfg.num_heads
    B, Ss = src_ids.shape
    x = params["src_emb"][src_ids] + params["pe"][:, :Ss]
    for p in params["enc"]:
        att = _ref_mha(x, x, p["mha"], src_mask, H)
        out1 = _ref_layer_norm(x + att, *p["ln1"])
        x = _ref_layer_norm(out1 + _ref_ffn(out1, p["ffn"]), *p["ln2"])
    enc_out = x
    _, St = trg_ids.shape
    y = params["trg_emb"][trg_ids] + params["pe"][:, :St]
    for p in params["dec"]:
        a1 = _ref_mha(y, y, p["mha1"], trg_mask, H)
        o1 = _ref_layer_norm(y + a1, *p["ln1"])
        a2 = _ref_mha(o1, enc_out, p["mha2"], src_mask, H)
        o2 = _ref_layer_norm(o1 + a2, *p["ln2"])
        y = _ref_layer_norm(o2 + _ref_ffn(o2, p["ffn"]), *p["ln3"])
    w, b = params["final"]
    return y @ w + b


# ---------------------------------- main -------------------------------------

if __name__ == "__main__":
    cfg = Cfg()
    key = jax.random.PRNGKey(0)
    kp, k1, k2 = jax.random.split(key, 3)

    params = init_params(kp, cfg)
    packed = pack_params(params, cfg)

    B, S_src, S_trg = 2, 8, 8
    src_ids = jax.random.randint(k1, (B, S_src), 0, cfg.src_vocab_size, dtype=jnp.int32)
    trg_ids = jax.random.randint(k2, (B, S_trg), 0, cfg.trg_vocab_size, dtype=jnp.int32)

    # padding mask: last two src tokens of batch element 1 are padding (1.0 = masked)
    src_lens = jnp.array([S_src, S_src - 2])
    src_padding_mask = (jnp.arange(S_src)[None, :] >= src_lens[:, None]
                        ).astype(jnp.float32).reshape(B, 1, 1, S_src)
    # decoder combined mask: look-ahead (strictly upper triangular)
    look_ahead = jnp.triu(jnp.ones((S_trg, S_trg), jnp.float32), k=1)
    trg_combined_mask = jnp.broadcast_to(look_ahead[None, None], (B, 1, S_trg, S_trg))

    fwd = jax.jit(lambda s, t, sm, tm: transformer_forward_pallas(
        packed, cfg, s, t, sm, tm))
    logits = fwd(src_ids, trg_ids, src_padding_mask, trg_combined_mask)
    jax.block_until_ready(logits)

    # correctness check against a pure-JAX reference of the same forward pass
    logits_ref = transformer_forward_ref(params, cfg, src_ids, trg_ids,
                                         src_padding_mask, trg_combined_mask)
    jax.block_until_ready(logits_ref)

    assert logits.shape == (B, S_trg, cfg.trg_vocab_size)
    err = float(jnp.max(jnp.abs(logits - logits_ref)))
    # tolerance covers the EUP approximate reciprocal used in the softmax denominator
    assert err < 2e-2, err

    print("KERNEL_OK")
</pallas_src>

<mosaic_0001>
module attributes {stable_mosaic.version = 11 : i64} {
  func.func @kernel(%arg0: i32, %arg1: i32, %arg2: memref<1x8x32xf32, #tpu.memory_space<vmem>>, %arg3: memref<1x8x32xf32, #tpu.memory_space<vmem>>, %arg4: memref<1x8x8xf32, #tpu.memory_space<vmem>>, %arg5: memref<1x8x8xf32, #tpu.memory_space<vmem>>, %arg6: memref<1x8x8xf32, #tpu.memory_space<vmem>>, %arg7: memref<1x4x32x24xf32, #tpu.memory_space<vmem>>, %arg8: memref<1x4x1x24xf32, #tpu.memory_space<vmem>>, %arg9: memref<1x4x8x32xf32, #tpu.memory_space<vmem>>, %arg10: memref<1x96x64xf32, #tpu.memory_space<vmem>>, %arg11: memref<1x7x64xf32, #tpu.memory_space<vmem>>, %arg12: memref<1x4x32x48xf32, #tpu.memory_space<vmem>>, %arg13: memref<1x4x1x48xf32, #tpu.memory_space<vmem>>, %arg14: memref<1x4x8x64xf32, #tpu.memory_space<vmem>>, %arg15: memref<1x96x64xf32, #tpu.memory_space<vmem>>, %arg16: memref<1x10x64xf32, #tpu.memory_space<vmem>>, %arg17: memref<32x128xf32, #tpu.memory_space<vmem>>, %arg18: memref<1x128xf32, #tpu.memory_space<vmem>>, %arg19: memref<1x8x128xf32, #tpu.memory_space<vmem>>, %arg20: memref<8x32xf32, #tpu.memory_space<vmem>>, %arg21: memref<8x32xf32, #tpu.memory_space<vmem>>) attributes {dimension_semantics = [#tpu.dimension_semantics<parallel>, #tpu.dimension_semantics<arbitrary>], iteration_bounds = array<i64: 2, 4>, scalar_prefetch = 0 : i64, scratch_operands = 2 : i64, tpu.core_type = #tpu.core_type<tc>, window_params = [{transform_indices = @transform_0, window_bounds = array<i64: 1, 8, 32>}, {transform_indices = @transform_1, window_bounds = array<i64: 1, 8, 32>}, {transform_indices = @transform_2, window_bounds = array<i64: 1, 8, 8>}, {transform_indices = @transform_3, window_bounds = array<i64: 1, 8, 8>}, {transform_indices = @transform_4, window_bounds = array<i64: 1, 8, 8>}, {transform_indices = @transform_5, window_bounds = array<i64: 1, 4, 32, 24>}, {transform_indices = @transform_6, window_bounds = array<i64: 1, 4, 1, 24>}, {transform_indices = @transform_7, window_bounds = array<i64: 1, 4, 8, 32>}, {transform_indices = @transform_8, window_bounds = array<i64: 1, 96, 64>}, {transform_indices = @transform_9, window_bounds = array<i64: 1, 7, 64>}, {transform_indices = @transform_10, window_bounds = array<i64: 1, 4, 32, 48>}, {transform_indices = @transform_11, window_bounds = array<i64: 1, 4, 1, 48>}, {transform_indices = @transform_12, window_bounds = array<i64: 1, 4, 8, 64>}, {transform_indices = @transform_13, window_bounds = array<i64: 1, 96, 64>}, {transform_indices = @transform_14, window_bounds = array<i64: 1, 10, 64>}, {pipeline_mode = #tpu.pipeline_mode<synchronous>, transform_indices = @transform_15, window_bounds = array<i64: 32, 128>}, {pipeline_mode = #tpu.pipeline_mode<synchronous>, transform_indices = @transform_16, window_bounds = array<i64: 1, 128>}, {transform_indices = @transform_17, window_bounds = array<i64: 1, 8, 128>}]} {
    %c0_i32 = arith.constant 0 : i32
    %0 = arith.cmpi eq, %arg1, %c0_i32 : i32
    %1 = arith.extui %0 : i1 to i32
    %c0_i32_0 = arith.constant 0 : i32
    %2 = arith.cmpi ne, %1, %c0_i32_0 : i32
    scf.if %2 {
      %c0 = arith.constant 0 : index
      %c0_5 = arith.constant 0 : index
      %c0_6 = arith.constant 0 : index
      %12 = vector.load %arg2[%c0, %c0_5, %c0_6] : memref<1x8x32xf32, #tpu.memory_space<vmem>>, vector<1x8x32xf32>
      %13 = vector.shape_cast %12 : vector<1x8x32xf32> to vector<8x32xf32>
      %c0_7 = arith.constant 0 : index
      %c0_8 = arith.constant 0 : index
      %14 = vector.load %arg20[%c0_7, %c0_8] : memref<8x32xf32, #tpu.memory_space<vmem>>, vector<8x32xf32>
      tpu.vector_store %arg20[%c0_7, %c0_8], %13 {strides = array<i32>} : memref<8x32xf32, #tpu.memory_space<vmem>>, vector<8x32xf32>,
      %c0_9 = arith.constant 0 : index
      %c0_10 = arith.constant 0 : index
      %c0_11 = arith.constant 0 : index
      %15 = vector.load %arg3[%c0_9, %c0_10, %c0_11] : memref<1x8x32xf32, #tpu.memory_space<vmem>>, vector<1x8x32xf32>
      %16 = vector.shape_cast %15 : vector<1x8x32xf32> to vector<8x32xf32>
      %c0_12 = arith.constant 0 : index
      %c0_13 = arith.constant 0 : index
      %17 = vector.load %arg21[%c0_12, %c0_13] : memref<8x32xf32, #tpu.memory_space<vmem>>, vector<8x32xf32>
      tpu.vector_store %arg21[%c0_12, %c0_13], %16 {strides = array<i32>} : memref<8x32xf32, #tpu.memory_space<vmem>>, vector<8x32xf32>,
    } else {
    }
    %c2_i32 = arith.constant 2 : i32
    %3 = arith.cmpi slt, %arg1, %c2_i32 : i32
    %4 = arith.extui %3 : i1 to i32
    %c0_i32_1 = arith.constant 0 : i32
    %5 = arith.cmpi ne, %4, %c0_i32_1 : i32
    scf.if %5 {
      %c0 = arith.constant 0 : index
      %c0_5 = arith.constant 0 : index
      %12 = vector.load %arg20[%c0, %c0_5] : memref<8x32xf32, #tpu.memory_space<vmem>>, vector<8x32xf32>
      %c0_6 = arith.constant 0 : index
      %c0_7 = arith.constant 0 : index
      %c0_8 = arith.constant 0 : index
      %13 = vector.load %arg11[%c0_6, %c0_7, %c0_8] : memref<1x7x64xf32, #tpu.memory_space<vmem>>, vector<1x7x64xf32>
      %14 = vector.shape_cast %13 : vector<1x7x64xf32> to vector<7x64xf32>
      %15 = vector.extract_strided_slice %14 {offsets = [0, 0], sizes = [1, 32], strides = [1, 1]} : vector<7x64xf32> to vector<1x32xf32>
      %16 = vector.extract_strided_slice %14 {offsets = [1, 0], sizes = [1, 64], strides = [1, 1]} : vector<7x64xf32> to vector<1x64xf32>
      %17 = vector.extract_strided_slice %14 {offsets = [2, 0], sizes = [1, 32], strides = [1, 1]} : vector<7x64xf32> to vector<1x32xf32>
      %18 = vector.extract_strided_slice %14 {offsets = [3, 0], sizes = [1, 32], strides = [1, 1]} : vector<7x64xf32> to vector<1x32xf32>
      %19 = vector.extract_strided_slice %14 {offsets = [4, 0], sizes = [1, 32], strides = [1, 1]} : vector<7x64xf32> to vector<1x32xf32>
      %20 = vector.extract_strided_slice %14 {offsets = [5, 0], sizes = [1, 32], strides = [1, 1]} : vector<7x64xf32> to vector<1x32xf32>
      %21 = vector.extract_strided_slice %14 {offsets = [6, 0], sizes = [1, 32], strides = [1, 1]} : vector<7x64xf32> to vector<1x32xf32>
      %c0_9 = arith.constant 0 : index
      %c0_10 = arith.constant 0 : index
      %c0_11 = arith.constant 0 : index
      %c0_12 = arith.constant 0 : index
      %22 = vector.load %arg7[%c0_9, %c0_10, %c0_11, %c0_12] : memref<1x4x32x24xf32, #tpu.memory_space<vmem>>, vector<1x4x32x24xf32>
      %23 = vector.shape_cast %22 : vector<1x4x32x24xf32> to vector<4x32x24xf32>
      %c0_13 = arith.constant 0 : index
      %c0_14 = arith.constant 0 : index
      %c0_15 = arith.constant 0 : index
      %c0_16 = arith.constant 0 : index
      %24 = vector.load %arg8[%c0_13, %c0_14, %c0_15, %c0_16] : memref<1x4x1x24xf32, #tpu.memory_space<vmem>>, vector<1x4x1x24xf32>
      %25 = vector.shape_cast %24 : vector<1x4x1x24xf32> to vector<4x1x24xf32>
      %26 = vector.shape_cast %12 : vector<8x32xf32> to vector<1x8x32xf32>
      %27 = vector.shape_cast %26 : vector<1x8x32xf32> to vector<1x8x32xf32>
      %28 = vector.broadcast %27 : vector<1x8x32xf32> to vector<4x8x32xf32>
      "tpu.trace_start"() <{level = 10 : i32, message = "hsd,hde->hse"}> : () -> ()
      %cst = arith.constant dense<0.000000e+00> : vector<4x8x24xf32>
      %29 = tpu.matmul %28, %23, %cst {dimension_numbers = #tpu.dot_dimension_numbers<[2], [1], [1], [2], [0, 0, 0, 1, 1, 2], [0], [0]>} : vector<4x8x32xf32>, vector<4x32x24xf32>, vector<4x8x24xf32> -> vector<4x8x24xf32>
      "tpu.trace_stop"() : () -> ()
      %30 = vector.broadcast %25 : vector<4x1x24xf32> to vector<4x8x24xf32>
      %31 = arith.addf %29, %30 : vector<4x8x24xf32>
      %32 = vector.extract_strided_slice %31 {offsets = [0, 0, 0], sizes = [4, 8, 8], strides = [1, 1, 1]} : vector<4x8x24xf32> to vector<4x8x8xf32>
      %33 = vector.extract_strided_slice %31 {offsets = [0, 0, 8], sizes = [4, 8, 8], strides = [1, 1, 1]} : vector<4x8x24xf32> to vector<4x8x8xf32>
      %34 = vector.extract_strided_slice %31 {offsets = [0, 0, 16], sizes = [4, 8, 8], strides = [1, 1, 1]} : vector<4x8x24xf32> to vector<4x8x8xf32>
      %c0_17 = arith.constant 0 : index
      %c0_18 = arith.constant 0 : index
      %c0_19 = arith.constant 0 : index
      %35 = vector.load %arg4[%c0_17, %c0_18, %c0_19] : memref<1x8x8xf32, #tpu.memory_space<vmem>>, vector<1x8x8xf32>
      %36 = vector.shape_cast %35 : vector<1x8x8xf32> to vector<8x8xf32>
      %c0_20 = arith.constant 0 : index
      %c0_21 = arith.constant 0 : index
      %c0_22 = arith.constant 0 : index
      %c0_23 = arith.constant 0 : index
      %37 = vector.load %arg9[%c0_20, %c0_21, %c0_22, %c0_23] : memref<1x4x8x32xf32, #tpu.memory_space<vmem>>, vector<1x4x8x32xf32>
      %38 = vector.shape_cast %37 : vector<1x4x8x32xf32> to vector<4x8x32xf32>
      "tpu.trace_start"() <{level = 10 : i32, message = "hqd,hkd->hqk"}> : () -> ()
      %cst_24 = arith.constant dense<0.000000e+00> : vector<4x8x8xf32>
      %39 = tpu.matmul %32, %33, %cst_24 {dimension_numbers = #tpu.dot_dimension_numbers<[2], [2], [1], [1], [0, 0, 0, 1, 1, 1], [0], [0]>} : vector<4x8x8xf32>, vector<4x8x8xf32>, vector<4x8x8xf32> -> vector<4x8x8xf32>
      "tpu.trace_stop"() : () -> ()
      %40 = vector.shape_cast %36 : vector<8x8xf32> to vector<1x8x8xf32>
      %41 = vector.broadcast %40 : vector<1x8x8xf32> to vector<4x8x8xf32>
      %42 = arith.addf %39, %41 : vector<4x8x8xf32>
      %cst_25 = arith.constant dense<0xFF800000> : vector<4x8xf32>
      %43 = vector.multi_reduction <maximumf>, %42, %cst_25 [2] : vector<4x8x8xf32> to vector<4x8xf32>
      %44 = vector.shape_cast %43 : vector<4x8xf32> to vector<4x8x1xf32>
      %45 = vector.broadcast %44 : vector<4x8x1xf32> to vector<4x8x8xf32>
      %46 = arith.subf %42, %45 : vector<4x8x8xf32>
      %47 = math.exp %46 : vector<4x8x8xf32>
      %cst_26 = arith.constant dense<0.000000e+00> : vector<4x8xf32>
      %48 = vector.multi_reduction <add>, %47, %cst_26 [2] : vector<4x8x8xf32> to vector<4x8xf32>
      %49 = vector.shape_cast %48 : vector<4x8xf32> to vector<4x8x1xf32>
      %50 = tpu.reciprocal %49 {approx = true} : vector<4x8x1xf32> -> vector<4x8x1xf32>
      %51 = vector.broadcast %50 : vector<4x8x1xf32> to vector<4x8x8xf32>
      %52 = arith.mulf %47, %51 : vector<4x8x8xf32>
      "tpu.trace_start"() <{level = 10 : i32, message = "hqk,hkd->hqd"}> : () -> ()
      %cst_27 = arith.constant dense<0.000000e+00> : vector<4x8x8xf32>
      %53 = tpu.matmul %52, %34, %cst_27 {dimension_numbers = #tpu.dot_dimension_numbers<[2], [1], [1], [2], [0, 0, 0, 1, 1, 2], [0], [0]>} : vector<4x8x8xf32>, vector<4x8x8xf32>, vector<4x8x8xf32> -> vector<4x8x8xf32>
      "tpu.trace_stop"() : () -> ()
      "tpu.trace_start"() <{level = 10 : i32, message = "hqd,hdf->hqf"}> : () -> ()
      %cst_28 = arith.constant dense<0.000000e+00> : vector<4x8x32xf32>
      %54 = tpu.matmul %53, %38, %cst_28 {dimension_numbers = #tpu.dot_dimension_numbers<[2], [1], [1], [2], [0, 0, 0, 1, 1, 2], [0], [0]>} : vector<4x8x8xf32>, vector<4x8x32xf32>, vector<4x8x32xf32> -> vector<4x8x32xf32>
      "tpu.trace_stop"() : () -> ()
      %cst_29 = arith.constant dense<0.000000e+00> : vector<8x32xf32>
      %55 = vector.multi_reduction <add>, %54, %cst_29 [0] : vector<4x8x32xf32> to vector<8x32xf32>
      %56 = vector.broadcast %15 : vector<1x32xf32> to vector<8x32xf32>
      %57 = arith.addf %55, %56 : vector<8x32xf32>
      %58 = arith.addf %12, %57 : vector<8x32xf32>
      %cst_30 = arith.constant dense<0.000000e+00> : vector<8xf32>
      %59 = vector.multi_reduction <add>, %58, %cst_30 [1] : vector<8x32xf32> to vector<8xf32>
      %60 = vector.shape_cast %59 : vector<8xf32> to vector<8x1xf32>
      %cst_31 = arith.constant 3.200000e+01 : f32
      %61 = vector.broadcast %cst_31 : f32 to vector<8x1xf32>
      %62 = arith.divf %60, %61 : vector<8x1xf32>
      %63 = vector.broadcast %62 : vector<8x1xf32> to vector<8x32xf32>
      %64 = arith.subf %58, %63 : vector<8x32xf32>
      %65 = arith.mulf %64, %64 : vector<8x32xf32>
      %cst_32 = arith.constant dense<0.000000e+00> : vector<8xf32>
      %66 = vector.multi_reduction <add>, %65, %cst_32 [1] : vector<8x32xf32> to vector<8xf32>
      %67 = vector.shape_cast %66 : vector<8xf32> to vector<8x1xf32>
      %cst_33 = arith.constant 3.200000e+01 : f32
      %68 = vector.broadcast %cst_33 : f32 to vector<8x1xf32>
      %69 = arith.divf %67, %68 : vector<8x1xf32>
      %70 = vector.broadcast %62 : vector<8x1xf32> to vector<8x32xf32>
      %71 = arith.subf %58, %70 : vector<8x32xf32>
      %cst_34 = arith.constant 9.99999997E-7 : f32
      %72 = vector.broadcast %cst_34 : f32 to vector<8x1xf32>
      %73 = arith.addf %69, %72 : vector<8x1xf32>
      %74 = math.rsqrt %73 : vector<8x1xf32>
      %75 = vector.broadcast %74 : vector<8x1xf32> to vector<8x32xf32>
      %76 = arith.mulf %71, %75 : vector<8x32xf32>
      %77 = vector.broadcast %18 : vector<1x32xf32> to vector<8x32xf32>
      %78 = arith.mulf %76, %77 : vector<8x32xf32>
      %79 = vector.broadcast %19 : vector<1x32xf32> to vector<8x32xf32>
      %80 = arith.addf %78, %79 : vector<8x32xf32>
      %c0_35 = arith.constant 0 : index
      %c0_36 = arith.constant 0 : index
      %c0_37 = arith.constant 0 : index
      %81 = vector.load %arg10[%c0_35, %c0_36, %c0_37] : memref<1x96x64xf32, #tpu.memory_space<vmem>>, vector<1x96x64xf32>
      %82 = vector.shape_cast %81 : vector<1x96x64xf32> to vector<96x64xf32>
      %83 = vector.extract_strided_slice %82 {offsets = [0, 0], sizes = [32, 64], strides = [1, 1]} : vector<96x64xf32> to vector<32x64xf32>
      %cst_38 = arith.constant dense<0.000000e+00> : vector<8x64xf32>
      %84 = tpu.matmul %80, %83, %cst_38 {dimension_numbers = #tpu.dot_dimension_numbers<[1], [0], [0], [1], [0, 0, 1, 1], [], []>} : vector<8x32xf32>, vector<32x64xf32>, vector<8x64xf32> -> vector<8x64xf32>
      %85 = vector.broadcast %16 : vector<1x64xf32> to vector<8x64xf32>
      %86 = arith.addf %84, %85 : vector<8x64xf32>
      %cst_39 = arith.constant 0.000000e+00 : f32
      %87 = vector.broadcast %cst_39 : f32 to vector<8x64xf32>
      %88 = arith.maximumf %86, %87 : vector<8x64xf32>
      %89 = vector.extract_strided_slice %82 {offsets = [32, 0], sizes = [64, 32], strides = [1, 1]} : vector<96x64xf32> to vector<64x32xf32>
      %cst_40 = arith.constant dense<0.000000e+00> : vector<8x32xf32>
      %90 = tpu.matmul %88, %89, %cst_40 {dimension_numbers = #tpu.dot_dimension_numbers<[1], [0], [0], [1], [0, 0, 1, 1], [], []>} : vector<8x64xf32>, vector<64x32xf32>, vector<8x32xf32> -> vector<8x32xf32>
      %91 = vector.broadcast %17 : vector<1x32xf32> to vector<8x32xf32>
      %92 = arith.addf %90, %91 : vector<8x32xf32>
      %93 = arith.addf %80, %92 : vector<8x32xf32>
      %cst_41 = arith.constant dense<0.000000e+00> : vector<8xf32>
      %94 = vector.multi_reduction <add>, %93, %cst_41 [1] : vector<8x32xf32> to vector<8xf32>
      %95 = vector.shape_cast %94 : vector<8xf32> to vector<8x1xf32>
      %cst_42 = arith.constant 3.200000e+01 : f32
      %96 = vector.broadcast %cst_42 : f32 to vector<8x1xf32>
      %97 = arith.divf %95, %96 : vector<8x1xf32>
      %98 = vector.broadcast %97 : vector<8x1xf32> to vector<8x32xf32>
      %99 = arith.subf %93, %98 : vector<8x32xf32>
      %100 = arith.mulf %99, %99 : vector<8x32xf32>
      %cst_43 = arith.constant dense<0.000000e+00> : vector<8xf32>
      %101 = vector.multi_reduction <add>, %100, %cst_43 [1] : vector<8x32xf32> to vector<8xf32>
      %102 = vector.shape_cast %101 : vector<8xf32> to vector<8x1xf32>
      %cst_44 = arith.constant 3.200000e+01 : f32
      %103 = vector.broadcast %cst_44 : f32 to vector<8x1xf32>
      %104 = arith.divf %102, %103 : vector<8x1xf32>
      %105 = vector.broadcast %97 : vector<8x1xf32> to vector<8x32xf32>
      %106 = arith.subf %93, %105 : vector<8x32xf32>
      %cst_45 = arith.constant 9.99999997E-7 : f32
      %107 = vector.broadcast %cst_45 : f32 to vector<8x1xf32>
      %108 = arith.addf %104, %107 : vector<8x1xf32>
      %109 = math.rsqrt %108 : vector<8x1xf32>
      %110 = vector.broadcast %109 : vector<8x1xf32> to vector<8x32xf32>
      %111 = arith.mulf %106, %110 : vector<8x32xf32>
      %112 = vector.broadcast %20 : vector<1x32xf32> to vector<8x32xf32>
      %113 = arith.mulf %111, %112 : vector<8x32xf32>
      %114 = vector.broadcast %21 : vector<1x32xf32> to vector<8x32xf32>
      %115 = arith.addf %113, %114 : vector<8x32xf32>
      %c0_46 = arith.constant 0 : index
      %c0_47 = arith.constant 0 : index
      %116 = vector.load %arg20[%c0_46, %c0_47] : memref<8x32xf32, #tpu.memory_space<vmem>>, vector<8x32xf32>
      tpu.vector_store %arg20[%c0_46, %c0_47], %115 {strides = array<i32>} : memref<8x32xf32, #tpu.memory_space<vmem>>, vector<8x32xf32>,
    } else {
    }
    %c2_i32_2 = arith.constant 2 : i32
    %6 = arith.cmpi sge, %arg1, %c2_i32_2 : i32
    %7 = arith.extui %6 : i1 to i32
    %c0_i32_3 = arith.constant 0 : i32
    %8 = arith.cmpi ne, %7, %c0_i32_3 : i32
    scf.if %8 {
      %c0 = arith.constant 0 : index
      %c0_5 = arith.constant 0 : index
      %12 = vector.load %arg21[%c0, %c0_5] : memref<8x32xf32, #tpu.memory_space<vmem>>, vector<8x32xf32>
      %c0_6 = arith.constant 0 : index
      %c0_7 = arith.constant 0 : index
      %13 = vector.load %arg20[%c0_6, %c0_7] : memref<8x32xf32, #tpu.memory_space<vmem>>, vector<8x32xf32>
      %c0_8 = arith.constant 0 : index
      %c0_9 = arith.constant 0 : index
      %c0_10 = arith.constant 0 : index
      %14 = vector.load %arg16[%c0_8, %c0_9, %c0_10] : memref<1x10x64xf32, #tpu.memory_space<vmem>>, vector<1x10x64xf32>
      %15 = vector.shape_cast %14 : vector<1x10x64xf32> to vector<10x64xf32>
      %16 = vector.extract_strided_slice %15 {offsets = [0, 0], sizes = [1, 32], strides = [1, 1]} : vector<10x64xf32> to vector<1x32xf32>
      %17 = vector.extract_strided_slice %15 {offsets = [1, 0], sizes = [1, 32], strides = [1, 1]} : vector<10x64xf32> to vector<1x32xf32>
      %18 = vector.extract_strided_slice %15 {offsets = [2, 0], sizes = [1, 64], strides = [1, 1]} : vector<10x64xf32> to vector<1x64xf32>
      %19 = vector.extract_strided_slice %15 {offsets = [3, 0], sizes = [1, 32], strides = [1, 1]} : vector<10x64xf32> to vector<1x32xf32>
      %20 = vector.extract_strided_slice %15 {offsets = [4, 0], sizes = [1, 32], strides = [1, 1]} : vector<10x64xf32> to vector<1x32xf32>
      %21 = vector.extract_strided_slice %15 {offsets = [5, 0], sizes = [1, 32], strides = [1, 1]} : vector<10x64xf32> to vector<1x32xf32>
      %22 = vector.extract_strided_slice %15 {offsets = [6, 0], sizes = [1, 32], strides = [1, 1]} : vector<10x64xf32> to vector<1x32xf32>
      %23 = vector.extract_strided_slice %15 {offsets = [7, 0], sizes = [1, 32], strides = [1, 1]} : vector<10x64xf32> to vector<1x32xf32>
      %24 = vector.extract_strided_slice %15 {offsets = [8, 0], sizes = [1, 32], strides = [1, 1]} : vector<10x64xf32> to vector<1x32xf32>
      %25 = vector.extract_strided_slice %15 {offsets = [9, 0], sizes = [1, 32], strides = [1, 1]} : vector<10x64xf32> to vector<1x32xf32>
      %c0_11 = arith.constant 0 : index
      %c0_12 = arith.constant 0 : index
      %c0_13 = arith.constant 0 : index
      %c0_14 = arith.constant 0 : index
      %26 = vector.load %arg12[%c0_11, %c0_12, %c0_13, %c0_14] : memref<1x4x32x48xf32, #tpu.memory_space<vmem>>, vector<1x4x32x48xf32>
      %27 = vector.shape_cast %26 : vector<1x4x32x48xf32> to vector<4x32x48xf32>
      %c0_15 = arith.constant 0 : index
      %c0_16 = arith.constant 0 : index
      %c0_17 = arith.constant 0 : index
      %c0_18 = arith.constant 0 : index
      %28 = vector.load %arg13[%c0_15, %c0_16, %c0_17, %c0_18] : memref<1x4x1x48xf32, #tpu.memory_space<vmem>>, vector<1x4x1x48xf32>
      %29 = vector.shape_cast %28 : vector<1x4x1x48xf32> to vector<4x1x48xf32>
      %c0_19 = arith.constant 0 : index
      %c0_20 = arith.constant 0 : index
      %c0_21 = arith.constant 0 : index
      %c0_22 = arith.constant 0 : index
      %30 = vector.load %arg14[%c0_19, %c0_20, %c0_21, %c0_22] : memref<1x4x8x64xf32, #tpu.memory_space<vmem>>, vector<1x4x8x64xf32>
      %31 = vector.shape_cast %30 : vector<1x4x8x64xf32> to vector<4x8x64xf32>
      %32 = vector.extract_strided_slice %27 {offsets = [0, 0, 0], sizes = [4, 32, 24], strides = [1, 1, 1]} : vector<4x32x48xf32> to vector<4x32x24xf32>
      %33 = vector.extract_strided_slice %29 {offsets = [0, 0, 0], sizes = [4, 1, 24], strides = [1, 1, 1]} : vector<4x1x48xf32> to vector<4x1x24xf32>
      %34 = vector.shape_cast %12 : vector<8x32xf32> to vector<1x8x32xf32>
      %35 = vector.shape_cast %34 : vector<1x8x32xf32> to vector<1x8x32xf32>
      %36 = vector.broadcast %35 : vector<1x8x32xf32> to vector<4x8x32xf32>
      "tpu.trace_start"() <{level = 10 : i32, message = "hsd,hde->hse"}> : () -> ()
      %cst = arith.constant dense<0.000000e+00> : vector<4x8x24xf32>
      %37 = tpu.matmul %36, %32, %cst {dimension_numbers = #tpu.dot_dimension_numbers<[2], [1], [1], [2], [0, 0, 0, 1, 1, 2], [0], [0]>} : vector<4x8x32xf32>, vector<4x32x24xf32>, vector<4x8x24xf32> -> vector<4x8x24xf32>
      "tpu.trace_stop"() : () -> ()
      %38 = vector.broadcast %33 : vector<4x1x24xf32> to vector<4x8x24xf32>
      %39 = arith.addf %37, %38 : vector<4x8x24xf32>
      %40 = vector.extract_strided_slice %39 {offsets = [0, 0, 0], sizes = [4, 8, 8], strides = [1, 1, 1]} : vector<4x8x24xf32> to vector<4x8x8xf32>
      %41 = vector.extract_strided_slice %39 {offsets = [0, 0, 8], sizes = [4, 8, 8], strides = [1, 1, 1]} : vector<4x8x24xf32> to vector<4x8x8xf32>
      %42 = vector.extract_strided_slice %39 {offsets = [0, 0, 16], sizes = [4, 8, 8], strides = [1, 1, 1]} : vector<4x8x24xf32> to vector<4x8x8xf32>
      %c0_23 = arith.constant 0 : index
      %c0_24 = arith.constant 0 : index
      %c0_25 = arith.constant 0 : index
      %43 = vector.load %arg5[%c0_23, %c0_24, %c0_25] : memref<1x8x8xf32, #tpu.memory_space<vmem>>, vector<1x8x8xf32>
      %44 = vector.shape_cast %43 : vector<1x8x8xf32> to vector<8x8xf32>
      %45 = vector.extract_strided_slice %31 {offsets = [0, 0, 0], sizes = [4, 8, 32], strides = [1, 1, 1]} : vector<4x8x64xf32> to vector<4x8x32xf32>
      "tpu.trace_start"() <{level = 10 : i32, message = "hqd,hkd->hqk"}> : () -> ()
      %cst_26 = arith.constant dense<0.000000e+00> : vector<4x8x8xf32>
      %46 = tpu.matmul %40, %41, %cst_26 {dimension_numbers = #tpu.dot_dimension_numbers<[2], [2], [1], [1], [0, 0, 0, 1, 1, 1], [0], [0]>} : vector<4x8x8xf32>, vector<4x8x8xf32>, vector<4x8x8xf32> -> vector<4x8x8xf32>
      "tpu.trace_stop"() : () -> ()
      %47 = vector.shape_cast %44 : vector<8x8xf32> to vector<1x8x8xf32>
      %48 = vector.broadcast %47 : vector<1x8x8xf32> to vector<4x8x8xf32>
      %49 = arith.addf %46, %48 : vector<4x8x8xf32>
      %cst_27 = arith.constant dense<0xFF800000> : vector<4x8xf32>
      %50 = vector.multi_reduction <maximumf>, %49, %cst_27 [2] : vector<4x8x8xf32> to vector<4x8xf32>
      %51 = vector.shape_cast %50 : vector<4x8xf32> to vector<4x8x1xf32>
      %52 = vector.broadcast %51 : vector<4x8x1xf32> to vector<4x8x8xf32>
      %53 = arith.subf %49, %52 : vector<4x8x8xf32>
      %54 = math.exp %53 : vector<4x8x8xf32>
      %cst_28 = arith.constant dense<0.000000e+00> : vector<4x8xf32>
      %55 = vector.multi_reduction <add>, %54, %cst_28 [2] : vector<4x8x8xf32> to vector<4x8xf32>
      %56 = vector.shape_cast %55 : vector<4x8xf32> to vector<4x8x1xf32>
      %57 = tpu.reciprocal %56 {approx = true} : vector<4x8x1xf32> -> vector<4x8x1xf32>
      %58 = vector.broadcast %57 : vector<4x8x1xf32> to vector<4x8x8xf32>
      %59 = arith.mulf %54, %58 : vector<4x8x8xf32>
      "tpu.trace_start"() <{level = 10 : i32, message = "hqk,hkd->hqd"}> : () -> ()
      %cst_29 = arith.constant dense<0.000000e+00> : vector<4x8x8xf32>
      %60 = tpu.matmul %59, %42, %cst_29 {dimension_numbers = #tpu.dot_dimension_numbers<[2], [1], [1], [2], [0, 0, 0, 1, 1, 2], [0], [0]>} : vector<4x8x8xf32>, vector<4x8x8xf32>, vector<4x8x8xf32> -> vector<4x8x8xf32>
      "tpu.trace_stop"() : () -> ()
      "tpu.trace_start"() <{level = 10 : i32, message = "hqd,hdf->hqf"}> : () -> ()
      %cst_30 = arith.constant dense<0.000000e+00> : vector<4x8x32xf32>
      %61 = tpu.matmul %60, %45, %cst_30 {dimension_numbers = #tpu.dot_dimension_numbers<[2], [1], [1], [2], [0, 0, 0, 1, 1, 2], [0], [0]>} : vector<4x8x8xf32>, vector<4x8x32xf32>, vector<4x8x32xf32> -> vector<4x8x32xf32>
      "tpu.trace_stop"() : () -> ()
      %cst_31 = arith.constant dense<0.000000e+00> : vector<8x32xf32>
      %62 = vector.multi_reduction <add>, %61, %cst_31 [0] : vector<4x8x32xf32> to vector<8x32xf32>
      %63 = vector.broadcast %16 : vector<1x32xf32> to vector<8x32xf32>
      %64 = arith.addf %62, %63 : vector<8x32xf32>
      %65 = arith.addf %12, %64 : vector<8x32xf32>
      %cst_32 = arith.constant dense<0.000000e+00> : vector<8xf32>
      %66 = vector.multi_reduction <add>, %65, %cst_32 [1] : vector<8x32xf32> to vector<8xf32>
      %67 = vector.shape_cast %66 : vector<8xf32> to vector<8x1xf32>
      %cst_33 = arith.constant 3.200000e+01 : f32
      %68 = vector.broadcast %cst_33 : f32 to vector<8x1xf32>
      %69 = arith.divf %67, %68 : vector<8x1xf32>
      %70 = vector.broadcast %69 : vector<8x1xf32> to vector<8x32xf32>
      %71 = arith.subf %65, %70 : vector<8x32xf32>
      %72 = arith.mulf %71, %71 : vector<8x32xf32>
      %cst_34 = arith.constant dense<0.000000e+00> : vector<8xf32>
      %73 = vector.multi_reduction <add>, %72, %cst_34 [1] : vector<8x32xf32> to vector<8xf32>
      %74 = vector.shape_cast %73 : vector<8xf32> to vector<8x1xf32>
      %cst_35 = arith.constant 3.200000e+01 : f32
      %75 = vector.broadcast %cst_35 : f32 to vector<8x1xf32>
      %76 = arith.divf %74, %75 : vector<8x1xf32>
      %77 = vector.broadcast %69 : vector<8x1xf32> to vector<8x32xf32>
      %78 = arith.subf %65, %77 : vector<8x32xf32>
      %cst_36 = arith.constant 9.99999997E-7 : f32
      %79 = vector.broadcast %cst_36 : f32 to vector<8x1xf32>
      %80 = arith.addf %76, %79 : vector<8x1xf32>
      %81 = math.rsqrt %80 : vector<8x1xf32>
      %82 = vector.broadcast %81 : vector<8x1xf32> to vector<8x32xf32>
      %83 = arith.mulf %78, %82 : vector<8x32xf32>
      %84 = vector.broadcast %20 : vector<1x32xf32> to vector<8x32xf32>
      %85 = arith.mulf %83, %84 : vector<8x32xf32>
      %86 = vector.broadcast %21 : vector<1x32xf32> to vector<8x32xf32>
      %87 = arith.addf %85, %86 : vector<8x32xf32>
      %88 = vector.extract_strided_slice %27 {offsets = [0, 0, 24], sizes = [4, 32, 8], strides = [1, 1, 1]} : vector<4x32x48xf32> to vector<4x32x8xf32>
      %89 = vector.extract_strided_slice %29 {offsets = [0, 0, 24], sizes = [4, 1, 8], strides = [1, 1, 1]} : vector<4x1x48xf32> to vector<4x1x8xf32>
      %90 = vector.shape_cast %87 : vector<8x32xf32> to vector<1x8x32xf32>
      %91 = vector.shape_cast %90 : vector<1x8x32xf32> to vector<1x8x32xf32>
      %92 = vector.broadcast %91 : vector<1x8x32xf32> to vector<4x8x32xf32>
      "tpu.trace_start"() <{level = 10 : i32, message = "hsd,hde->hse"}> : () -> ()
      %cst_37 = arith.constant dense<0.000000e+00> : vector<4x8x8xf32>
      %93 = tpu.matmul %92, %88, %cst_37 {dimension_numbers = #tpu.dot_dimension_numbers<[2], [1], [1], [2], [0, 0, 0, 1, 1, 2], [0], [0]>} : vector<4x8x32xf32>, vector<4x32x8xf32>, vector<4x8x8xf32> -> vector<4x8x8xf32>
      "tpu.trace_stop"() : () -> ()
      %94 = vector.broadcast %89 : vector<4x1x8xf32> to vector<4x8x8xf32>
      %95 = arith.addf %93, %94 : vector<4x8x8xf32>
      %96 = vector.extract_strided_slice %27 {offsets = [0, 0, 32], sizes = [4, 32, 16], strides = [1, 1, 1]} : vector<4x32x48xf32> to vector<4x32x16xf32>
      %97 = vector.extract_strided_slice %29 {offsets = [0, 0, 32], sizes = [4, 1, 16], strides = [1, 1, 1]} : vector<4x1x48xf32> to vector<4x1x16xf32>
      %98 = vector.shape_cast %13 : vector<8x32xf32> to vector<1x8x32xf32>
      %99 = vector.shape_cast %98 : vector<1x8x32xf32> to vector<1x8x32xf32>
      %100 = vector.broadcast %99 : vector<1x8x32xf32> to vector<4x8x32xf32>
      "tpu.trace_start"() <{level = 10 : i32, message = "hsd,hde->hse"}> : () -> ()
      %cst_38 = arith.constant dense<0.000000e+00> : vector<4x8x16xf32>
      %101 = tpu.matmul %100, %96, %cst_38 {dimension_numbers = #tpu.dot_dimension_numbers<[2], [1], [1], [2], [0, 0, 0, 1, 1, 2], [0], [0]>} : vector<4x8x32xf32>, vector<4x32x16xf32>, vector<4x8x16xf32> -> vector<4x8x16xf32>
      "tpu.trace_stop"() : () -> ()
      %102 = vector.broadcast %97 : vector<4x1x16xf32> to vector<4x8x16xf32>
      %103 = arith.addf %101, %102 : vector<4x8x16xf32>
      %104 = vector.extract_strided_slice %103 {offsets = [0, 0, 0], sizes = [4, 8, 8], strides = [1, 1, 1]} : vector<4x8x16xf32> to vector<4x8x8xf32>
      %105 = vector.extract_strided_slice %103 {offsets = [0, 0, 8], sizes = [4, 8, 8], strides = [1, 1, 1]} : vector<4x8x16xf32> to vector<4x8x8xf32>
      %c0_39 = arith.constant 0 : index
      %c0_40 = arith.constant 0 : index
      %c0_41 = arith.constant 0 : index
      %106 = vector.load %arg6[%c0_39, %c0_40, %c0_41] : memref<1x8x8xf32, #tpu.memory_space<vmem>>, vector<1x8x8xf32>
      %107 = vector.shape_cast %106 : vector<1x8x8xf32> to vector<8x8xf32>
      %108 = vector.extract_strided_slice %31 {offsets = [0, 0, 32], sizes = [4, 8, 32], strides = [1, 1, 1]} : vector<4x8x64xf32> to vector<4x8x32xf32>
      "tpu.trace_start"() <{level = 10 : i32, message = "hqd,hkd->hqk"}> : () -> ()
      %cst_42 = arith.constant dense<0.000000e+00> : vector<4x8x8xf32>
      %109 = tpu.matmul %95, %104, %cst_42 {dimension_numbers = #tpu.dot_dimension_numbers<[2], [2], [1], [1], [0, 0, 0, 1, 1, 1], [0], [0]>} : vector<4x8x8xf32>, vector<4x8x8xf32>, vector<4x8x8xf32> -> vector<4x8x8xf32>
      "tpu.trace_stop"() : () -> ()
      %110 = vector.shape_cast %107 : vector<8x8xf32> to vector<1x8x8xf32>
      %111 = vector.broadcast %110 : vector<1x8x8xf32> to vector<4x8x8xf32>
      %112 = arith.addf %109, %111 : vector<4x8x8xf32>
      %cst_43 = arith.constant dense<0xFF800000> : vector<4x8xf32>
      %113 = vector.multi_reduction <maximumf>, %112, %cst_43 [2] : vector<4x8x8xf32> to vector<4x8xf32>
      %114 = vector.shape_cast %113 : vector<4x8xf32> to vector<4x8x1xf32>
      %115 = vector.broadcast %114 : vector<4x8x1xf32> to vector<4x8x8xf32>
      %116 = arith.subf %112, %115 : vector<4x8x8xf32>
      %117 = math.exp %116 : vector<4x8x8xf32>
      %cst_44 = arith.constant dense<0.000000e+00> : vector<4x8xf32>
      %118 = vector.multi_reduction <add>, %117, %cst_44 [2] : vector<4x8x8xf32> to vector<4x8xf32>
      %119 = vector.shape_cast %118 : vector<4x8xf32> to vector<4x8x1xf32>
      %120 = tpu.reciprocal %119 {approx = true} : vector<4x8x1xf32> -> vector<4x8x1xf32>
      %121 = vector.broadcast %120 : vector<4x8x1xf32> to vector<4x8x8xf32>
      %122 = arith.mulf %117, %121 : vector<4x8x8xf32>
      "tpu.trace_start"() <{level = 10 : i32, message = "hqk,hkd->hqd"}> : () -> ()
      %cst_45 = arith.constant dense<0.000000e+00> : vector<4x8x8xf32>
      %123 = tpu.matmul %122, %105, %cst_45 {dimension_numbers = #tpu.dot_dimension_numbers<[2], [1], [1], [2], [0, 0, 0, 1, 1, 2], [0], [0]>} : vector<4x8x8xf32>, vector<4x8x8xf32>, vector<4x8x8xf32> -> vector<4x8x8xf32>
      "tpu.trace_stop"() : () -> ()
      "tpu.trace_start"() <{level = 10 : i32, message = "hqd,hdf->hqf"}> : () -> ()
      %cst_46 = arith.constant dense<0.000000e+00> : vector<4x8x32xf32>
      %124 = tpu.matmul %123, %108, %cst_46 {dimension_numbers = #tpu.dot_dimension_numbers<[2], [1], [1], [2], [0, 0, 0, 1, 1, 2], [0], [0]>} : vector<4x8x8xf32>, vector<4x8x32xf32>, vector<4x8x32xf32> -> vector<4x8x32xf32>
      "tpu.trace_stop"() : () -> ()
      %cst_47 = arith.constant dense<0.000000e+00> : vector<8x32xf32>
      %125 = vector.multi_reduction <add>, %124, %cst_47 [0] : vector<4x8x32xf32> to vector<8x32xf32>
      %126 = vector.broadcast %17 : vector<1x32xf32> to vector<8x32xf32>
      %127 = arith.addf %125, %126 : vector<8x32xf32>
      %128 = arith.addf %87, %127 : vector<8x32xf32>
      %cst_48 = arith.constant dense<0.000000e+00> : vector<8xf32>
      %129 = vector.multi_reduction <add>, %128, %cst_48 [1] : vector<8x32xf32> to vector<8xf32>
      %130 = vector.shape_cast %129 : vector<8xf32> to vector<8x1xf32>
      %cst_49 = arith.constant 3.200000e+01 : f32
      %131 = vector.broadcast %cst_49 : f32 to vector<8x1xf32>
      %132 = arith.divf %130, %131 : vector<8x1xf32>
      %133 = vector.broadcast %132 : vector<8x1xf32> to vector<8x32xf32>
      %134 = arith.subf %128, %133 : vector<8x32xf32>
      %135 = arith.mulf %134, %134 : vector<8x32xf32>
      %cst_50 = arith.constant dense<0.000000e+00> : vector<8xf32>
      %136 = vector.multi_reduction <add>, %135, %cst_50 [1] : vector<8x32xf32> to vector<8xf32>
      %137 = vector.shape_cast %136 : vector<8xf32> to vector<8x1xf32>
      %cst_51 = arith.constant 3.200000e+01 : f32
      %138 = vector.broadcast %cst_51 : f32 to vector<8x1xf32>
      %139 = arith.divf %137, %138 : vector<8x1xf32>
      %140 = vector.broadcast %132 : vector<8x1xf32> to vector<8x32xf32>
      %141 = arith.subf %128, %140 : vector<8x32xf32>
      %cst_52 = arith.constant 9.99999997E-7 : f32
      %142 = vector.broadcast %cst_52 : f32 to vector<8x1xf32>
      %143 = arith.addf %139, %142 : vector<8x1xf32>
      %144 = math.rsqrt %143 : vector<8x1xf32>
      %145 = vector.broadcast %144 : vector<8x1xf32> to vector<8x32xf32>
      %146 = arith.mulf %141, %145 : vector<8x32xf32>
      %147 = vector.broadcast %22 : vector<1x32xf32> to vector<8x32xf32>
      %148 = arith.mulf %146, %147 : vector<8x32xf32>
      %149 = vector.broadcast %23 : vector<1x32xf32> to vector<8x32xf32>
      %150 = arith.addf %148, %149 : vector<8x32xf32>
      %c0_53 = arith.constant 0 : index
      %c0_54 = arith.constant 0 : index
      %c0_55 = arith.constant 0 : index
      %151 = vector.load %arg15[%c0_53, %c0_54, %c0_55] : memref<1x96x64xf32, #tpu.memory_space<vmem>>, vector<1x96x64xf32>
      %152 = vector.shape_cast %151 : vector<1x96x64xf32> to vector<96x64xf32>
      %153 = vector.extract_strided_slice %152 {offsets = [0, 0], sizes = [32, 64], strides = [1, 1]} : vector<96x64xf32> to vector<32x64xf32>
      %cst_56 = arith.constant dense<0.000000e+00> : vector<8x64xf32>
      %154 = tpu.matmul %150, %153, %cst_56 {dimension_numbers = #tpu.dot_dimension_numbers<[1], [0], [0], [1], [0, 0, 1, 1], [], []>} : vector<8x32xf32>, vector<32x64xf32>, vector<8x64xf32> -> vector<8x64xf32>
      %155 = vector.broadcast %18 : vector<1x64xf32> to vector<8x64xf32>
      %156 = arith.addf %154, %155 : vector<8x64xf32>
      %cst_57 = arith.constant 0.000000e+00 : f32
      %157 = vector.broadcast %cst_57 : f32 to vector<8x64xf32>
      %158 = arith.maximumf %156, %157 : vector<8x64xf32>
      %159 = vector.extract_strided_slice %152 {offsets = [32, 0], sizes = [64, 32], strides = [1, 1]} : vector<96x64xf32> to vector<64x32xf32>
      %cst_58 = arith.constant dense<0.000000e+00> : vector<8x32xf32>
      %160 = tpu.matmul %158, %159, %cst_58 {dimension_numbers = #tpu.dot_dimension_numbers<[1], [0], [0], [1], [0, 0, 1, 1], [], []>} : vector<8x64xf32>, vector<64x32xf32>, vector<8x32xf32> -> vector<8x32xf32>
      %161 = vector.broadcast %19 : vector<1x32xf32> to vector<8x32xf32>
      %162 = arith.addf %160, %161 : vector<8x32xf32>
      %163 = arith.addf %150, %162 : vector<8x32xf32>
      %cst_59 = arith.constant dense<0.000000e+00> : vector<8xf32>
      %164 = vector.multi_reduction <add>, %163, %cst_59 [1] : vector<8x32xf32> to vector<8xf32>
      %165 = vector.shape_cast %164 : vector<8xf32> to vector<8x1xf32>
      %cst_60 = arith.constant 3.200000e+01 : f32
      %166 = vector.broadcast %cst_60 : f32 to vector<8x1xf32>
      %167 = arith.divf %165, %166 : vector<8x1xf32>
      %168 = vector.broadcast %167 : vector<8x1xf32> to vector<8x32xf32>
      %169 = arith.subf %163, %168 : vector<8x32xf32>
      %170 = arith.mulf %169, %169 : vector<8x32xf32>
      %cst_61 = arith.constant dense<0.000000e+00> : vector<8xf32>
      %171 = vector.multi_reduction <add>, %170, %cst_61 [1] : vector<8x32xf32> to vector<8xf32>
      %172 = vector.shape_cast %171 : vector<8xf32> to vector<8x1xf32>
      %cst_62 = arith.constant 3.200000e+01 : f32
      %173 = vector.broadcast %cst_62 : f32 to vector<8x1xf32>
      %174 = arith.divf %172, %173 : vector<8x1xf32>
      %175 = vector.broadcast %167 : vector<8x1xf32> to vector<8x32xf32>
      %176 = arith.subf %163, %175 : vector<8x32xf32>
      %cst_63 = arith.constant 9.99999997E-7 : f32
      %177 = vector.broadcast %cst_63 : f32 to vector<8x1xf32>
      %178 = arith.addf %174, %177 : vector<8x1xf32>
      %179 = math.rsqrt %178 : vector<8x1xf32>
      %180 = vector.broadcast %179 : vector<8x1xf32> to vector<8x32xf32>
      %181 = arith.mulf %176, %180 : vector<8x32xf32>
      %182 = vector.broadcast %24 : vector<1x32xf32> to vector<8x32xf32>
      %183 = arith.mulf %181, %182 : vector<8x32xf32>
      %184 = vector.broadcast %25 : vector<1x32xf32> to vector<8x32xf32>
      %185 = arith.addf %183, %184 : vector<8x32xf32>
      %c0_64 = arith.constant 0 : index
      %c0_65 = arith.constant 0 : index
      %186 = vector.load %arg21[%c0_64, %c0_65] : memref<8x32xf32, #tpu.memory_space<vmem>>, vector<8x32xf32>
      tpu.vector_store %arg21[%c0_64, %c0_65], %185 {strides = array<i32>} : memref<8x32xf32, #tpu.memory_space<vmem>>, vector<8x32xf32>,
    } else {
    }
    %c3_i32 = arith.constant 3 : i32
    %9 = arith.cmpi eq, %arg1, %c3_i32 : i32
    %10 = arith.extui %9 : i1 to i32
    %c0_i32_4 = arith.constant 0 : i32
    %11 = arith.cmpi ne, %10, %c0_i32_4 : i32
    scf.if %11 {
      %c0 = arith.constant 0 : index
      %c0_5 = arith.constant 0 : index
      %12 = vector.load %arg21[%c0, %c0_5] : memref<8x32xf32, #tpu.memory_space<vmem>>, vector<8x32xf32>
      %c0_6 = arith.constant 0 : index
      %c0_7 = arith.constant 0 : index
      %13 = vector.load %arg17[%c0_6, %c0_7] : memref<32x128xf32, #tpu.memory_space<vmem>>, vector<32x128xf32>
      %cst = arith.constant dense<0.000000e+00> : vector<8x128xf32>
      %14 = tpu.matmul %12, %13, %cst {dimension_numbers = #tpu.dot_dimension_numbers<[1], [0], [0], [1], [0, 0, 1, 1], [], []>} : vector<8x32xf32>, vector<32x128xf32>, vector<8x128xf32> -> vector<8x128xf32>
      %c0_8 = arith.constant 0 : index
      %c0_9 = arith.constant 0 : index
      %15 = vector.load %arg18[%c0_8, %c0_9] : memref<1x128xf32, #tpu.memory_space<vmem>>, vector<1x128xf32>
      %16 = vector.broadcast %15 : vector<1x128xf32> to vector<8x128xf32>
      %17 = arith.addf %14, %16 : vector<8x128xf32>
      %c0_10 = arith.constant 0 : index
      %c0_11 = arith.constant 0 : index
      %c0_12 = arith.constant 0 : index
      %18 = vector.load %arg19[%c0_10, %c0_11, %c0_12] : memref<1x8x128xf32, #tpu.memory_space<vmem>>, vector<1x8x128xf32>
      %19 = vector.shape_cast %18 : vector<1x8x128xf32> to vector<8x128xf32>
      %20 = vector.shape_cast %17 : vector<8x128xf32> to vector<1x8x128xf32>
      tpu.vector_store %arg19[%c0_10, %c0_11, %c0_12], %20 {strides = array<i32>} : memref<1x8x128xf32, #tpu.memory_space<vmem>>, vector<1x8x128xf32>,
    } else {
    }
    return
  }
  func.func @transform_0(%arg0: i32, %arg1: i32) -> (i32, i32, i32) {
    %c0_i32 = arith.constant 0 : i32
    %c0_i32_0 = arith.constant 0 : i32
    %c0_i32_1 = arith.constant 0 : i32
    return %arg0, %c0_i32, %c0_i32_0 : i32, i32, i32
  }
  func.func @transform_1(%arg0: i32, %arg1: i32) -> (i32, i32, i32) {
    %c0_i32 = arith.constant 0 : i32
    %c0_i32_0 = arith.constant 0 : i32
    %c0_i32_1 = arith.constant 0 : i32
    return %arg0, %c0_i32, %c0_i32_0 : i32, i32, i32
  }
  func.func @transform_2(%arg0: i32, %arg1: i32) -> (i32, i32, i32) {
    %c0_i32 = arith.constant 0 : i32
    %c0_i32_0 = arith.constant 0 : i32
    %c0_i32_1 = arith.constant 0 : i32
    return %arg0, %c0_i32, %c0_i32_0 : i32, i32, i32
  }
  func.func @transform_3(%arg0: i32, %arg1: i32) -> (i32, i32, i32) {
    %c0_i32 = arith.constant 0 : i32
    %c0_i32_0 = arith.constant 0 : i32
    %c0_i32_1 = arith.constant 0 : i32
    return %arg0, %c0_i32, %c0_i32_0 : i32, i32, i32
  }
  func.func @transform_4(%arg0: i32, %arg1: i32) -> (i32, i32, i32) {
    %c0_i32 = arith.constant 0 : i32
    %c0_i32_0 = arith.constant 0 : i32
    %c0_i32_1 = arith.constant 0 : i32
    return %arg0, %c0_i32, %c0_i32_0 : i32, i32, i32
  }
  func.func @transform_5(%arg0: i32, %arg1: i32) -> (i32, i32, i32, i32) {
    %c1_i32 = arith.constant 1 : i32
    %0 = arith.minsi %arg1, %c1_i32 : i32
    %c0_i32 = arith.constant 0 : i32
    %c0_i32_0 = arith.constant 0 : i32
    %c0_i32_1 = arith.constant 0 : i32
    %c0_i32_2 = arith.constant 0 : i32
    return %0, %c0_i32, %c0_i32_0, %c0_i32_1 : i32, i32, i32, i32
  }
  func.func @transform_6(%arg0: i32, %arg1: i32) -> (i32, i32, i32, i32) {
    %c1_i32 = arith.constant 1 : i32
    %0 = arith.minsi %arg1, %c1_i32 : i32
    %c0_i32 = arith.constant 0 : i32
    %c0_i32_0 = arith.constant 0 : i32
    %c0_i32_1 = arith.constant 0 : i32
    %c0_i32_2 = arith.constant 0 : i32
    return %0, %c0_i32, %c0_i32_0, %c0_i32_1 : i32, i32, i32, i32
  }
  func.func @transform_7(%arg0: i32, %arg1: i32) -> (i32, i32, i32, i32) {
    %c1_i32 = arith.constant 1 : i32
    %0 = arith.minsi %arg1, %c1_i32 : i32
    %c0_i32 = arith.constant 0 : i32
    %c0_i32_0 = arith.constant 0 : i32
    %c0_i32_1 = arith.constant 0 : i32
    %c0_i32_2 = arith.constant 0 : i32
    return %0, %c0_i32, %c0_i32_0, %c0_i32_1 : i32, i32, i32, i32
  }
  func.func @transform_8(%arg0: i32, %arg1: i32) -> (i32, i32, i32) {
    %c1_i32 = arith.constant 1 : i32
    %0 = arith.minsi %arg1, %c1_i32 : i32
    %c0_i32 = arith.constant 0 : i32
    %c0_i32_0 = arith.constant 0 : i32
    %c0_i32_1 = arith.constant 0 : i32
    return %0, %c0_i32, %c0_i32_0 : i32, i32, i32
  }
  func.func @transform_9(%arg0: i32, %arg1: i32) -> (i32, i32, i32) {
    %c1_i32 = arith.constant 1 : i32
    %0 = arith.minsi %arg1, %c1_i32 : i32
    %c0_i32 = arith.constant 0 : i32
    %c0_i32_0 = arith.constant 0 : i32
    %c0_i32_1 = arith.constant 0 : i32
    return %0, %c0_i32, %c0_i32_0 : i32, i32, i32
  }
  func.func @transform_10(%arg0: i32, %arg1: i32) -> (i32, i32, i32, i32) {
    %c2_i32 = arith.constant 2 : i32
    %0 = arith.subi %arg1, %c2_i32 : i32
    %c0_i32 = arith.constant 0 : i32
    %1 = arith.maxsi %0, %c0_i32 : i32
    %c0_i32_0 = arith.constant 0 : i32
    %c0_i32_1 = arith.constant 0 : i32
    %c0_i32_2 = arith.constant 0 : i32
    %c0_i32_3 = arith.constant 0 : i32
    return %1, %c0_i32_0, %c0_i32_1, %c0_i32_2 : i32, i32, i32, i32
  }
  func.func @transform_11(%arg0: i32, %arg1: i32) -> (i32, i32, i32, i32) {
    %c2_i32 = arith.constant 2 : i32
    %0 = arith.subi %arg1, %c2_i32 : i32
    %c0_i32 = arith.constant 0 : i32
    %1 = arith.maxsi %0, %c0_i32 : i32
    %c0_i32_0 = arith.constant 0 : i32
    %c0_i32_1 = arith.constant 0 : i32
    %c0_i32_2 = arith.constant 0 : i32
    %c0_i32_3 = arith.constant 0 : i32
    return %1, %c0_i32_0, %c0_i32_1, %c0_i32_2 : i32, i32, i32, i32
  }
  func.func @transform_12(%arg0: i32, %arg1: i32) -> (i32, i32, i32, i32) {
    %c2_i32 = arith.constant 2 : i32
    %0 = arith.subi %arg1, %c2_i32 : i32
    %c0_i32 = arith.constant 0 : i32
    %1 = arith.maxsi %0, %c0_i32 : i32
    %c0_i32_0 = arith.constant 0 : i32
    %c0_i32_1 = arith.constant 0 : i32
    %c0_i32_2 = arith.constant 0 : i32
    %c0_i32_3 = arith.constant 0 : i32
    return %1, %c0_i32_0, %c0_i32_1, %c0_i32_2 : i32, i32, i32, i32
  }
  func.func @transform_13(%arg0: i32, %arg1: i32) -> (i32, i32, i32) {
    %c2_i32 = arith.constant 2 : i32
    %0 = arith.subi %arg1, %c2_i32 : i32
    %c0_i32 = arith.constant 0 : i32
    %1 = arith.maxsi %0, %c0_i32 : i32
    %c0_i32_0 = arith.constant 0 : i32
    %c0_i32_1 = arith.constant 0 : i32
    %c0_i32_2 = arith.constant 0 : i32
    return %1, %c0_i32_0, %c0_i32_1 : i32, i32, i32
  }
  func.func @transform_14(%arg0: i32, %arg1: i32) -> (i32, i32, i32) {
    %c2_i32 = arith.constant 2 : i32
    %0 = arith.subi %arg1, %c2_i32 : i32
    %c0_i32 = arith.constant 0 : i32
    %1 = arith.maxsi %0, %c0_i32 : i32
    %c0_i32_0 = arith.constant 0 : i32
    %c0_i32_1 = arith.constant 0 : i32
    %c0_i32_2 = arith.constant 0 : i32
    return %1, %c0_i32_0, %c0_i32_1 : i32, i32, i32
  }
  func.func @transform_15(%arg0: i32, %arg1: i32) -> (i32, i32) {
    %c0_i32 = arith.constant 0 : i32
    %c0_i32_0 = arith.constant 0 : i32
    %c0_i32_1 = arith.constant 0 : i32
    return %c0_i32, %c0_i32_0 : i32, i32
  }
  func.func @transform_16(%arg0: i32, %arg1: i32) -> (i32, i32) {
    %c0_i32 = arith.constant 0 : i32
    %c0_i32_0 = arith.constant 0 : i32
    %c0_i32_1 = arith.constant 0 : i32
    return %c0_i32, %c0_i32_0 : i32, i32
  }
  func.func @transform_17(%arg0: i32, %arg1: i32) -> (i32, i32, i32) {
    %c0_i32 = arith.constant 0 : i32
    %c0_i32_0 = arith.constant 0 : i32
    %c0_i32_1 = arith.constant 0 : i32
    return %arg0, %c0_i32, %c0_i32_0 : i32, i32, i32
  }
}

</mosaic_0001>

<bundles_post_ra>
// kernel: _lambda_.1
= control target key start
LH: loop header
LB: loop body
LE: loop exit
PB: predicated region body
PF: predicated region fallthrough
CT: control target
= control target key end

     0   :  { %s9149_s0 = inlined_call_operand.vmem [shape: f32[2,8,32], index: 0, kind: input, shape index: {}]   ;;  %s9150_s1 = inlined_call_operand.vmem [shape: f32[2,8,32], index: 1, kind: input, shape index: {}]   ;;  %s9151_s2 = inlined_call_operand.vmem [shape: f32[2,8,8], index: 2, kind: input, shape index: {}, may-alias: {2,4}]   ;;  %s9152_s3 = inlined_call_operand.vmem [shape: f32[2,8,8], index: 3, kind: input, shape index: {}]   ;;  %s9153_s4 = inlined_call_operand.vmem [shape: f32[2,8,8], index: 4, kind: input, shape index: {}, may-alias: {2,4}]   ;;  %s9154_s5 = inlined_call_operand.hbm [shape: f32[2,4,32,24], index: 5, kind: input, shape index: {}]   ;;  %s9155_s6 = inlined_call_operand.hbm [shape: f32[2,4,1,24], index: 6, kind: input, shape index: {}]   ;;  %s9156_s7 = inlined_call_operand.vmem [shape: f32[2,4,8,32], index: 7, kind: input, shape index: {}]   ;;  %s9157_s8 = inlined_call_operand.hbm [shape: f32[2,96,64], index: 8, kind: input, shape index: {}]   ;;  %s9158_s9 = inlined_call_operand.hbm [shape: f32[2,7,64], index: 9, kind: input, shape index: {}]   ;;  %s9159_s10 = inlined_call_operand.vmem [shape: f32[2,4,32,48], index: 10, kind: input, shape index: {}]   ;;  %s9160_s11 = inlined_call_operand.vmem [shape: f32[2,4,1,48], index: 11, kind: input, shape index: {}]   ;;  %s9161_s12 = inlined_call_operand.vmem [shape: f32[2,4,8,64], index: 12, kind: input, shape index: {}]   ;;  %s9162_s13 = inlined_call_operand.hbm [shape: f32[2,96,64], index: 13, kind: input, shape index: {}]   ;;  %s9163_s14 = inlined_call_operand.hbm [shape: f32[2,10,64], index: 14, kind: input, shape index: {}]   ;;  %s9164_s15 = inlined_call_operand.vmem [shape: f32[32,128], index: 15, kind: input, shape index: {}]   ;;  %s9165_s16 = inlined_call_operand.vmem [shape: f32[1,128], index: 16, kind: input, shape index: {}]   ;;  %s9166_s17 = inlined_call_operand.hbm [shape: f32[2,8,128], index: 17, kind: output, shape index: {}]  }
   0x1   :  { %9198 = sst [smem:[#allocation42_spill]] %s9149_s0 }
   0x2   :  { %9199 = sst [smem:[#allocation43_spill]] %s9150_s1 }
   0x3   :  { %9200 = sst [smem:[#allocation44_spill]] %s9151_s2 }
   0x4   :  { %9201 = sst [smem:[#allocation45_spill]] %s9152_s3 }
   0x5   :  { %9202 = sst [smem:[#allocation46_spill]] %s9153_s4 }
   0x6   :  { %9203 = sst [smem:[#allocation47_spill]] %s9154_s5 }
   0x7   :  { %9204 = sst [smem:[#allocation48_spill]] %s9155_s6 }
   0x8   :  { %9205 = sst [smem:[#allocation49_spill]] %s9156_s7 }
   0x9   :  { %9206 = sst [smem:[#allocation50_spill]] %s9157_s8 }
   0xa   :  { %9207 = sst [smem:[#allocation51_spill]] %s9158_s9 }
   0xb   :  { %9208 = sst [smem:[#allocation52_spill]] %s9159_s10 }
   0xc   :  { %9209 = sst [smem:[#allocation53_spill]] %s9160_s11 }
   0xd   :  { %9210 = sst [smem:[#allocation54_spill]] %s9161_s12 }
   0xe   :  { %9211 = sst [smem:[#allocation55_spill]] %s9162_s13 }
   0xf   :  { %9212 = sst [smem:[#allocation56_spill]] %s9163_s14 }
  0x10   :  { %9213 = sst [smem:[#allocation57_spill]] %s9164_s15 }
  0x11   :  { %9214 = sst [smem:[#allocation58_spill]] %s9165_s16 }
  0x12   :  { %9215 = sst [smem:[#allocation59_spill]] %s9166_s17 }
  0x13   :  { %22 = vsyncpa [#allocation5], 0 }
  0x14   :  { %24 = vsyncpa [#allocation5 + $0x1], 0 }
  0x15   :  { %25 = vsyncpa [#allocation8], 0 }
  0x16   :  { %27 = vsyncpa [#allocation8 + $0x1], 0 }
  0x17   :  { %28 = vsyncpa [#allocation11], 0 }
  0x18   :  { %30 = vsyncpa [#allocation11 + $0x1], 0 }
  0x19   :  { %31 = vsyncpa [#allocation14], 0 }
  0x1a   :  { %33 = vsyncpa [#allocation14 + $0x1], 0 }
  0x1b   :  { %34 = vsyncpa [#allocation6], 0 }
  0x1c   :  { %36 = vsyncpa [#allocation6 + $0x1], 0  ;;  %s7904_s24 = smov 0   ;;  %s7906_s25 = smov 0  }
  0x1d   :  { %s7908_s26 = smov 0   ;;  %s7910_s27 = smov 0  }
  0x1e   :  { %s7912_s28 = smov 0   ;;  %s7914_s29 = smov 0  }
  0x1f   :  { %s7916_s0 = smov 0   ;;  %s7918_s30 = smov 0  }
  0x20   :  { %s7920_s18 = smov 0   ;;  %s7922_s19 = smov 0  }
  0x21   :  { %s7924_s1 = smov 0   ;;  %s7926_s20 = smov 0  }
  0x22   :  { %s7928_s21 = smov 0   ;;  %s7930_s22 = smov 0  }
  0x23 LB: > { %9216 = sst [smem:[#allocation22_spill]] %s7734_s24  ;;  %s7975_s23 = sadd.s32 4294967295, %s7786_s22   ;;  %s7786_s22 = sphi %s7930_s22, %s42_s22   ;;  %s7782_s21 = sphi %s7928_s21, %s9310_s21   ;;  %s7778_s20 = sphi %s7926_s20, %s9309_s20   ;;  %s7774_s1 = sphi %s7924_s1, %s9308_s1   ;;  %s7770_s19 = sphi %s7922_s19, %s9307_s19   ;;  %s7766_s18 = sphi %s7920_s18, %s9306_s18   ;;  %s7762_s30 = sphi %s7918_s30, %s9305_s30   ;;  %s7758_s0 = sphi %s7916_s0, %s9304_s0   ;;  %s7754_s29 = sphi %s7914_s29, %s9303_s29   ;;  %s7750_s28 = sphi %s7912_s28, %s9302_s28   ;;  %s7746_s27 = sphi %s7910_s27, %s9301_s27   ;;  %s7742_s26 = sphi %s7908_s26, %s9300_s26   ;;  %s7738_s25 = sphi %s7906_s25, %s9299_s25   ;;  %s7734_s24 = sphi %s7904_s24, %s9298_s24  }
  0x24   : > { %9217 = sst [smem:[#allocation23_spill]] %s7738_s25  ;;  %s51_s16 = sadd.s32 1, %s7778_s20 }
  0x25   : > { %9218 = sst [smem:[#allocation24_spill]] %s7742_s26  ;;  %s54_s15 = sadd.s32 1, %s7782_s21 }
  0x26   : > { %9219 = sst [smem:[#allocation25_spill]] %s7750_s28  ;;  %p52_p0 = scmp.ge.s32.totalorder %s51_s16, 4 }
  0x27   : > { %9220 = sst [smem:[#allocation26_spill]] %s7754_s29  ;;  %p188_p1 = scmp.lt.s32.totalorder %s7778_s20, 1 }
  0x28   : > { %9221 = sst [smem:[#allocation27_spill]] %s7762_s30  ;;  %s195_s12 = sadd.s32 1, %s7766_s18 }
  0x29   : > { %9222 = sst [smem:[#allocation28_spill]] %s7766_s18  ;;  %p202_p2 = scmp.ne.s32.totalorder %s7766_s18, %s7762_s30 }
  0x2a   : > { %9223 = sst [smem:[#allocation29_spill]] %s7770_s19  ;;  %s9312_s16 = smov (%p52_p0, %s51_s16), 0 }
  0x2b   : > { %9224 = sst [smem:[#allocation30_spill]] %s7774_s1  ;;  %s9314_s15 = smov (!%p52_p0, %s54_s15), %s7782_s21 }
  0x2c   : > { %9225 = sst [smem:[#allocation31_spill]] %s7778_s20  ;;  %p56_p3 = scmp.ge.s32.totalorder %s9314_s15, 2 }
  0x2d   : > { %9226 = sst [smem:[#allocation32_spill]] %s7782_s21  ;;  %p190_p4 = scmp.lt.s32.totalorder %s9312_s16, 1 }
  0x2e   : > { %9227 = sst [smem:[#allocation33_spill]] %s7786_s22  ;;  %p9180_p5 = scmp.eq.s32.totalorder %s7786_s22, 0 }
  0x2f   : > { %9228 = sst [smem:[#allocation34_spill]] %s9312_s16  ;;  %p208_p6 = scmp.ne.s32.totalorder %s7762_s30, %s7758_s0 }
  0x30   : > { %s7988_s11 = scalar_select %p188_p1, %s7778_s20, 1 }
  0x31   : > { %s9316_s15 = smov (%p56_p3, %s9314_s15), 0  ;;  %p7999_p7 = por %p9180_p5, %p202_p2 }
  0x32   : > { %9229 = sst [smem:[#allocation35_spill]] %s9316_s15  ;;  %p9179_p8 = scmp.eq.s32.totalorder %s7975_s23, 0 }
  0x33   : > { %s191_s17 = scalar_select %p190_p4, %s9312_s16, 1 }
  0x34   : > { %s540_s4 = ssub.s32 %s7782_s21, %s9316_s15  ;;  %p8009_p10 = por %p9179_p8, %p208_p6 }
  0x35   : > { %s192_s7 = ssub.s32 %s7988_s11, %s191_s17  ;;  %p541_p11 = scmp.eq.s32.totalorder %s540_s4, 0 }
  0x36   : > { %p193_p9 = scmp.eq.s32.totalorder %s192_s7, 0  ;;  %s543_s3 = sadd.s32 1, %s7742_s26 }
  0x37   : > { %s9231_s0 = scalar_select %p8009_p10, 1, 0 }
  0x38   : > { %s8015_s2 = scalar_select %p193_p9, %s7766_s18, %s195_s12  }
  0x39   : > { %9232 = sst [smem:[#allocation36_spill]] %s9231_s0  ;;  %p553_p12 = scmp.ne.s32.totalorder %s7742_s26, %s7738_s25 }
  0x3a   : > { %9233 = sst [smem:[#allocation37_spill]] %s8015_s2  ;;  %p554_p13 = scmp.eq.s32.totalorder %s7975_s23, 7 }
  0x3b   : > { %s8018_s19 = scalar_select %p541_p11, %s7742_s26, %s543_s3  }
  0x3c   : > { %p559_p0 = scmp.ne.s32.totalorder %s7738_s25, %s7734_s24  ;;  %s9235_s17 = sadd.s32 4294967294, %s7786_s22  }
  0x3d   : > { %9234 = sst [smem:[#allocation38_spill]] %s8018_s19  ;;  %p560_p1 = scmp.eq.s32.totalorder %s9235_s17, 7 }
  0x3e   : > { %p8027_p2 = por %p554_p13, %p553_p12  ;;  %p9178_p4 = scmp.lt.s32.totalorder %s7786_s22, 8 }
  0x3f   : > { %p8031_p3 = por %p560_p1, %p559_p0  ;;  %s8037_s4 = sand.u32 1, %s7766_s18  }
  0x40   : > { %s9236_s7 = scalar_select %p8027_p2, 1, 0 }
  0x41   : > { %s9238_s15 = scalar_select %p8031_p3, 1, 0 }
  0x42   : > { %9237 = sst [smem:[#allocation39_spill]] %s9236_s7  ;;  %p8044_p6 = pnand %p9178_p4, %p7999_p7 }
  0x43   : > { %9239 = sst [smem:[#allocation40_spill]] %s9238_s15  ;;  %s6231_s17 = sshll.u32 %s8037_s4, 2 }
  0x44   : > { %s9240_s12 = scalar_select %p8044_p6, 1, 0 }
  0x45   : > { %s6369_s21 = sshll.u32 %s7988_s11, 6  ;;  %s9241_s6 = sld [smem:[#allocation48_spill]] }
  0x46   : > { %s648_s18 = scalar_lea.vmem [#allocation7], %s6231_s17  ;;  %s9242_s10 = sand.u32 1, %s7786_s22  }
  0x47   : > { %s657_s3 = sshll.u32 %s648_s18, 4  ;;  %s8060_s15 = scalar_lea.sflag [#allocation8], %s9242_s10  ;;  %s8055_s3 = int_to_ptr.vmem [resolvable:$true] %s657_s3 }
  0x48   : > { %p8066_p11 = pneg %p8044_p6 }
  0x4b   : > { %s8053_s26 = scalar_lea.hbm %s9241_s6, %s6369_s21  ;;  %s7449_s18 = scalar_lea.hbm %s9241_s6, 128 }
  0x4c   : > { %s7444_s24 = scalar_lea.hbm %s8053_s26, 64  ;;  %p7450_p0 = scmp.lt.u32.totalorder %s8053_s26, %s9241_s6 }
  0x4d   : > { %p7445_p9 = scmp.ne.s32.totalorder %s8053_s26, %s7444_s24  ;;  %p7451_p1 = scmp.lt.u32.totalorder %s7449_s18, %s7444_s24 }
  0x4e   : > { %p7453_p8 = scmp.lt.u32.totalorder %s7444_s24, %s8053_s26 }
  0x4f   : > { %p7447_p12 = pnand %p8066_p11, %p7445_p9  ;;  %p7452_p4 = por %p7451_p1, %p7450_p0 }
  0x51   : > { %p7448_p13 = pneg %p7447_p12  ;;  %p7454_p5 = por %p7453_p8, %p7452_p4 }
  0x53   : > { %p7455_p7 = pnand %p7454_p5, %p7448_p13 }
  0x55   : > { %7458 = shalt.err (!%p7455_p7)
}
  0x56   : > { %s7459_s10 = scalar_lea.vmem %s8055_s3, 64  ;;  %s7788_s2 = smov [#allocation7]  }
  0x57   : > { %p7460_p9 = scmp.ne.s32.totalorder %s8055_s3, %s7459_s10  ;;  %s7464_s19 = sshll.u32 %s7788_s2, 4  ;;  %s7465_s19 = int_to_ptr.vmem [resolvable:$false] %s7464_s19 }
  0x58   : > { %s7466_s21 = scalar_lea.vmem %s7465_s19, 128  ;;  %p7467_p2 = scmp.lt.s32.totalorder %s8055_s3, %s7465_s19 }
  0x59   : > { %p7462_p12 = pnand %p7460_p9, %p8066_p11  ;;  %p7468_p10 = scmp.lt.s32.totalorder %s7466_s21, %s7459_s10 }
  0x5b   : > { %p7463_p3 = pneg %p7462_p12  ;;  %p7469_p0 = por %p7468_p10, %p7467_p2 }
  0x5d   : > { %p7470_p1 = pnand %p7469_p0, %p7463_p3 }
  0x5f   : > { %7473 = shalt.err (!%p7470_p1)
}
  0x60   : > { %s7789_s24 = smov 16   ;;  %s7790_s18 = smov 1  }
  0x61   : > { %7156 = dma.hbm_to_vmem [thread:$0]  (!%p8044_p6), %s8053_s26, 64, %s8055_s3, %s8060_s15, %s7789_s24, %s7789_s24, %s7790_s18  }
  0x62   : > { %p809_p5 = scmp.lt.s32.totalorder %s7786_s22, 9  ;;  %s6235_s17 = sshll.u32 %s8037_s4, 3 }
  0x63   : > { %s6236_s10 = sshll.u32 %s7988_s11, 7  ;;  %p9244_p8 = scmp.ge.s32.totalorder %s7786_s22, 1 }
  0x64   : > { %s9246_s9 = sld [smem:[#allocation51_spill]]  ;;  %s706_s1 = scalar_lea.vmem [#allocation10], %s6235_s17 }
  0x65   : > { %p8095_p10 = pnand %p9244_p8, %p809_p5  ;;  %s715_s25 = sshll.u32 %s706_s1, 4  ;;  %s716_s25 = int_to_ptr.vmem [resolvable:$true] %s715_s25 }
  0x66   : > { %s9247_s26 = sand.u32 1, %s7786_s22  }
  0x67   : > { %s9245_s2 = scalar_select %p8095_p10, 1, 0 }
  0x68   : > { %s8106_s3 = scalar_lea.sflag [#allocation11], %s9247_s26 }
  0x6a   : > { %s8102_s6 = scalar_lea.hbm %s9246_s9, %s6236_s10  ;;  %s7479_s10 = scalar_lea.hbm %s9246_s9, 256 }
  0x6b   : > { %s7474_s24 = scalar_lea.hbm %s8102_s6, 128  ;;  %p7480_p7 = scmp.lt.u32.totalorder %s8102_s6, %s9246_s9 }
  0x6c   : > { %p7475_p2 = scmp.ne.s32.totalorder %s8102_s6, %s7474_s24  ;;  %p7481_p13 = scmp.lt.u32.totalorder %s7479_s10, %s7474_s24 }
  0x6d   : > { %p7483_p12 = scmp.lt.u32.totalorder %s7474_s24, %s8102_s6 }
  0x6e   : > { %p7477_p3 = pnand %p7475_p2, %p8066_p11  ;;  %p7482_p9 = por %p7481_p13, %p7480_p7 }
  0x70   : > { %p7478_p4 = pneg %p7477_p3  ;;  %p7484_p0 = por %p7483_p12, %p7482_p9 }
  0x72   : > { %p7485_p1 = pnand %p7484_p0, %p7478_p4 }
  0x74   : > { %7488 = shalt.err (!%p7485_p1)
}
  0x75   : > { %s7489_s1 = scalar_lea.vmem %s716_s25, 128  ;;  %s7791_s17 = smov [#allocation10]  }
  0x76   : > { %p7490_p5 = scmp.ne.s32.totalorder %s716_s25, %s7489_s1  ;;  %s7494_s26 = sshll.u32 %s7791_s17, 4  ;;  %s7495_s26 = int_to_ptr.vmem [resolvable:$false] %s7494_s26 }
  0x77   : > { %s7496_s0 = scalar_lea.vmem %s7495_s26, 256  ;;  %p7497_p3 = scmp.lt.s32.totalorder %s716_s25, %s7495_s26 }
  0x78   : > { %p7492_p8 = pnand %p7490_p5, %p8066_p11  ;;  %p7498_p10 = scmp.lt.s32.totalorder %s7496_s0, %s7489_s1 }
  0x7a   : > { %p7493_p2 = pneg %p7492_p8  ;;  %p7499_p6 = por %p7498_p10, %p7497_p3 }
  0x7c   : > { %p7500_p7 = pnand %p7499_p6, %p7493_p2 }
  0x7e   : > { %7503 = shalt.err (!%p7500_p7)
}
  0x7f   : > { %p9248_p13 = scmp.ne.s32.totalorder %s9240_s12, 0  ;;  %s6228_s24 = sshll.u32 %s8037_s4, 7 }
  0x80   : > { %s6368_s18 = sshll.u32 %s7988_s11, 11  ;;  %s9249_s5 = sld [smem:[#allocation47_spill]] }
  0x81   : > { %7162 = dma.hbm_to_vmem [thread:$0]  (!%p9248_p13), %s8102_s6, 128, %s716_s25, %s8106_s3  }
  0x82   : > { %s625_s1 = scalar_lea.vmem [#allocation4], %s6228_s24  ;;  %s622_s26 = scalar_lea.sflag [#allocation5], %s8037_s4 }
  0x83   : > { %s634_s17 = sshll.u32 %s625_s1, 4  ;;  %s8133_s17 = int_to_ptr.vmem [resolvable:$true] %s634_s17 }
  0x86   : > { %s8131_s21 = scalar_lea.hbm %s9249_s5, %s6368_s18  ;;  %s7509_s10 = scalar_lea.hbm %s9249_s5, 4096 }
  0x87   : > { %s7504_s0 = scalar_lea.hbm %s8131_s21, 2048  ;;  %p7510_p9 = scmp.lt.u32.totalorder %s8131_s21, %s9249_s5 }
  0x88   : > { %p7505_p6 = scmp.ne.s32.totalorder %s8131_s21, %s7504_s0  ;;  %p7511_p12 = scmp.lt.u32.totalorder %s7509_s10, %s7504_s0 }
  0x89   : > { %p7513_p1 = scmp.lt.u32.totalorder %s7504_s0, %s8131_s21 }
  0x8a   : > { %p7507_p10 = pnand %p7505_p6, %p8066_p11  ;;  %p7512_p0 = por %p7511_p12, %p7510_p9 }
  0x8c   : > { %p7508_p4 = pneg %p7507_p10  ;;  %p7514_p5 = por %p7513_p1, %p7512_p0 }
  0x8e   : > { %p7515_p8 = pnand %p7514_p5, %p7508_p4 }
  0x90   : > { %7518 = shalt.err (!%p7515_p8)
}
  0x91   : > { %s7519_s24 = scalar_lea.vmem %s8133_s17, 2048  ;;  %s7792_s1 = smov [#allocation4]  }
  0x92   : > { %p7520_p2 = scmp.ne.s32.totalorder %s8133_s17, %s7519_s24  ;;  %s7524_s6 = sshll.u32 %s7792_s1, 4  ;;  %s7525_s6 = int_to_ptr.vmem [resolvable:$false] %s7524_s6 }
  0x93   : > { %s7526_s25 = scalar_lea.vmem %s7525_s6, 4096  ;;  %p7527_p6 = scmp.lt.s32.totalorder %s8133_s17, %s7525_s6 }
  0x94   : > { %p7522_p3 = pnand %p7520_p2, %p8066_p11  ;;  %p7528_p10 = scmp.lt.s32.totalorder %s7526_s25, %s7519_s24 }
  0x96   : > { %p7523_p7 = pneg %p7522_p3  ;;  %p7529_p9 = por %p7528_p10, %p7527_p6 }
  0x98   : > { %p7530_p12 = pnand %p7529_p9, %p7523_p7 }
  0x9a   : > { %7533 = shalt.err (!%p7530_p12)
}
  0x9b   : > { %s7793_s0 = smov 128   ;;  %s7794_s10 = smov 8  }
  0x9c   : > { %7153 = dma.hbm_to_vmem [thread:$0]  (!%p9248_p13), %s8131_s21, 2048, %s8133_s17, %s622_s26, %s7793_s0, %s7793_s0, %s7794_s10  }
  0x9d   : > { %s7130_s18 = smul.u32 96, %s8037_s4  ;;  %s9250_s8 = sld [smem:[#allocation50_spill]] }
  0x9e   : > { %s7131_s19 = smul.u32 1536, %s7988_s11 }
  0x9f   : > { %s683_s25 = scalar_lea.vmem [#allocation9], %s7130_s18 }
  0xa0   : > { %s692_s5 = sshll.u32 %s683_s25, 4  ;;  %s8169_s5 = int_to_ptr.vmem [resolvable:$true] %s692_s5 }
  0xa3   : > { %s8167_s6 = scalar_lea.hbm %s9250_s8, %s7131_s19  ;;  %s7539_s21 = scalar_lea.hbm %s9250_s8, 3072 }
  0xa4   : > { %s7534_s9 = scalar_lea.hbm %s8167_s6, 1536  ;;  %p7540_p5 = scmp.lt.u32.totalorder %s8167_s6, %s9250_s8 }
  0xa5   : > { %p7535_p4 = scmp.ne.s32.totalorder %s8167_s6, %s7534_s9  ;;  %p7541_p8 = scmp.lt.u32.totalorder %s7539_s21, %s7534_s9 }
  0xa6   : > { %p7543_p3 = scmp.lt.u32.totalorder %s7534_s9, %s8167_s6 }
  0xa7   : > { %p7537_p0 = pnand %p7535_p4, %p8066_p11  ;;  %p7542_p2 = por %p7541_p8, %p7540_p5 }
  0xa9   : > { %p7538_p1 = pneg %p7537_p0  ;;  %p7544_p7 = por %p7543_p3, %p7542_p2 }
  0xab   : > { %p7545_p6 = pnand %p7544_p7, %p7538_p1 }
  0xad   : > { %7548 = shalt.err (!%p7545_p6)
}
  0xae   : > { %s7549_s18 = scalar_lea.vmem %s8169_s5, 1536  ;;  %s7795_s19 = smov [#allocation9]  }
  0xaf   : > { %p7550_p10 = scmp.ne.s32.totalorder %s8169_s5, %s7549_s18  ;;  %s7554_s24 = sshll.u32 %s7795_s19, 4  ;;  %s7555_s24 = int_to_ptr.vmem [resolvable:$false] %s7554_s24 }
  0xb0   : > { %s7556_s1 = scalar_lea.vmem %s7555_s24, 3072  ;;  %p7557_p4 = scmp.lt.s32.totalorder %s8169_s5, %s7555_s24 }
  0xb1   : > { %p7552_p9 = pnand %p7550_p10, %p8066_p11  ;;  %p7558_p0 = scmp.lt.s32.totalorder %s7556_s1, %s7549_s18 }
  0xb3   : > { %p7553_p12 = pneg %p7552_p9  ;;  %p7559_p5 = por %p7558_p0, %p7557_p4 }
  0xb5   : > { %p7560_p8 = pnand %p7559_p5, %p7553_p12 }
  0xb7   : > { %7563 = shalt.err (!%p7560_p8)
}
  0xb8   : > { %7159 = dma.hbm_to_vmem [thread:$0]  (!%p9248_p13), %s8167_s6, 1536, %s8169_s5, %s8060_s15, %s7793_s0, %s7793_s0, %s7794_s10  }
  0xb9   : > { %s6222_s9 = sadd.s32 4294967294, %s7778_s20  ;;  %s6223_s7 = sadd.s32 4294967294, %s9312_s16 }
  0xba   : > { %p435_p11 = scmp.gt.s32.totalorder %s6222_s9, 0  ;;  %p438_p1 = scmp.gt.s32.totalorder %s6223_s7, 0 }
  0xbb   : > { %s443_s12 = sadd.s32 1, %s7754_s29  ;;  %p450_p2 = scmp.ne.s32.totalorder %s7754_s29, %s7750_s28 }
  0xbc   : > { %s9318_s9 = smov (!%p435_p11, %s6222_s9), 0  ;;  %s9320_s7 = smov (!%p438_p1, %s6223_s7), 0 }
  0xbd   : > { %p9251_p3 = scmp.eq.s32.totalorder %s7786_s22, 0  ;;  %p456_p6 = scmp.ne.s32.totalorder %s7750_s28, %s7746_s27 }
  0xbe   : > { %s440_s25 = ssub.s32 %s9318_s9, %s9320_s7  ;;  %s8209_s4 = sand.u32 1, %s7754_s29  }
  0xbf   : > { %p452_p7 = por %p450_p2, %p9251_p3  ;;  %p441_p13 = scmp.eq.s32.totalorder %s440_s25, 0 }
  0xc0   : > { %p9252_p10 = scmp.eq.s32.totalorder %s7975_s23, 0  ;;  %s7132_s15 = smul.u32 96, %s8209_s4 }
  0xc1   : > { %p9254_p12 = scmp.lt.s32.totalorder %s7786_s22, 8  ;;  %s7133_s27 = smul.u32 1536, %s9318_s9 }
  0xc2   : > { %p8213_p9 = por %p456_p6, %p9252_p10  ;;  %s767_s21 = scalar_lea.vmem [#allocation12], %s7132_s15 }
  0xc3   : > { %p8220_p4 = pnand %p9254_p12, %p452_p7  ;;  %s777_s17 = sshll.u32 %s767_s21, 4  ;;  %s8233_s17 = int_to_ptr.vmem [resolvable:$true] %s777_s17 }
  0xc4   : > { %s8225_s11 = scalar_select %p441_p13, %s7754_s29, %s443_s12  }
  0xc5   : > { %s9257_s13 = sld [smem:[#allocation55_spill]]  ;;  %p7566_p5 = pneg %p8220_p4 }
  0xc6   : > { %9256 = sst [smem:[#allocation41_spill]] %s8225_s11 }
  0xcb   : > { %s8231_s19 = scalar_lea.hbm %s9257_s13, %s7133_s27  ;;  %s7569_s12 = scalar_lea.hbm %s9257_s13, 3072 }
  0xcc   : > { %s7564_s24 = scalar_lea.hbm %s8231_s19, 1536  ;;  %p7570_p1 = scmp.lt.u32.totalorder %s8231_s19, %s9257_s13 }
  0xcd   : > { %p7565_p0 = scmp.ne.s32.totalorder %s8231_s19, %s7564_s24  ;;  %p7571_p2 = scmp.lt.u32.totalorder %s7569_s12, %s7564_s24 }
  0xce   : > { %p7573_p7 = scmp.lt.u32.totalorder %s7564_s24, %s8231_s19 }
  0xcf   : > { %p7567_p8 = pnand %p7566_p5, %p7565_p0  ;;  %p7572_p3 = por %p7571_p2, %p7570_p1 }
  0xd1   : > { %p7568_p11 = pneg %p7567_p8  ;;  %p7574_p6 = por %p7573_p7, %p7572_p3 }
  0xd3   : > { %p7575_p13 = pnand %p7574_p6, %p7568_p11 }
  0xd5   : > { %7578 = shalt.err (!%p7575_p13)
}
  0xd6   : > { %s7579_s27 = scalar_lea.vmem %s8233_s17, 1536  ;;  %s7796_s21 = smov [#allocation12]  }
  0xd7   : > { %p7580_p10 = scmp.ne.s32.totalorder %s8233_s17, %s7579_s27  ;;  %s7584_s26 = sshll.u32 %s7796_s21, 4  ;;  %s7585_s26 = int_to_ptr.vmem [resolvable:$false] %s7584_s26 }
  0xd8   : > { %s7586_s18 = scalar_lea.vmem %s7585_s26, 3072  ;;  %p7587_p8 = scmp.lt.s32.totalorder %s8233_s17, %s7585_s26 }
  0xd9   : > { %p7582_p12 = pnand %p7580_p10, %p7566_p5  ;;  %p7588_p1 = scmp.lt.s32.totalorder %s7586_s18, %s7579_s27 }
  0xdb   : > { %p7583_p0 = pneg %p7582_p12  ;;  %p7589_p2 = por %p7588_p1, %p7587_p8 }
  0xdd   : > { %p7590_p3 = pnand %p7589_p2, %p7583_p0 }
  0xdf   : > { %7593 = shalt.err (!%p7590_p3)
}
  0xe0   : > { %7165 = dma.hbm_to_vmem [thread:$0]  (!%p8220_p4), %s8231_s19, 1536, %s8233_s17, %s8106_s3, %s7793_s0, %s7793_s0, %s7794_s10  }
  0xe1   : > { %s6239_s24 = sshll.u32 %s8209_s4, 4  ;;  %s6370_s1 = sshll.u32 %s9318_s9, 8 }
  0xe2   : > { %s9258_s14 = sld [smem:[#allocation56_spill]]  ;;  %s791_s15 = scalar_lea.vmem [#allocation13], %s6239_s24 }
  0xe3   : > { %s801_s27 = sshll.u32 %s791_s15, 4  ;;  %s788_s21 = scalar_lea.sflag [#allocation14], %s8209_s4  ;;  %s8271_s27 = int_to_ptr.vmem [resolvable:$true] %s801_s27 }
  0xe8   : > { %s8269_s25 = scalar_lea.hbm %s9258_s14, %s6370_s1  ;;  %s7599_s17 = scalar_lea.hbm %s9258_s14, 512 }
  0xe9   : > { %s7594_s26 = scalar_lea.hbm %s8269_s25, 256  ;;  %p7600_p13 = scmp.lt.u32.totalorder %s8269_s25, %s9258_s14 }
  0xea   : > { %p7595_p11 = scmp.ne.s32.totalorder %s8269_s25, %s7594_s26  ;;  %p7601_p10 = scmp.lt.u32.totalorder %s7599_s17, %s7594_s26 }
  0xeb   : > { %p7603_p0 = scmp.lt.u32.totalorder %s7594_s26, %s8269_s25 }
  0xec   : > { %p7597_p7 = pnand %p7595_p11, %p7566_p5  ;;  %p7602_p12 = por %p7601_p10, %p7600_p13 }
  0xee   : > { %p7598_p6 = pneg %p7597_p7  ;;  %p7604_p8 = por %p7603_p0, %p7602_p12 }
  0xf0   : > { %p7605_p1 = pnand %p7604_p8, %p7598_p6 }
  0xf2   : > { %7608 = shalt.err (!%p7605_p1)
}
  0xf3   : > { %s7609_s24 = scalar_lea.vmem %s8271_s27, 256  ;;  %s7797_s1 = smov [#allocation13]  }
  0xf4   : > { %p7610_p2 = scmp.ne.s32.totalorder %s8271_s27, %s7609_s24  ;;  %s7614_s7 = sshll.u32 %s7797_s1, 4  ;;  %s7615_s7 = int_to_ptr.vmem [resolvable:$false] %s7614_s7 }
  0xf5   : > { %s7616_s12 = scalar_lea.vmem %s7615_s7, 512  ;;  %p7617_p7 = scmp.lt.s32.totalorder %s8271_s27, %s7615_s7 }
  0xf6   : > { %p7612_p3 = pnand %p7610_p2, %p7566_p5  ;;  %p7618_p13 = scmp.lt.s32.totalorder %s7616_s12, %s7609_s24 }
  0xf8   : > { %p7613_p11 = pneg %p7612_p3  ;;  %p7619_p10 = por %p7618_p13, %p7617_p7 }
  0xfa   : > { %p7620_p12 = pnand %p7619_p10, %p7613_p11 }
  0xfc   : > { %7623 = shalt.err (!%p7620_p12)
}
  0xfd   : > { %7168 = dma.hbm_to_vmem [thread:$0]  (!%p8220_p4), %s8269_s25, 256, %s8271_s27, %s788_s21, %s7793_s0, %s7793_s0, %s7794_s10  }
  0xfe   : > { %p9259_p5 = scmp.ne.s32.totalorder %s9245_s2, 0 }
  0xff   : > { %s9260_s15 = sld [smem:[#allocation36_spill]] (!%p9259_p5)  ;;  %s815_s26 = sand.u32 (!%p9259_p5), 1, %s7762_s30  }
 0x100   : > { %813 = sbr.rel (%p9259_p5) target bundleno = 6850 (0x1ac2), region = 88  ;;  %s6244_s3 = sshll.u32 (!%p9259_p5), %s815_s26, 7 }
 0x101   : > { %s816_s9 = scalar_lea.sflag (!%p9259_p5), [#allocation5], %s815_s26  ;;  %s8305_s17 = scalar_lea.vmem (!%p9259_p5), [#allocation4], %s6244_s3 }
 0x105   : > { %p9261_p6 = scmp.ne.s32.totalorder (!%p9259_p5), %s9260_s15, 0 }
 0x107   : > { %7709 = dma.done.wait (%p9261_p6), %s816_s9, 2048  }
 0x108   : > { %7711 = vsyncadd (%p9261_p6), %s816_s9, 4294965248  ;;  %s824_s4 = sand.u32 1, %s7975_s23   ;;  %s6245_s6 = sshll.u32 %s815_s26, 2 }
 0x109   : > { %s825_s0 = scalar_lea.sflag [#allocation8], %s824_s4  ;;  %s8312_s10 = scalar_lea.vmem [#allocation7], %s6245_s6 }
 0x10a   : > { %7713 = dma.done.wait (%p9261_p6), %s825_s0, 1600  }
 0x10b   : > { %7715 = vsyncadd (%p9261_p6), %s825_s0, 4294965696  ;;  %s7134_s2 = smul.u32 96, %s815_s26  ;;  %s6246_s25 = sshll.u32 %s815_s26, 3 }
 0x10c   : > { %s843_s21 = scalar_lea.sflag [#allocation11], %s824_s4  ;;  %s8320_s19 = scalar_lea.vmem [#allocation10], %s6246_s25 }
 0x10d   : > { %s8318_s27 = scalar_lea.vmem [#allocation9], %s7134_s2 }
 0x10e   : > { %7717 = dma.done.wait (%p9261_p6), %s843_s21, 128  }
 0x10f   : > { %7719 = vsyncadd (%p9261_p6), %s843_s21, 4294967168  ;;  %s853_s23 = sand.u32 1, %s7750_s28  }
 0x110   : > { %s7135_s18 = smul.u32 96, %s853_s23 }
 0x112   : > { %s8327_s24 = scalar_lea.vmem [#allocation12], %s7135_s18 }
 0x113   : > { %7721 = dma.done.wait (%p8213_p9), %s843_s21, 1536  }
 0x114   : > { %7723 = vsyncadd (%p8213_p9), %s843_s21, 4294965760  ;;  %s6247_s1 = sshll.u32 %s853_s23, 4  ;;  %s861_s7 = scalar_lea.sflag [#allocation14], %s853_s23 }
 0x115   : > { %s8333_s12 = scalar_lea.vmem [#allocation13], %s6247_s1 }
 0x116   : > { %7725 = dma.done.wait (%p8213_p9), %s861_s7, 256  }
 0x117   : > { %7727 = vsyncadd (%p8213_p9), %s861_s7, 4294967040  ;;  %s9262_s15 = sld [smem:[#allocation23_spill]]  ;;  %s9263_s26 = sld [smem:[#allocation30_spill]] }
 0x118   : > { %s9264_s3 = sld [smem:[#allocation29_spill]]  ;;  %s9266_s7 = sld [smem:[#allocation43_spill]] }
 0x119   : > { %s9265_s21 = sld [smem:[#allocation42_spill]]  ;;  %s9270_s18 = sld [smem:[#allocation49_spill]] }
 0x11a   : > { %s9271_s14 = sld [smem:[#allocation52_spill]]  ;;  %s9272_s28 = sld [smem:[#allocation53_spill]] }
 0x11d   : > { %s9190_s9 = sand.u32 1, %s9262_s15   ;;  %p990_p4 = scmp.lt.s32.totalorder %s9263_s26, 1 }
 0x11e   : > { %s8343_s4 = sshll.u32 %s9190_s9, 3  ;;  %p1014_p0 = scmp.lt.s32.totalorder %s9264_s3, 1 }
 0x11f   : > { %s6259_s6 = sadd.s32 4294967294, %s9264_s3  ;;  %s9322_s26 = smov (!%p990_p4, %s9263_s26), 1 }
 0x120   : > { %s1015_s0 = scalar_select %p1014_p0, %s9264_s3, 1 }
 0x121   : > { %s8349_s2 = sshll.u32 %s9322_s26, 3  ;;  %p1028_p9 = scmp.gt.s32.totalorder %s6259_s6, 0 }
 0x122   : > { %s993_s23 = scalar_lea.vmem %s9265_s21, %s8349_s2  ;;  %s997_s15 = scalar_lea.vmem %s9266_s7, %s8349_s2 }
 0x123   : > { %p6260_p8 = scmp.lt.s32.totalorder %s6259_s6, 1  ;;  %s9324_s0 = smov (!%p1014_p0, %s1015_s0), 1 }
 0x124   : > { %s9326_s6 = smov (!%p1028_p9, %s6259_s6), 0  ;;  %s6371_s5 = sshll.u32 %s9324_s0, 5 }
 0x125   : > { %s8374_s1 = scalar_lea.vmem %s9270_s18, %s6371_s5  ;;  %s9328_s6 = smov (!%p6260_p8, %s9326_s6), 1 }
 0x126   : > { %s6374_s8 = sshll.u32 %s9328_s6, 7  ;;  %s6273_s13 = sshll.u32 %s9328_s6, 2 }
 0x127   : > { %s8379_s16 = scalar_lea.vmem %s9271_s14, %s6374_s8  ;;  %s8384_s11 = scalar_lea.vmem %s9272_s28, %s6273_s13 }
 0x128   : > { %s6379_s22 = sshll.u32 %s9328_s6, 5  ;;  %s9273_s26 = sld [smem:[#allocation54_spill]] }
 0x129   : > { %s989_s5 = scalar_lea.vmem [#allocation15], %s8343_s4  ;;  %p6282_p1 = scmp.ne.s32.totalorder %s9264_s3, 0 }
 0x12a   : > { %v1069_v0 = vld [vmem:[%s993_s23] sm:$0xff] (!%p6282_p1)  ;;  %vm1070_vm0 = vcmask (!%p6282_p1), 261120  }
 0x12b   : > { %1068 = sbr.rel (%p6282_p1) target bundleno = 306 (0x132), region = 116  ;;  %v1072_v1 = vld [vmem:[%s997_s15] sm:$0xff] (!%p6282_p1)  ;;  %1071 = vst.msk [vmem:[#allocation2] sm:$0xff] (!%p6282_p1), %vm1070_vm0, %v1069_v0 }
 0x12c   : > { %1073 = vst.msk [vmem:[#allocation3] sm:$0xff] (!%p6282_p1), %vm1070_vm0, %v1072_v1 }
 0x12e   : > { %s8389_s25 = scalar_lea.vmem %s9273_s26, %s6379_s22 }
 0x132 PF: > { %s9274_s21 = sld [smem:[#allocation29_spill]] }
 0x138   : > { %p6283_p2 = scmp.ge.s32.totalorder %s9274_s21, 2 }
 0x139   : > { %v1080_v2 = vld [vmem:[%s8305_s17] sm:$0xff] (!%p6283_p2)  ;;  %v1081_v3 = vld [vmem:[%s8305_s17 + $0x8] sm:$0xff] (!%p6283_p2)  ;;  %v7798_v5 = vmov (!%p6283_p2), 0.0|0.0   ;;  %v1082_v8 = vld [vmem:[%s8305_s17 + $0x10] sm:$0xff] (!%p6283_p2)  ;;  %vm7799_vm1 = vmmov (!%p6283_p2), 0   ;;  %v7800_v11 = vmov (!%p6283_p2), 0.0  }
 0x13a   : > { %1077 = sbr.rel (%p6283_p2) target bundleno = 2685 (0xa7d), region = 120  ;;  %v1084_v4 = vld [vmem:[%s8305_s17 + $0x20] sm:$0xff] (!%p6283_p2)  ;;  %6992 = vmatprep.subr.bf16.mxu0 (!%p6283_p2), %v7798_v5  ;;  %v6993_v6 = vpack.c.bf16 (!%p6283_p2), %v1081_v3, %v1080_v2  ;;  %6998 = vmatprep.subr.bf16.mxu1 (!%p6283_p2), %v7798_v5  ;;  %v1085_v7 = vld [vmem:[%s8305_s17 + $0x28] sm:$0xff] (!%p6283_p2)  ;;  %v1083_v9 = vld [vmem:[%s8305_s17 + $0x18] sm:$0xff] (!%p6283_p2)  ;;  %vm1124_vm2 = vcmask (!%p6283_p2), 261120   ;;  %s7801_s30 = smov (!%p6283_p2), 120  }
 0x13b   : > { %v6999_v10 = vpack.c.bf16 (!%p6283_p2), %v1085_v7, %v1084_v4  ;;  %6573 = vmatprep.mubr.msk.f32.mxu0 (!%p6283_p2), %vm7799_vm1, %v7800_v11  ;;  %v1086_v12 = vld [vmem:[%s8305_s17 + $0x30] sm:$0xff] (!%p6283_p2)  ;;  %v1087_v13 = vld [vmem:[%s8305_s17 + $0x38] sm:$0xff] (!%p6283_p2)  ;;  %6584 = vmatprep.mubr.msk.f32.mxu1 (!%p6283_p2), %vm7799_vm1, %v7800_v11  ;;  %v6996_v14 = vpack.c.bf16 (!%p6283_p2), %v1083_v9, %v1082_v8  ;;  %v1088_v16 = vld [vmem:[%s8305_s17 + $0x40] sm:$0xff] (!%p6283_p2)  ;;  %vm1416_vm3 = vcmask (!%p6283_p2), 64512   ;;  %s7802_s6 = smov (!%p6283_p2), 112   ;;  %vm2493_vm4 = vcmask (!%p6283_p2), 523264  }
 0x13c   : > { %6994 = vmatpush3.bf16.msra.mxu0 (!%p6283_p2), %v6993_v6  ;;  %v7002_v15 = vpack.c.bf16 (!%p6283_p2), %v1087_v13, %v1086_v12  ;;  %v1089_v17 = vld [vmem:[%s8305_s17 + $0x48] sm:$0xff] (!%p6283_p2)  ;;  %v1092_v18 = vld [vmem:[%s8305_s17 + $0x60] sm:$0xff] (!%p6283_p2)  ;;  %v8414_v20 = vld [vmem:[#allocation2] sm:$0xff] (!%p6283_p2) }
 0x13d   : > { %6995 = vmatprep.subr.bf16.mxu0 (!%p6283_p2), %v7798_v5  ;;  %7000 = vmatpush3.bf16.msra.mxu1 (!%p6283_p2), %v6999_v10  ;;  %v1093_v19 = vld [vmem:[%s8305_s17 + $0x68] sm:$0xff] (!%p6283_p2)  ;;  %v7005_v21 = vpack.c.bf16 (!%p6283_p2), %v1089_v17, %v1088_v16  ;;  %v1090_v23 = vld [vmem:[%s8305_s17 + $0x50] sm:$0xff] (!%p6283_p2)  ;;  %v1091_v24 = vld [vmem:[%s8305_s17 + $0x58] sm:$0xff] (!%p6283_p2) }
 0x13e   : > { %7001 = vmatprep.subr.bf16.mxu1 (!%p6283_p2), %v7798_v5  ;;  %v7011_v22 = vpack.c.bf16 (!%p6283_p2), %v1093_v19, %v1092_v18  ;;  %v1094_v25 = vld [vmem:[%s8305_s17 + $0x70] sm:$0xff] (!%p6283_p2)  ;;  %v1095_v26 = vld [vmem:[%s8305_s17 + $0x78] sm:$0xff] (!%p6283_p2)  ;;  %v7008_v27 = vpack.c.bf16 (!%p6283_p2), %v1091_v24, %v1090_v23  ;;  %v6284_v29 = vld [vmem:[%s8312_s10] ss:$0 sm:$0xff] (!%p6283_p2) }
 0x13f   : > { %v7014_v28 = vpack.c.bf16 (!%p6283_p2), %v1095_v26, %v1094_v25  ;;  %v6285_v31 = vld [vmem:[%s8312_s10 + $0x1] ss:$0 sm:$0xff] (!%p6283_p2)  ;;  %v6286_v37 = vld [vmem:[%s8312_s10 + $0x2] ss:$0 sm:$0xff] (!%p6283_p2)  ;;  %v6287_v39 = vld [vmem:[%s8312_s10 + $0x3] ss:$0 sm:$0xff] (!%p6283_p2) }
 0x140   : > { %6997 = vmatpush3.bf16.msra.mxu0 (!%p6283_p2), %v6996_v14  ;;  %s9275_s10 = sld [smem:[#allocation44_spill]] (!%p6283_p2) }
 0x141   : > { %7003 = vmatpush3.bf16.msra.mxu1 %v7002_v15  ;;  %7004 = vmatprep.subr.bf16.mxu0 %v7798_v5 }
 0x142   : > { %7010 = vmatprep.subr.bf16.mxu1 %v7798_v5 }
 0x143   : > { %6574 = vmatmul.mubr.msk.f32.vlgmr.msra.gmra.mrb[0].mxu0 %vm1124_vm2, %v8414_v20 }
 0x144   : > { %7006 = vmatpush3.bf16.msra.mxu0 %v7005_v21  ;;  %6585 = vmatmul.mubr.msk.f32.vlgmr.msra.gmra.mrb[0].mxu1 %vm1124_vm2, %v8414_v20 }
 0x145   : > { %7007 = vmatprep.subr.bf16.mxu0 %v7798_v5  ;;  %7012 = vmatpush3.bf16.msra.mxu1 %v7011_v22 }
 0x146   : > { %6595 = vmatprep.mubr.msk.f32.mxu0 %vm7799_vm1, %v7800_v11  ;;  %7013 = vmatprep.subr.bf16.mxu1 %v7798_v5  ;;  %s9276_s3 = scalar_lea.vmem %s9275_s10, %s8349_s2 }
 0x147   : > { %6606 = vmatprep.mubr.msk.f32.mxu1 %vm7799_vm1, %v7800_v11  ;;  %v1408_v49 = vld [vmem:[%s9276_s3] sm:$0xff] }
 0x148   : > { %7009 = vmatpush3.bf16.msra.mxu0 %v7008_v27 }
 0x149   : > { %7015 = vmatpush3.bf16.msra.mxu1 %v7014_v28  ;;  %6609 = vmatprep.subr.mxu0 %v7800_v11 }
 0x14a   : > { %6624 = vmatprep.subr.mxu1 %v7800_v11 }
 0x14b   : > { %6596 = vmatmul.mubr.msk.f32.vlgmr.msra.gmra.mrb[2].mxu0 %vm1124_vm2, %v8414_v20 }
 0x14c   : > { %6607 = vmatmul.mubr.msk.f32.vlgmr.msra.gmra.mrb[2].mxu1 %vm1124_vm2, %v8414_v20  ;;  %6611 = vmatprep.mubr.msk.f32.mxu0 %vm7799_vm1, %v7800_v11 }
 0x14d   : > { %6626 = vmatprep.mubr.msk.f32.mxu1 %vm7799_vm1, %v7800_v11 }
 0x216   : > { %v1194_v30 = vpop.f32.mrb[0].mxu0 }
 0x217   : > { %v1195_v32 = vadd.f32 %v6284_v29, %v1194_v30  ;;  %v6575_v33 = vpop.f32.mrb[1].mxu0  ;;  %v1264_v34 = vpop.f32.mrb[0].mxu1 }
 0x218   : > { %v6586_v35 = vpop.f32.mrb[1].mxu1  ;;  %v8444_v36 = vadd.f32 %v6285_v31, %v1264_v34 }
 0x219   : > { %1414 = vrot.lane.b32.xlu0 %v1195_v32, %s7801_s30 }
 0x21d   : > { %1492 = vrot.lane.b32.xlu0 %v8444_v36, %s7801_s30 }
 0x21e   : > { %v1334_v38 = vpop.f32.mrb[2].mxu0 }
 0x21f   : > { %v8449_v40 = vadd.f32 %v6286_v37, %v1334_v38  ;;  %v6597_v41 = vpop.f32.mrb[3].mxu0  ;;  %v1404_v42 = vpop.f32.mrb[2].mxu1 }
 0x220   : > { %v6608_v43 = vpop.f32.mrb[3].mxu1  ;;  %v8451_v44 = vadd.f32 %v6287_v39, %v1404_v42  ;;  %v1409_v41 = vld [vmem:[%s8374_s1] sm:$0xff]  ;;  %v1410_v42 = vld [vmem:[%s8374_s1 + $0x8] sm:$0xff] }
 0x221   : > { %1569 = vrot.lane.b32.xlu1 %v8449_v40, %s7801_s30  ;;  %v1411_v43 = vld [vmem:[%s8374_s1 + $0x10] sm:$0xff] }
 0x225   : > { %1646 = vrot.lane.b32.xlu1 %v8451_v44, %s7801_s30 }
 0x28b   : > { %v1415_v45 = vpop.permute.xlu0 %1414 }
 0x28c   : > { %6610 = vmatpush3.xpose.msk.msra.mxu0 %vm1416_vm3, %v1415_v45 }
 0x28d   : > { %6614 = vmatprep.subr.mxu0 %v7800_v11 }
 0x28f   : > { %6612 = vmatmul.mubr.msk.f32.vlgmr.msra.gmra.mrb[4].mxu0 %vm1416_vm3, %v1195_v32  ;;  %v1493_v46 = vpop.permute.xlu0 %1492 }
 0x290   : > { %6615 = vmatpush3.xpose.msk.msra.mxu0 %vm1416_vm3, %v1493_v46  ;;  %6616 = vmatprep.mubr.msk.f32.mxu0 %vm7799_vm1, %v7800_v11  ;;  %v1412_v46 = vld [vmem:[%s8374_s1 + $0x18] sm:$0xff] }
 0x291   : > { %6619 = vmatprep.subr.mxu0 %v7800_v11 }
 0x293   : > { %6617 = vmatmul.mubr.msk.f32.vlgmr.msra.gmra.mrb[6].mxu0 %vm1416_vm3, %v8444_v36  ;;  %v1570_v47 = vpop.permute.xlu1 %1569 }
 0x294   : > { %6620 = vmatpush3.xpose.msk.msra.mxu0 %vm1416_vm3, %v1570_v47  ;;  %6621 = vmatprep.mubr.msk.f32.mxu0 %vm7799_vm1, %v7800_v11 }
 0x295   : > { %6629 = vmatprep.subr.mxu0 %v7800_v11 }
 0x297   : > { %6622 = vmatmul.mubr.msk.f32.vlgmr.msra.gmra.mrb[8].mxu0 %vm1416_vm3, %v8449_v40  ;;  %v1647_v48 = vpop.permute.xlu1 %1646 }
 0x298   : > { %6625 = vmatpush3.xpose.msk.msra.mxu1 %vm1416_vm3, %v1647_v48  ;;  %6631 = vmatprep.mubr.msk.f32.mxu0 %vm7799_vm1, %v7800_v11 }
 0x299   : > { %6634 = vmatprep.subr.mxu1 %v7800_v11 }
 0x29b   : > { %6627 = vmatmul.mubr.msk.f32.vlgmr.msra.gmra.mrb[4].mxu1 %vm1416_vm3, %v8451_v44 }
 0x29c   : > { %6636 = vmatprep.mubr.msk.f32.mxu1 %vm7799_vm1, %v7800_v11 }
 0x362   : > { %v1487_v50 = vpop.f32.mrb[4].mxu0 }
 0x363   : > { %v1488_v51 = vadd.f32 %v1487_v50, %v1408_v49  ;;  %v6613_v52 = vpop.f32.mrb[5].mxu0 }
 0x365   : > { %v1722_v53 = vsel %vm1416_vm3, %v1488_v51, -inf }
 0x366   : > { %1723 = vmax.xlane.f32.xlu0 %v1722_v53  ;;  %v1564_v54 = vpop.f32.mrb[6].mxu0 }
 0x367   : > { %v1565_v55 = vadd.f32 %v1564_v54, %v1408_v49  ;;  %v6618_v56 = vpop.f32.mrb[7].mxu0  ;;  %v2369_v54 = vlaneseq }
 0x369   : > { %v1725_v57 = vsel %vm1416_vm3, %v1565_v55, -inf }
 0x36a   : > { %1726 = vmax.xlane.f32.xlu1 %v1725_v57  ;;  %v1641_v58 = vpop.f32.mrb[8].mxu0  ;;  %v8534_v57 = vshrl.u32 %v2369_v54, 7 }
 0x36b   : > { %v1642_v59 = vadd.f32 %v1641_v58, %v1408_v49  ;;  %v6623_v60 = vpop.f32.mrb[9].mxu0 }
 0x36d   : > { %v1728_v61 = vsel %vm1416_vm3, %v1642_v59, -inf }
 0x36e   : > { %v1718_v62 = vpop.f32.mrb[4].mxu1  ;;  %1729 = vmax.xlane.f32.xlu0 %v1728_v61 }
 0x36f   : > { %v1719_v63 = vadd.f32 %v1718_v62, %v1408_v49  ;;  %v6628_v0 = vpop.f32.mrb[5].mxu1 }
 0x371   : > { %v1731_v1 = vsel %vm1416_vm3, %v1719_v63, -inf }
 0x372   : > { %1732 = vmax.xlane.f32.xlu0 %v1731_v1 }
 0x37b   : > { %1766 = vrot.lane.b32.xlu1 %v1195_v32, %s7802_s6 }
 0x3f3   : > { %v1724_v2 = vpop.xlane.xlu0 %1723 }
 0x3f4   : > { %v1734_v3 = vsub.f32 %v1488_v51, %v1724_v2  ;;  %v8541_v2 = vld [vmem:[%s8320_s19] sm:$0x7f] }
 0x3f6   : > { %v1738_v4 = vmul.f32 1.442695, %v1734_v3 }
 0x3f7   : > { %v1727_v6 = vpop.xlane.xlu1 %1726 }
 0x3f8   : > { %7306 = vpow2.f32 %v1738_v4  ;;  %v1735_v7 = vsub.f32 %v1565_v55, %v1727_v6 }
 0x3fa   : > { %v1740_v8 = vmul.f32 1.442695, %v1735_v7 }
 0x3fb   : > { %v1767_v9 = vpop.permute.xlu1 %1766  ;;  %v1730_v10 = vpop.xlane.xlu0 %1729 }
 0x3fc   : > { %7308 = vpow2.f32 %v1740_v8  ;;  %v1736_v12 = vsub.f32 %v1642_v59, %v1730_v10  ;;  %6630 = vmatpush3.msra.mxu0 %v1767_v9 }
 0x3fd   : > { %6639 = vmatprep.subr.mxu0 %v7800_v11 }
 0x3fe   : > { %v1742_v13 = vmul.f32 1.442695, %v1736_v12 }
 0x3ff   : > { %v1733_v14 = vpop.xlane.xlu0 %1732 }
 0x400   : > { %7310 = vpow2.f32 %v1742_v13  ;;  %v1737_v15 = vsub.f32 %v1719_v63, %v1733_v14  ;;  %v2371_v63 = vsub.s32 0, %v8534_v57 }
 0x402   : > { %v7307_v16 = vpop.eup %7306  ;;  %v1744_v17 = vmul.f32 1.442695, %v1737_v15  ;;  %v2372_v4 = vrot.slane %v8541_v2, %v2371_v63 }
 0x403   : > { %v1746_v18 = vsel %vm1416_vm3, %v7307_v16, 0.0 }
 0x404   : > { %7312 = vpow2.f32 %v1744_v17  ;;  %1747 = vadd.xlane.f32.xlu1 %v1746_v18  ;;  %v2399_v18 = vld [vmem:[%s8318_s27] sm:$0xff] }
 0x406   : > { %v7309_v19 = vpop.eup %7308 }
 0x407   : > { %v1749_v21 = vsel %vm1416_vm3, %v7309_v19, 0.0 }
 0x408   : > { %1750 = vadd.xlane.f32.xlu0 %v1749_v21 }
 0x40a   : > { %v7311_v22 = vpop.eup %7310 }
 0x40b   : > { %v1752_v23 = vsel %vm1416_vm3, %v7311_v22, 0.0 }
 0x40c   : > { %1753 = vadd.xlane.f32.xlu1 %v1752_v23 }
 0x40e   : > { %v7313_v24 = vpop.eup %7312 }
 0x40f   : > { %v1755_v25 = vsel %vm1416_vm3, %v7313_v24, 0.0 }
 0x410   : > { %1756 = vadd.xlane.f32.xlu0 %v1755_v25  ;;  %v2404_v25 = vld [vmem:[%s8318_s27 + $0x28] sm:$0xff] }
 0x41d   : > { %1918 = vrot.lane.b32.xlu1 %v8449_v40, %s7802_s6 }
 0x421   : > { %1994 = vrot.lane.b32.xlu1 %v8451_v44, %s7802_s6 }
 0x426   : > { %1842 = vrot.lane.b32.xlu0 %v8444_v36, %s7802_s6 }
 0x491   : > { %v1748_v26 = vpop.xlane.xlu1 %1747 }
 0x492   : > { %7314 = vrcp.f32 %v1748_v26  ;;  %v2405_v26 = vld [vmem:[%s8318_s27 + $0x30] sm:$0xff] }
 0x495   : > { %v1751_v27 = vpop.xlane.xlu0 %1750 }
 0x496   : > { %7316 = vrcp.f32 %v1751_v27 }
 0x499   : > { %v1754_v28 = vpop.xlane.xlu1 %1753 }
 0x49a   : > { %7318 = vrcp.f32 %v1754_v28  ;;  %v2406_v28 = vld [vmem:[%s8318_s27 + $0x38] sm:$0xff] }
 0x49c   : > { %v7315_v29 = vpop.eup %7314 }
 0x49d   : > { %v1762_v30 = vmul.f32 %v7315_v29, %v7307_v16  ;;  %v1919_v31 = vpop.permute.xlu1 %1918  ;;  %v1757_v32 = vpop.xlane.xlu0 %1756  ;;  %v7026_v29 = vpack.c.bf16 %v2406_v28, %v2405_v26 }
 0x49e   : > { %7320 = vrcp.f32 %v1757_v32 }
 0x49f   : > { %6632 = vmatmul.mubr.msk.f32.vlgmr.msra.gmra.mrb[10].mxu0 %vm1416_vm3, %v1762_v30  ;;  %v2407_v30 = vld [vmem:[%s8318_s27 + $0x40] sm:$0xff] }
 0x4a0   : > { %v7317_v33 = vpop.eup %7316  ;;  %6640 = vmatpush3.msra.mxu0 %v1919_v31  ;;  %6641 = vmatprep.mubr.msk.f32.mxu0 %vm7799_vm1, %v7800_v11  ;;  %v2408_v31 = vld [vmem:[%s8318_s27 + $0x48] sm:$0xff] }
 0x4a1   : > { %v1763_v34 = vmul.f32 %v7317_v33, %v7309_v19  ;;  %v1843_v35 = vpop.permute.xlu0 %1842  ;;  %6649 = vmatprep.subr.mxu0 %v7800_v11  ;;  %v1995_v36 = vpop.permute.xlu1 %1994  ;;  %v2400_v19 = vld [vmem:[%s8318_s27 + $0x8] sm:$0xff]  ;;  %v7029_v32 = vpack.c.bf16 %v2408_v31, %v2407_v30 }
 0x4a2   : > { %6635 = vmatpush3.msra.mxu1 %v1843_v35  ;;  %v7017_v21 = vpack.c.bf16 %v2400_v19, %v2399_v18 }
 0x4a3   : > { %6637 = vmatmul.mubr.msk.f32.vlgmr.msra.gmra.mrb[6].mxu1 %vm1416_vm3, %v1763_v34  ;;  %6644 = vmatprep.subr.mxu1 %v7800_v11 }
 0x4a4   : > { %v7319_v37 = vpop.eup %7318  ;;  %6645 = vmatpush3.msra.mxu1 %v1995_v36  ;;  %6646 = vmatprep.mubr.msk.f32.mxu1 %vm7799_vm1, %v7800_v11  ;;  %v2391_v36 = vsub.s32 3, %v8534_v57 }
 0x4a5   : > { %v1764_v38 = vmul.f32 %v7319_v37, %v7311_v22  ;;  %6654 = vmatprep.subr.mxu1 %v7800_v11  ;;  %v2402_v22 = vld [vmem:[%s8318_s27 + $0x18] sm:$0xff]  ;;  %v2396_v37 = vsub.s32 4, %v8534_v57 }
 0x4a7   : > { %6642 = vmatmul.mubr.msk.f32.vlgmr.msra.gmra.mrb[12].mxu0 %vm1416_vm3, %v1764_v38  ;;  %v2392_v38 = vrot.slane %v8541_v2, %v2391_v36 }
 0x4a8   : > { %v7321_v39 = vpop.eup %7320  ;;  %6651 = vmatprep.mubr.msk.f32.mxu0 %vm7799_vm1, %v7800_v11  ;;  %6650 = vmatpush3.msra.mxu0 %v1409_v41  ;;  %v2397_v41 = vrot.slane %v8541_v2, %v2396_v37 }
 0x4a9   : > { %v1765_v40 = vmul.f32 %v7321_v39, %v7313_v24  ;;  %6659 = vmatprep.subr.mxu0 %v7800_v11  ;;  %v2403_v24 = vld [vmem:[%s8318_s27 + $0x20] sm:$0xff] }
 0x4aa   : > { %v7023_v27 = vpack.c.bf16 %v2404_v25, %v2403_v24 }
 0x4ab   : > { %6647 = vmatmul.mubr.msk.f32.vlgmr.msra.gmra.mrb[8].mxu1 %vm1416_vm3, %v1765_v40 }
 0x4ac   : > { %6656 = vmatprep.mubr.msk.f32.mxu1 %vm7799_vm1, %v7800_v11  ;;  %6655 = vmatpush3.msra.mxu1 %v1410_v42 }
 0x4ad   : > { %6664 = vmatprep.subr.mxu1 %v7800_v11 }
 0x572   : > { %v1838_v44 = vpop.f32.mrb[10].mxu0 }
 0x573   : > { %v6633_v45 = vpop.f32.mrb[11].mxu0  ;;  %6652 = vmatmul.mubr.msk.f32.vlgmr.msra.gmra.mrb[14].mxu0 %vm1416_vm3, %v1838_v44  ;;  %v2409_v44 = vld [vmem:[%s8318_s27 + $0x50] sm:$0xff] }
 0x574   : > { %6660 = vmatpush3.msra.mxu0 %v1411_v43  ;;  %6661 = vmatprep.mubr.msk.f32.mxu0 %vm7799_vm1, %v7800_v11 }
 0x575   : > { %7016 = vmatprep.subr.bf16.mxu0 %v7798_v5 }
 0x576   : > { %v1914_v47 = vpop.f32.mrb[6].mxu1 }
 0x577   : > { %v6638_v48 = vpop.f32.mrb[7].mxu1  ;;  %6657 = vmatmul.mubr.msk.f32.vlgmr.msra.gmra.mrb[10].mxu1 %vm1416_vm3, %v1914_v47 }
 0x578   : > { %6665 = vmatpush3.msra.mxu1 %v1412_v46  ;;  %6666 = vmatprep.mubr.msk.f32.mxu1 %vm7799_vm1, %v7800_v11  ;;  %v2413_v46 = vsub.s32 1, %v8534_v57 }
 0x579   : > { %7022 = vmatprep.subr.bf16.mxu1 %v7798_v5 }
 0x57a   : > { %v1990_v49 = vpop.f32.mrb[12].mxu0  ;;  %v2414_v47 = vrot.slane %v8541_v2, %v2413_v46 }
 0x57b   : > { %v6643_v50 = vpop.f32.mrb[13].mxu0  ;;  %6662 = vmatmul.mubr.msk.f32.vlgmr.msra.gmra.mrb[16].mxu0 %vm1416_vm3, %v1990_v49 }
 0x57c   : > { %6677 = vmatprep.mubr.msk.f32.mxu0 %vm7799_vm1, %v7800_v11  ;;  %7018 = vmatpush3.bf16.msra.mxu0 %v7017_v21 }
 0x57d   : > { %7019 = vmatprep.subr.bf16.mxu0 %v7798_v5 }
 0x57e   : > { %v2066_v51 = vpop.f32.mrb[8].mxu1 }
 0x57f   : > { %v6648_v52 = vpop.f32.mrb[9].mxu1  ;;  %6667 = vmatmul.mubr.msk.f32.vlgmr.msra.gmra.mrb[12].mxu1 %vm1416_vm3, %v2066_v51 }
 0x580   : > { %6696 = vmatprep.mubr.msk.f32.mxu1 %vm7799_vm1, %v7800_v11  ;;  %7024 = vmatpush3.bf16.msra.mxu1 %v7023_v27  ;;  %v2491_v52 = vsub.s32 2, %v8534_v57 }
 0x581   : > { %7025 = vmatprep.subr.bf16.mxu1 %v7798_v5 }
 0x584   : > { %7027 = vmatpush3.bf16.msra.mxu1 %v7026_v29 }
 0x585   : > { %7028 = vmatprep.subr.bf16.mxu1 %v7798_v5 }
 0x588   : > { %7030 = vmatpush3.bf16.msra.mxu1 %v7029_v32 }
 0x589   : > { %7031 = vmatprep.subr.bf16.mxu1 %v7798_v5  ;;  %v2410_v5 = vld [vmem:[%s8318_s27 + $0x58] sm:$0xff] }
 0x58a   : > { %v7032_v45 = vpack.c.bf16 %v2410_v5, %v2409_v44 }
 0x58c   : > { %7033 = vmatpush3.bf16.msra.mxu1 %v7032_v45 }
 0x646   : > { %v2139_v53 = vpop.f32.mrb[14].mxu0 }
 0x647   : > { %v6653_v55 = vpop.f32.mrb[15].mxu0  ;;  %v2362_v58 = vsel %vm1124_vm2, %v2139_v53, 0.0  ;;  %v2492_v53 = vrot.slane %v8541_v2, %v2491_v52 }
 0x64a   : > { %v2212_v56 = vpop.f32.mrb[10].mxu1 }
 0x64b   : > { %v2363_v59 = vsel %vm1124_vm2, %v2212_v56, 0.0  ;;  %v6658_v60 = vpop.f32.mrb[11].mxu1 }
 0x64c   : > { %v2364_v61 = vadd.f32 %v2363_v59, %v2362_v58 }
 0x64e   : > { %v2285_v62 = vpop.f32.mrb[16].mxu0 }
 0x64f   : > { %v2365_v0 = vsel %vm1124_vm2, %v2285_v62, 0.0  ;;  %v6663_v1 = vpop.f32.mrb[17].mxu0 }
 0x650   : > { %v2366_v11 = vadd.f32 %v2365_v0, %v2364_v61 }
 0x652   : > { %v2358_v3 = vpop.f32.mrb[12].mxu1 }
 0x653   : > { %v2367_v6 = vsel %vm1124_vm2, %v2358_v3, 0.0  ;;  %v6668_v7 = vpop.f32.mrb[13].mxu1 }
 0x654   : > { %v2368_v8 = vadd.f32 %v2367_v6, %v2366_v11  ;;  %v2588_v6 = vsub.s32 6, %v8534_v57 }
 0x656   : > { %v2373_v9 = vadd.f32 %v2372_v4, %v2368_v8  ;;  %v2583_v4 = vsub.s32 5, %v8534_v57 }
 0x658   : > { %v2374_v10 = vadd.f32 %v2373_v9, %v8414_v20  ;;  %v2401_v20 = vld [vmem:[%s8318_s27 + $0x10] sm:$0xff]  ;;  %v2584_v7 = vrot.slane %v8541_v2, %v2583_v4  ;;  %v2589_v9 = vrot.slane %v8541_v2, %v2588_v6 }
 0x659   : > { %v7020_v23 = vpack.c.bf16 %v2402_v22, %v2401_v20 }
 0x65a   : > { %v2375_v12 = vsel %vm1124_vm2, %v2374_v10, 0.0 }
 0x65b   : > { %2376 = vadd.xlane.f32.xlu0 %v2375_v12  ;;  %7021 = vmatpush3.bf16.msra.mxu0 %v7020_v23 }
 0x6e8   : > { %v2377_v13 = vpop.xlane.xlu0 %2376 }
 0x6e9   : > { %v2379_v14 = vmul.f32 0.03125, %v2377_v13 }
 0x6eb   : > { %v2380_v15 = vsub.f32 %v2374_v10, %v2379_v14 }
 0x6ed   : > { %v2381_v16 = vmul.f32 %v2380_v15, %v2380_v15 }
 0x6ef   : > { %v2382_v17 = vsel %vm1124_vm2, %v2381_v16, 0.0 }
 0x6f0   : > { %2383 = vadd.xlane.f32.xlu1 %v2382_v17 }
 0x77d   : > { %v2384_v33 = vpop.xlane.xlu1 %2383 }
 0x77e   : > { %v2385_v34 = vmul.f32 0.03125, %v2384_v33 }
 0x780   : > { %v2386_v35 = vadd.f32 1e-06, %v2385_v34 }
 0x782   : > { %7322 = vrsqrt.f32 %v2386_v35 }
 0x78c   : > { %v7323_v39 = vpop.eup %7322 }
 0x78d   : > { %v2388_v40 = vmul.f32 %v7323_v39, %v2380_v15 }
 0x78f   : > { %v2393_v42 = vmul.f32 %v2392_v38, %v2388_v40 }
 0x791   : > { %v2398_v43 = vadd.f32 %v2397_v41, %v2393_v42 }
 0x793   : > { %6678 = vmatmul.mubr.msk.f32.vlgmr.msra.gmra.mrb[18].mxu0 %vm1124_vm2, %v2398_v43 }
 0x866   : > { %v2484_v48 = vpop.f32.mrb[18].mxu0 }
 0x867   : > { %v2485_v49 = vadd.f32 %v2484_v48, %v2414_v47  ;;  %v6679_v50 = vpop.f32.mrb[19].mxu0 }
 0x869   : > { %v2488_v51 = vmax.f32 %v2485_v49, 0.0 }
 0x86b   : > { %6697 = vmatmul.mubr.msk.f32.vlgmr.msra.gmra.mrb[14].mxu1 %vm2493_vm4, %v2488_v51 }
 0x93e   : > { %v2563_v54 = vpop.f32.mrb[14].mxu1 }
 0x93f   : > { %v2564_v55 = vadd.f32 %v2563_v54, %v2492_v53  ;;  %v6698_v56 = vpop.f32.mrb[15].mxu1 }
 0x941   : > { %v2567_v58 = vadd.f32 %v2564_v55, %v2398_v43 }
 0x943   : > { %v2568_v59 = vsel %vm1124_vm2, %v2567_v58, 0.0 }
 0x944   : > { %2569 = vadd.xlane.f32.xlu0 %v2568_v59 }
 0x9d1   : > { %v2570_v60 = vpop.xlane.xlu0 %2569 }
 0x9d2   : > { %v2571_v61 = vmul.f32 0.03125, %v2570_v60 }
 0x9d4   : > { %v2572_v62 = vsub.f32 %v2567_v58, %v2571_v61 }
 0x9d6   : > { %v2573_v63 = vmul.f32 %v2572_v62, %v2572_v62 }
 0x9d8   : > { %v2574_v0 = vsel %vm1124_vm2, %v2573_v63, 0.0 }
 0x9d9   : > { %2575 = vadd.xlane.f32.xlu0 %v2574_v0 }
 0xa66   : > { %v2576_v1 = vpop.xlane.xlu0 %2575 }
 0xa67   : > { %v2577_v11 = vmul.f32 0.03125, %v2576_v1 }
 0xa69   : > { %v2578_v3 = vadd.f32 1e-06, %v2577_v11 }
 0xa6b   : > { %7324 = vrsqrt.f32 %v2578_v3 }
 0xa75   : > { %v7325_v8 = vpop.eup %7324 }
 0xa76   : > { %v2580_v10 = vmul.f32 %v7325_v8, %v2572_v62 }
 0xa78   : > { %v2585_v12 = vmul.f32 %v2584_v7, %v2580_v10 }
 0xa7a   : > { %v2590_v13 = vadd.f32 %v2589_v9, %v2585_v12 }
 0xa7c   : > { %2591 = vst.msk [vmem:[#allocation2] sm:$0xff] %vm1124_vm2, %v2590_v13 }
 0xa7d PF: > { %s9277_s27 = sld [smem:[#allocation29_spill]] }
 0xa83   : > { %p6310_p3 = scmp.lt.s32.totalorder %s9277_s27, 2 }
 0xa84   : > { %v8582_v57 = vld [vmem:[%s8379_s16] sm:$0xff] (!%p6310_p3)  ;;  %v8585_v2 = vld [vmem:[%s8379_s16 + $0x8] sm:$0xff] (!%p6310_p3)  ;;  %v7803_v15 = vmov (!%p6310_p3), 0.0|0.0   ;;  %v8598_v18 = vld [vmem:[%s8379_s16 + $0x10] sm:$0xff] (!%p6310_p3)  ;;  %vm7804_vm5 = vmmov (!%p6310_p3), 0   ;;  %v7805_v20 = vmov (!%p6310_p3), 0.0  }
 0xa85   : > { %2595 = sbr.rel (%p6310_p3) target bundleno = 6582 (0x19b6), region = 124  ;;  %v8588_v14 = vld [vmem:[%s8379_s16 + $0x20] sm:$0xff] (!%p6310_p3)  ;;  %7034 = vmatprep.subr.bf16.mxu0 (!%p6310_p3), %v7803_v15  ;;  %v7035_v16 = vpack.c.bf16 (!%p6310_p3), %v8585_v2, %v8582_v57  ;;  %7040 = vmatprep.subr.bf16.mxu1 (!%p6310_p3), %v7803_v15  ;;  %v8595_v17 = vld [vmem:[%s8379_s16 + $0x28] sm:$0xff] (!%p6310_p3)  ;;  %v8601_v19 = vld [vmem:[%s8379_s16 + $0x18] sm:$0xff] (!%p6310_p3)  ;;  %vm2648_vm6 = vcmask (!%p6310_p3), 261120   ;;  %s7806_s19 = smov (!%p6310_p3), 120  }
 0xa86   : > { %v7041_v21 = vpack.c.bf16 (!%p6310_p3), %v8595_v17, %v8588_v14  ;;  %6707 = vmatprep.mubr.msk.f32.mxu0 (!%p6310_p3), %vm7804_vm5, %v7805_v20  ;;  %v8608_v22 = vld [vmem:[%s8379_s16 + $0x30] sm:$0xff] (!%p6310_p3)  ;;  %v8611_v23 = vld [vmem:[%s8379_s16 + $0x38] sm:$0xff] (!%p6310_p3)  ;;  %6718 = vmatprep.mubr.msk.f32.mxu1 (!%p6310_p3), %vm7804_vm5, %v7805_v20  ;;  %v7038_v24 = vpack.c.bf16 (!%p6310_p3), %v8601_v19, %v8598_v18  ;;  %v8621_v26 = vld [vmem:[%s8379_s16 + $0x40] sm:$0xff] (!%p6310_p3)  ;;  %vm2936_vm7 = vcmask (!%p6310_p3), 64512   ;;  %s9278_s26 = sld [smem:[#allocation45_spill]] (!%p6310_p3)  ;;  %s7807_s1 = smov (!%p6310_p3), 112  }
 0xa87   : > { %7036 = vmatpush3.bf16.msra.mxu0 (!%p6310_p3), %v7035_v16  ;;  %v7044_v25 = vpack.c.bf16 (!%p6310_p3), %v8611_v23, %v8608_v22  ;;  %v8624_v27 = vld [vmem:[%s8379_s16 + $0x48] sm:$0xff] (!%p6310_p3)  ;;  %v8628_v28 = vld [vmem:[%s8379_s16 + $0x60] sm:$0xff] (!%p6310_p3)  ;;  %v8633_v30 = vld [vmem:[#allocation3] sm:$0xff] (!%p6310_p3)  ;;  %s7808_s8 = smov (!%p6310_p3), 104   ;;  %s7809_s13 = smov (!%p6310_p3), 96   ;;  %vm5712_vm8 = vcmask (!%p6310_p3), 523264  }
 0xa88   : > { %7037 = vmatprep.subr.bf16.mxu0 (!%p6310_p3), %v7803_v15  ;;  %7042 = vmatpush3.bf16.msra.mxu1 (!%p6310_p3), %v7041_v21  ;;  %v8631_v29 = vld [vmem:[%s8379_s16 + $0x68] sm:$0xff] (!%p6310_p3)  ;;  %v7047_v31 = vpack.c.bf16 (!%p6310_p3), %v8624_v27, %v8621_v26  ;;  %v8641_v33 = vld [vmem:[%s8379_s16 + $0x50] sm:$0xff] (!%p6310_p3)  ;;  %v8644_v34 = vld [vmem:[%s8379_s16 + $0x58] sm:$0xff] (!%p6310_p3)  ;;  %s9280_s14 = sld [smem:[#allocation46_spill]] (!%p6310_p3) }
 0xa89   : > { %7043 = vmatprep.subr.bf16.mxu1 (!%p6310_p3), %v7803_v15  ;;  %v7053_v32 = vpack.c.bf16 (!%p6310_p3), %v8631_v29, %v8628_v28  ;;  %v8648_v35 = vld [vmem:[%s8379_s16 + $0x70] sm:$0xff] (!%p6310_p3)  ;;  %v8651_v36 = vld [vmem:[%s8379_s16 + $0x78] sm:$0xff] (!%p6310_p3)  ;;  %v7050_v37 = vpack.c.bf16 (!%p6310_p3), %v8644_v34, %v8641_v33  ;;  %v8678_v39 = vld [vmem:[%s8384_s11] ss:$0 sm:$0xff] (!%p6310_p3) }
 0xa8a   : > { %v7056_v38 = vpack.c.bf16 (!%p6310_p3), %v8651_v36, %v8648_v35  ;;  %v8681_v41 = vld [vmem:[%s8384_s11 + $0x1] ss:$0 sm:$0xff] (!%p6310_p3)  ;;  %v8689_v46 = vld [vmem:[%s8384_s11 + $0x2] ss:$0 sm:$0xff] (!%p6310_p3)  ;;  %v8694_v48 = vld [vmem:[%s8384_s11 + $0x3] ss:$0 sm:$0xff] (!%p6310_p3) }
 0xa8b   : > { %7039 = vmatpush3.bf16.msra.mxu0 (!%p6310_p3), %v7038_v24 }
 0xa8c   : > { %7045 = vmatpush3.bf16.msra.mxu1 %v7044_v25  ;;  %7046 = vmatprep.subr.bf16.mxu0 %v7803_v15  ;;  %s9279_s18 = scalar_lea.vmem %s9278_s26, %s8349_s2 }
 0xa8d   : > { %7052 = vmatprep.subr.bf16.mxu1 %v7803_v15  ;;  %v2932_v59 = vld [vmem:[%s9279_s18] sm:$0xff] }
 0xa8e   : > { %6708 = vmatmul.mubr.msk.f32.vlgmr.msra.gmra.mrb[0].mxu0 %vm2648_vm6, %v8633_v30  ;;  %s9281_s16 = scalar_lea.vmem %s9280_s14, %s8349_s2 }
 0xa8f   : > { %7048 = vmatpush3.bf16.msra.mxu0 %v7047_v31  ;;  %6719 = vmatmul.mubr.msk.f32.vlgmr.msra.gmra.mrb[0].mxu1 %vm2648_vm6, %v8633_v30 }
 0xa90   : > { %7049 = vmatprep.subr.bf16.mxu0 %v7803_v15  ;;  %7054 = vmatpush3.bf16.msra.mxu1 %v7053_v32 }
 0xa91   : > { %6729 = vmatprep.mubr.msk.f32.mxu0 %vm7804_vm5, %v7805_v20  ;;  %7055 = vmatprep.subr.bf16.mxu1 %v7803_v15 }
 0xa92   : > { %6740 = vmatprep.mubr.msk.f32.mxu1 %vm7804_vm5, %v7805_v20 }
 0xa93   : > { %7051 = vmatpush3.bf16.msra.mxu0 %v7050_v37 }
 0xa94   : > { %7057 = vmatpush3.bf16.msra.mxu1 %v7056_v38  ;;  %6743 = vmatprep.subr.mxu0 %v7805_v20 }
 0xa95   : > { %6758 = vmatprep.subr.mxu1 %v7805_v20 }
 0xa96   : > { %6730 = vmatmul.mubr.msk.f32.vlgmr.msra.gmra.mrb[2].mxu0 %vm2648_vm6, %v8633_v30 }
 0xa97   : > { %6741 = vmatmul.mubr.msk.f32.vlgmr.msra.gmra.mrb[2].mxu1 %vm2648_vm6, %v8633_v30  ;;  %6745 = vmatprep.mubr.msk.f32.mxu0 %vm7804_vm5, %v7805_v20 }
 0xa98   : > { %6760 = vmatprep.mubr.msk.f32.mxu1 %vm7804_vm5, %v7805_v20 }
 0xb61   : > { %v2718_v40 = vpop.f32.mrb[0].mxu0 }
 0xb62   : > { %v2719_v42 = vadd.f32 %v8678_v39, %v2718_v40  ;;  %v6709_v43 = vpop.f32.mrb[1].mxu0  ;;  %v2788_v44 = vpop.f32.mrb[0].mxu1 }
 0xb63   : > { %v6720_v5 = vpop.f32.mrb[1].mxu1  ;;  %v8685_v45 = vadd.f32 %v8681_v41, %v2788_v44 }
 0xb64   : > { %2934 = vrot.lane.b32.xlu0 %v2719_v42, %s7806_s19 }
 0xb68   : > { %3012 = vrot.lane.b32.xlu0 %v8685_v45, %s7806_s19 }
 0xb69   : > { %v2858_v47 = vpop.f32.mrb[2].mxu0 }
 0xb6a   : > { %v8697_v49 = vadd.f32 %v8689_v46, %v2858_v47  ;;  %v6731_v50 = vpop.f32.mrb[3].mxu0  ;;  %v2928_v51 = vpop.f32.mrb[2].mxu1 }
 0xb6b   : > { %v6742_v52 = vpop.f32.mrb[3].mxu1  ;;  %v8700_v53 = vadd.f32 %v8694_v48, %v2928_v51 }
 0xb6c   : > { %3089 = vrot.lane.b32.xlu1 %v8697_v49, %s7806_s19 }
 0xb70   : > { %3166 = vrot.lane.b32.xlu1 %v8700_v53, %s7806_s19 }
 0xbd6   : > { %v2935_v54 = vpop.permute.xlu0 %2934 }
 0xbd7   : > { %6744 = vmatpush3.xpose.msk.msra.mxu0 %vm2936_vm7, %v2935_v54 }
 0xbd8   : > { %6748 = vmatprep.subr.mxu0 %v7805_v20 }
 0xbda   : > { %6746 = vmatmul.mubr.msk.f32.vlgmr.msra.gmra.mrb[4].mxu0 %vm2936_vm7, %v2719_v42  ;;  %v3013_v55 = vpop.permute.xlu0 %3012 }
 0xbdb   : > { %6749 = vmatpush3.xpose.msk.msra.mxu0 %vm2936_vm7, %v3013_v55  ;;  %6750 = vmatprep.mubr.msk.f32.mxu0 %vm7804_vm5, %v7805_v20 }
 0xbdc   : > { %6753 = vmatprep.subr.mxu0 %v7805_v20 }
 0xbde   : > { %6751 = vmatmul.mubr.msk.f32.vlgmr.msra.gmra.mrb[6].mxu0 %vm2936_vm7, %v8685_v45  ;;  %v3090_v56 = vpop.permute.xlu1 %3089 }
 0xbdf   : > { %6754 = vmatpush3.xpose.msk.msra.mxu0 %vm2936_vm7, %v3090_v56  ;;  %6755 = vmatprep.mubr.msk.f32.mxu0 %vm7804_vm5, %v7805_v20 }
 0xbe0   : > { %6763 = vmatprep.subr.mxu0 %v7805_v20 }
 0xbe2   : > { %6756 = vmatmul.mubr.msk.f32.vlgmr.msra.gmra.mrb[8].mxu0 %vm2936_vm7, %v8697_v49  ;;  %v3167_v58 = vpop.permute.xlu1 %3166 }
 0xbe3   : > { %6759 = vmatpush3.xpose.msk.msra.mxu1 %vm2936_vm7, %v3167_v58  ;;  %6765 = vmatprep.mubr.msk.f32.mxu0 %vm7804_vm5, %v7805_v20 }
 0xbe4   : > { %6768 = vmatprep.subr.mxu1 %v7805_v20 }
 0xbe6   : > { %6761 = vmatmul.mubr.msk.f32.vlgmr.msra.gmra.mrb[4].mxu1 %vm2936_vm7, %v8700_v53 }
 0xbe7   : > { %6770 = vmatprep.mubr.msk.f32.mxu1 %vm7804_vm5, %v7805_v20 }
 0xcad   : > { %v3007_v60 = vpop.f32.mrb[4].mxu0 }
 0xcae   : > { %v3008_v61 = vadd.f32 %v3007_v60, %v2932_v59  ;;  %v6747_v62 = vpop.f32.mrb[5].mxu0 }
 0xcb0   : > { %v3242_v63 = vsel %vm2936_vm7, %v3008_v61, -inf }
 0xcb1   : > { %3243 = vmax.xlane.f32.xlu0 %v3242_v63  ;;  %v3084_v0 = vpop.f32.mrb[6].mxu0 }
 0xcb2   : > { %v3085_v1 = vadd.f32 %v3084_v0, %v2932_v59  ;;  %v6752_v11 = vpop.f32.mrb[7].mxu0 }
 0xcb4   : > { %v3245_v3 = vsel %vm2936_vm7, %v3085_v1, -inf }
 0xcb5   : > { %3246 = vmax.xlane.f32.xlu1 %v3245_v3  ;;  %v3161_v4 = vpop.f32.mrb[8].mxu0 }
 0xcb6   : > { %v3162_v6 = vadd.f32 %v3161_v4, %v2932_v59  ;;  %v6757_v7 = vpop.f32.mrb[9].mxu0 }
 0xcb8   : > { %v3248_v8 = vsel %vm2936_vm7, %v3162_v6, -inf }
 0xcb9   : > { %v3238_v9 = vpop.f32.mrb[4].mxu1  ;;  %3249 = vmax.xlane.f32.xlu0 %v3248_v8  ;;  %v8766_v8 = vld [vmem:[%s8389_s25] sm:$0xff] }
 0xcba   : > { %v3239_v10 = vadd.f32 %v3238_v9, %v2932_v59  ;;  %v6762_v12 = vpop.f32.mrb[5].mxu1  ;;  %v8771_v9 = vld [vmem:[%s8389_s25 + $0x8] sm:$0xff] }
 0xcbc   : > { %v3251_v13 = vsel %vm2936_vm7, %v3239_v10, -inf }
 0xcbd   : > { %3252 = vmax.xlane.f32.xlu0 %v3251_v13 }
 0xcc6   : > { %3286 = vrot.lane.b32.xlu1 %v2719_v42, %s7807_s1 }
 0xd3e   : > { %v3244_v16 = vpop.xlane.xlu0 %3243 }
 0xd3f   : > { %v3254_v21 = vsub.f32 %v3008_v61, %v3244_v16  ;;  %v8783_v16 = vld [vmem:[%s8389_s25 + $0x18] sm:$0xff] }
 0xd41   : > { %v3258_v24 = vmul.f32 1.442695, %v3254_v21 }
 0xd42   : > { %v3247_v25 = vpop.xlane.xlu1 %3246 }
 0xd43   : > { %7406 = vpow2.f32 %v3258_v24  ;;  %v3255_v31 = vsub.f32 %v3085_v1, %v3247_v25 }
 0xd45   : > { %v3260_v32 = vmul.f32 1.442695, %v3255_v31 }
 0xd46   : > { %v3287_v37 = vpop.permute.xlu1 %3286  ;;  %v3250_v38 = vpop.xlane.xlu0 %3249 }
 0xd47   : > { %7408 = vpow2.f32 %v3260_v32  ;;  %v3256_v40 = vsub.f32 %v3162_v6, %v3250_v38  ;;  %6764 = vmatpush3.msra.mxu0 %v3287_v37  ;;  %v8799_v38 = vpack.i.bf16 %v8595_v17, %v8588_v14 }
 0xd48   : > { %6773 = vmatprep.subr.mxu0 %v7805_v20 }
 0xd49   : > { %v3262_v43 = vmul.f32 1.442695, %v3256_v40  ;;  %v8805_v40 = vpack.i.bf16 %v8611_v23, %v8608_v22 }
 0xd4a   : > { %v3253_v44 = vpop.xlane.xlu0 %3252 }
 0xd4b   : > { %7410 = vpow2.f32 %v3262_v43  ;;  %v3257_v5 = vsub.f32 %v3239_v10, %v3253_v44  ;;  %v8776_v10 = vld [vmem:[%s8389_s25 + $0x10] sm:$0xff]  ;;  %v3889_v44 = vlaneseq }
 0xd4d   : > { %v7407_v47 = vpop.eup %7406  ;;  %v3264_v42 = vmul.f32 1.442695, %v3257_v5 }
 0xd4e   : > { %v3266_v50 = vsel %vm2936_vm7, %v7407_v47, 0.0 }
 0xd4f   : > { %7412 = vpow2.f32 %v3264_v42  ;;  %3267 = vadd.xlane.f32.xlu1 %v3266_v50  ;;  %v8809_v42 = vshrl.u32 %v3889_v44, 7 }
 0xd51   : > { %v7409_v51 = vpop.eup %7408 }
 0xd52   : > { %v3269_v52 = vsel %vm2936_vm7, %v7409_v51, 0.0 }
 0xd53   : > { %3270 = vadd.xlane.f32.xlu0 %v3269_v52 }
 0xd55   : > { %v7411_v54 = vpop.eup %7410 }
 0xd56   : > { %v3272_v55 = vsel %vm2936_vm7, %v7411_v54, 0.0 }
 0xd57   : > { %3273 = vadd.xlane.f32.xlu1 %v3272_v55  ;;  %v8816_v55 = vld [vmem:[%s8333_s12] sm:$0xff] }
 0xd59   : > { %v7413_v56 = vpop.eup %7412 }
 0xd5a   : > { %v3275_v58 = vsel %vm2936_vm7, %v7413_v56, 0.0 }
 0xd5b   : > { %3276 = vadd.xlane.f32.xlu0 %v3275_v58 }
 0xd68   : > { %3438 = vrot.lane.b32.xlu1 %v8697_v49, %s7807_s1 }
 0xd6c   : > { %3514 = vrot.lane.b32.xlu1 %v8700_v53, %s7807_s1 }
 0xd70   : > { %7332 = vrot.lane.b32.xlu1 %v8799_v38, %s7808_s8 }
 0xd71   : > { %3362 = vrot.lane.b32.xlu0 %v8685_v45, %s7807_s1 }
 0xd74   : > { %7342 = vrot.lane.b32.xlu1 %v8805_v40, %s7808_s8 }
 0xddc   : > { %v3268_v59 = vpop.xlane.xlu1 %3267 }
 0xddd   : > { %7414 = vrcp.f32 %v3268_v59 }
 0xde0   : > { %v3271_v60 = vpop.xlane.xlu0 %3270 }
 0xde1   : > { %7416 = vrcp.f32 %v3271_v60 }
 0xde4   : > { %v3274_v61 = vpop.xlane.xlu1 %3273 }
 0xde5   : > { %7418 = vrcp.f32 %v3274_v61 }
 0xde7   : > { %v7415_v62 = vpop.eup %7414 }
 0xde8   : > { %v3282_v63 = vmul.f32 %v7415_v62, %v7407_v47  ;;  %v3439_v0 = vpop.permute.xlu1 %3438  ;;  %v3277_v1 = vpop.xlane.xlu0 %3276 }
 0xde9   : > { %7420 = vrcp.f32 %v3277_v1 }
 0xdea   : > { %6766 = vmatmul.mubr.msk.f32.vlgmr.msra.gmra.mrb[10].mxu0 %vm2936_vm7, %v3282_v63 }
 0xdeb   : > { %v7417_v49 = vpop.eup %7416  ;;  %6774 = vmatpush3.msra.mxu0 %v3439_v0  ;;  %6775 = vmatprep.mubr.msk.f32.mxu0 %vm7804_vm5, %v7805_v20 }
 0xdec   : > { %v3283_v53 = vmul.f32 %v7417_v49, %v7409_v51  ;;  %v3363_v45 = vpop.permute.xlu0 %3362  ;;  %6783 = vmatprep.subr.mxu0 %v7805_v20  ;;  %v3515_v11 = vpop.permute.xlu1 %3514  ;;  %v7326_v49 = vpack.i.bf16 %v8585_v2, %v8582_v57 }
 0xded   : > { %6769 = vmatpush3.msra.mxu1 %v3363_v45  ;;  %v7346_v45 = vpack.i.bf16 %v8624_v27, %v8621_v26 }
 0xdee   : > { %6771 = vmatmul.mubr.msk.f32.vlgmr.msra.gmra.mrb[6].mxu1 %vm2936_vm7, %v3283_v53  ;;  %6778 = vmatprep.subr.mxu1 %v7805_v20  ;;  %v7336_v53 = vpack.i.bf16 %v8601_v19, %v8598_v18 }
 0xdef   : > { %v7419_v3 = vpop.eup %7418  ;;  %6779 = vmatpush3.msra.mxu1 %v3515_v11  ;;  %6780 = vmatprep.mubr.msk.f32.mxu1 %vm7804_vm5, %v7805_v20 }
 0xdf0   : > { %v3284_v4 = vmul.f32 %v7419_v3, %v7411_v54  ;;  %6788 = vmatprep.subr.mxu1 %v7805_v20  ;;  %v3891_v54 = vsub.s32 0, %v8809_v42  ;;  %v7333_v57 = vpop.permute.xlu1 %7332 }
 0xdf1   : > { %v7335_v2 = vunpack.i.h.bf16 %v7333_v57  ;;  %v7334_v18 = vunpack.i.l.bf16 %v7333_v57 }
 0xdf2   : > { %6776 = vmatmul.mubr.msk.f32.vlgmr.msra.gmra.mrb[12].mxu0 %vm2936_vm7, %v3284_v4  ;;  %v3892_v59 = vrot.slane %v8816_v55, %v3891_v54 }
 0xdf3   : > { %v7421_v6 = vpop.eup %7420  ;;  %6785 = vmatprep.mubr.msk.f32.mxu0 %vm7804_vm5, %v7805_v20  ;;  %6784 = vmatpush3.msra.mxu0 %v8766_v8  ;;  %v7065_v19 = vpack.c.bf16 %v7335_v2, %v7334_v18 }
 0xdf4   : > { %v3285_v7 = vmul.f32 %v7421_v6, %v7413_v56  ;;  %6793 = vmatprep.subr.mxu0 %v7805_v20  ;;  %v7343_v26 = vpop.permute.xlu1 %7342 }
 0xdf5   : > { %v7345_v27 = vunpack.i.h.bf16 %v7343_v26 }
 0xdf6   : > { %6781 = vmatmul.mubr.msk.f32.vlgmr.msra.gmra.mrb[8].mxu1 %vm2936_vm7, %v3285_v7 }
 0xdf7   : > { %6790 = vmatprep.mubr.msk.f32.mxu1 %vm7804_vm5, %v7805_v20  ;;  %6789 = vmatpush3.msra.mxu1 %v8771_v9 }
 0xdf8   : > { %6798 = vmatprep.subr.mxu1 %v7805_v20 }
 0xebd   : > { %v3358_v12 = vpop.f32.mrb[10].mxu0 }
 0xebe   : > { %v6767_v13 = vpop.f32.mrb[11].mxu0  ;;  %6786 = vmatmul.mubr.msk.f32.vlgmr.msra.gmra.mrb[14].mxu0 %vm2936_vm7, %v3358_v12  ;;  %v7361_v12 = vpack.i.bf16 %v8651_v36, %v8648_v35 }
 0xebf   : > { %6794 = vmatpush3.msra.mxu0 %v8776_v10  ;;  %6795 = vmatprep.mubr.msk.f32.mxu0 %vm7804_vm5, %v7805_v20 }
 0xec0   : > { %7058 = vmatprep.subr.bf16.mxu0 %v7803_v15 }
 0xec1   : > { %v3434_v21 = vpop.f32.mrb[6].mxu1 }
 0xec2   : > { %v6772_v24 = vpop.f32.mrb[7].mxu1  ;;  %6791 = vmatmul.mubr.msk.f32.vlgmr.msra.gmra.mrb[10].mxu1 %vm2936_vm7, %v3434_v21 }
 0xec3   : > { %6799 = vmatpush3.msra.mxu1 %v8783_v16  ;;  %6800 = vmatprep.mubr.msk.f32.mxu1 %vm7804_vm5, %v7805_v20 }
 0xec4   : > { %7064 = vmatprep.subr.bf16.mxu1 %v7803_v15 }
 0xec5   : > { %v3510_v25 = vpop.f32.mrb[12].mxu0 }
 0xec6   : > { %v6777_v31 = vpop.f32.mrb[13].mxu0  ;;  %6796 = vmatmul.mubr.msk.f32.vlgmr.msra.gmra.mrb[16].mxu0 %vm2936_vm7, %v3510_v25 }
 0xec7   : > { %6811 = vmatprep.mubr.msk.f32.mxu0 %vm7804_vm5, %v7805_v20 }
 0xec9   : > { %v3586_v32 = vpop.f32.mrb[8].mxu1 }
 0xeca   : > { %v6782_v37 = vpop.f32.mrb[9].mxu1  ;;  %6801 = vmatmul.mubr.msk.f32.vlgmr.msra.gmra.mrb[12].mxu1 %vm2936_vm7, %v3586_v32 }
 0xecb   : > { %6822 = vmatprep.mubr.msk.f32.mxu1 %vm7804_vm5, %v7805_v20  ;;  %7066 = vmatpush3.bf16.msra.mxu1 %v7065_v19 }
 0xecc   : > { %7067 = vmatprep.subr.bf16.mxu1 %v7803_v15 }
 0xf91   : > { %v3659_v43 = vpop.f32.mrb[14].mxu0 }
 0xf92   : > { %v6787_v5 = vpop.f32.mrb[15].mxu0  ;;  %v3882_v14 = vsel %vm2648_vm6, %v3659_v43, 0.0 }
 0xf93   : > { %v3911_v5 = vsub.s32 4, %v8809_v42 }
 0xf95   : > { %v3732_v47 = vpop.f32.mrb[10].mxu1 }
 0xf96   : > { %v3883_v17 = vsel %vm2648_vm6, %v3732_v47, 0.0  ;;  %v6792_v50 = vpop.f32.mrb[11].mxu1 }
 0xf97   : > { %v3884_v51 = vadd.f32 %v3883_v17, %v3882_v14  ;;  %v3912_v17 = vrot.slane %v8816_v55, %v3911_v5 }
 0xf99   : > { %v3805_v52 = vpop.f32.mrb[16].mxu0 }
 0xf9a   : > { %v3885_v22 = vsel %vm2648_vm6, %v3805_v52, 0.0  ;;  %v6797_v23 = vpop.f32.mrb[17].mxu0 }
 0xf9b   : > { %v3886_v56 = vadd.f32 %v3885_v22, %v3884_v51 }
 0xf9d   : > { %v3878_v58 = vpop.f32.mrb[12].mxu1 }
 0xf9e   : > { %v3887_v60 = vsel %vm2648_vm6, %v3878_v58, 0.0  ;;  %v6802_v61 = vpop.f32.mrb[13].mxu1 }
 0xf9f   : > { %v3888_v62 = vadd.f32 %v3887_v60, %v3886_v56 }
 0xfa1   : > { %v3893_v63 = vadd.f32 %v3892_v59, %v3888_v62 }
 0xfa3   : > { %v3894_v0 = vadd.f32 %v3893_v63, %v8633_v30  ;;  %v7356_v30 = vpack.i.bf16 %v8644_v34, %v8641_v33  ;;  %v7344_v33 = vunpack.i.l.bf16 %v7343_v26 }
 0xfa5   : > { %v3895_v1 = vsel %vm2648_vm6, %v3894_v0, 0.0  ;;  %v7068_v34 = vpack.c.bf16 %v7345_v27, %v7344_v33 }
 0xfa6   : > { %3896 = vadd.xlane.f32.xlu0 %v3895_v1 }
 0xfa7   : > { %7069 = vmatpush3.bf16.msra.mxu1 %v7068_v34 }
 0xfa8   : > { %7076 = vmatprep.subr.bf16.mxu1 %v7803_v15 }
 0xfbc   : > { %7327 = vrot.lane.b32.xlu0 %v7326_v49, %s7808_s8 }
 0xfc0   : > { %7337 = vrot.lane.b32.xlu0 %v7336_v53, %s7808_s8 }
 0xfc4   : > { %7347 = vrot.lane.b32.xlu0 %v7346_v45, %s7808_s8 }
 0xfc8   : > { %7357 = vrot.lane.b32.xlu0 %v7356_v30, %s7808_s8 }
 0xfcc   : > { %7367 = vrot.lane.b32.xlu0 %v7326_v49, %s7809_s13 }
 0xfd0   : > { %7377 = vrot.lane.b32.xlu0 %v7336_v53, %s7809_s13 }
 0xfd4   : > { %7387 = vrot.lane.b32.xlu0 %v7346_v45, %s7809_s13 }
 0xfd8   : > { %7397 = vrot.lane.b32.xlu0 %v7356_v30, %s7809_s13 }
 0xfdc   : > { %4290 = vrot.lane.b32.xlu0 %v8678_v39, %s7809_s13 }
 0xfe0   : > { %3935 = vrot.lane.b32.xlu0 %v8678_v39, %s7808_s8  ;;  %v7351_v39 = vpack.i.bf16 %v8631_v29, %v8628_v28 }
 0xfe4   : > { %4027 = vrot.lane.b32.xlu0 %v8681_v41, %s7808_s8 }
 0xfe8   : > { %4116 = vrot.lane.b32.xlu0 %v8689_v46, %s7808_s8 }
0x1033   : > { %v3897_v11 = vpop.xlane.xlu0 %3896 }
0x1034   : > { %v3899_v3 = vmul.f32 0.03125, %v3897_v11 }
0x1036   : > { %v3900_v4 = vsub.f32 %v3894_v0, %v3899_v3 }
0x1037   : > { %v7328_v13 = vpop.permute.xlu0 %7327 }
0x1038   : > { %v3901_v6 = vmul.f32 %v3900_v4, %v3900_v4  ;;  %v7330_v21 = vunpack.i.h.bf16 %v7328_v13  ;;  %v7329_v24 = vunpack.i.l.bf16 %v7328_v13 }
0x103a   : > { %v3902_v7 = vsel %vm2648_vm6, %v3901_v6, 0.0  ;;  %v7059_v25 = vpack.c.bf16 %v7330_v21, %v7329_v24 }
0x103b   : > { %3903 = vadd.xlane.f32.xlu1 %v3902_v7  ;;  %v7338_v31 = vpop.permute.xlu0 %7337 }
0x103c   : > { %v7340_v32 = vunpack.i.h.bf16 %v7338_v31  ;;  %v7339_v37 = vunpack.i.l.bf16 %v7338_v31  ;;  %7060 = vmatpush3.bf16.msra.mxu0 %v7059_v25 }
0x103d   : > { %7061 = vmatprep.subr.bf16.mxu0 %v7803_v15 }
0x103e   : > { %v7062_v28 = vpack.c.bf16 %v7340_v32, %v7339_v37 }
0x103f   : > { %v7348_v36 = vpop.permute.xlu0 %7347 }
0x1040   : > { %7063 = vmatpush3.bf16.msra.mxu0 %v7062_v28  ;;  %v7349_v14 = vunpack.i.l.bf16 %v7348_v36 }
0x1041   : > { %7070 = vmatprep.subr.bf16.mxu0 %v7803_v15 }
0x1043   : > { %v7358_v43 = vpop.permute.xlu0 %7357 }
0x1044   : > { %v7360_v58 = vunpack.i.h.bf16 %v7358_v43  ;;  %v7359_v63 = vunpack.i.l.bf16 %v7358_v43 }
0x1046   : > { %v7074_v57 = vpack.c.bf16 %v7360_v58, %v7359_v63 }
0x1047   : > { %v7368_v47 = vpop.permute.xlu0 %7367 }
0x1048   : > { %v7370_v53 = vunpack.i.h.bf16 %v7368_v47  ;;  %v7369_v45 = vunpack.i.l.bf16 %v7368_v47 }
0x104a   : > { %v7083_v26 = vpack.c.bf16 %v7370_v53, %v7369_v45 }
0x104b   : > { %v7378_v0 = vpop.permute.xlu0 %7377 }
0x104c   : > { %7352 = vrot.lane.b32.xlu1 %v7351_v39, %s7808_s8  ;;  %v7380_v27 = vunpack.i.h.bf16 %v7378_v0 }
0x104f   : > { %v7388_v19 = vpop.permute.xlu0 %7387 }
0x1050   : > { %7362 = vrot.lane.b32.xlu1 %v7361_v12, %s7808_s8  ;;  %v7390_v6 = vunpack.i.h.bf16 %v7388_v19  ;;  %v7389_v7 = vunpack.i.l.bf16 %v7388_v19 }
0x1052   : > { %v7095_v31 = vpack.c.bf16 %v7390_v6, %v7389_v7 }
0x1053   : > { %v7398_v24 = vpop.permute.xlu0 %7397 }
0x1054   : > { %7372 = vrot.lane.b32.xlu1 %v8799_v38, %s7809_s13  ;;  %v7400_v32 = vunpack.i.h.bf16 %v7398_v24 }
0x1057   : > { %v4291_v43 = vpop.permute.xlu0 %4290 }
0x1058   : > { %7382 = vrot.lane.b32.xlu1 %v8805_v40, %s7809_s13 }
0x105c   : > { %7392 = vrot.lane.b32.xlu1 %v7351_v39, %s7809_s13 }
0x1060   : > { %7402 = vrot.lane.b32.xlu1 %v7361_v12, %s7809_s13 }
0x1064   : > { %4378 = vrot.lane.b32.xlu1 %v8681_v41, %s7809_s13  ;;  %v3916_v41 = vsub.s32 5, %v8809_v42 }
0x1066   : > { %v3917_v23 = vrot.slane %v8816_v55, %v3916_v41 }
0x1068   : > { %4463 = vrot.lane.b32.xlu1 %v8689_v46, %s7809_s13  ;;  %v7350_v46 = vunpack.i.h.bf16 %v7348_v36  ;;  %v7399_v36 = vunpack.i.l.bf16 %v7398_v24 }
0x106a   : > { %v7071_v56 = vpack.c.bf16 %v7350_v46, %v7349_v14  ;;  %v3936_v14 = vpop.permute.xlu0 %3935 }
0x106c   : > { %4548 = vrot.lane.b32.xlu1 %v8694_v48, %s7809_s13 }
0x1070   : > { %4205 = vrot.lane.b32.xlu1 %v8694_v48, %s7808_s8 }
0x10c8   : > { %v3904_v29 = vpop.xlane.xlu1 %3903 }
0x10c9   : > { %v3905_v35 = vmul.f32 0.03125, %v3904_v29 }
0x10cb   : > { %v3906_v38 = vadd.f32 1e-06, %v3905_v35  ;;  %v2597_v35 = vld [vmem:[#allocation2] sm:$0xff] }
0x10cc   : > { %v7353_v40 = vpop.permute.xlu1 %7352 }
0x10cd   : > { %7422 = vrsqrt.f32 %v3906_v38  ;;  %v7355_v48 = vunpack.i.h.bf16 %v7353_v40  ;;  %v7354_v52 = vunpack.i.l.bf16 %v7353_v40  ;;  %v7098_v40 = vpack.c.bf16 %v7400_v32, %v7399_v36 }
0x10cf   : > { %v7077_v60 = vpack.c.bf16 %v7355_v48, %v7354_v52 }
0x10d0   : > { %v7363_v44 = vpop.permute.xlu1 %7362 }
0x10d1   : > { %v7365_v61 = vunpack.i.h.bf16 %v7363_v44  ;;  %v7364_v62 = vunpack.i.l.bf16 %v7363_v44 }
0x10d3   : > { %v7080_v30 = vpack.c.bf16 %v7365_v61, %v7364_v62 }
0x10d4   : > { %v7373_v50 = vpop.permute.xlu1 %7372 }
0x10d5   : > { %v7375_v2 = vunpack.i.h.bf16 %v7373_v50  ;;  %v7374_v18 = vunpack.i.l.bf16 %v7373_v50 }
0x10d7   : > { %v7423_v51 = vpop.eup %7422  ;;  %v7089_v34 = vpack.c.bf16 %v7375_v2, %v7374_v18 }
0x10d8   : > { %v3908_v22 = vmul.f32 %v7423_v51, %v3900_v4  ;;  %v7383_v49 = vpop.permute.xlu1 %7382  ;;  %v7379_v4 = vunpack.i.l.bf16 %v7378_v0 }
0x10d9   : > { %v7385_v11 = vunpack.i.h.bf16 %v7383_v49  ;;  %v7384_v3 = vunpack.i.l.bf16 %v7383_v49 }
0x10da   : > { %v3913_v59 = vmul.f32 %v3912_v17, %v3908_v22  ;;  %v7086_v12 = vpack.c.bf16 %v7380_v27, %v7379_v4  ;;  %v4028_v22 = vpop.permute.xlu0 %4027 }
0x10db   : > { %v7092_v39 = vpack.c.bf16 %v7385_v11, %v7384_v3 }
0x10dc   : > { %v8877_v1 = vadd.f32 %v3917_v23, %v3913_v59  ;;  %v7393_v33 = vpop.permute.xlu1 %7392 }
0x10dd   : > { %v7395_v13 = vunpack.i.h.bf16 %v7393_v33  ;;  %v7394_v21 = vunpack.i.l.bf16 %v7393_v33  ;;  %v4621_v33 = vld [vmem:[%s9281_s16] sm:$0xff] }
0x10de   : > { %6812 = vmatmul.mubr.msk.f32.vlgmr.msra.gmra.mrb[18].mxu0 %vm2648_vm6, %v8877_v1  ;;  %6823 = vmatmul.mubr.msk.f32.vlgmr.msra.gmra.mrb[14].mxu1 %vm2648_vm6, %v8877_v1  ;;  %v4117_v53 = vpop.permute.xlu0 %4116 }
0x10df   : > { %7072 = vmatpush3.bf16.msra.mxu0 %v7071_v56  ;;  %7078 = vmatpush3.bf16.msra.mxu1 %v7077_v60  ;;  %v7101_v37 = vpack.c.bf16 %v7395_v13, %v7394_v21 }
0x10e0   : > { %7079 = vmatprep.subr.bf16.mxu1 %v7803_v15  ;;  %7073 = vmatprep.subr.bf16.mxu0 %v7803_v15  ;;  %v7403_v25 = vpop.permute.xlu1 %7402 }
0x10e1   : > { %6833 = vmatprep.mubr.msk.f32.mxu0 %vm7804_vm5, %v7805_v20  ;;  %6844 = vmatprep.mubr.msk.f32.mxu1 %vm7804_vm5, %v7805_v20  ;;  %v7405_v28 = vunpack.i.h.bf16 %v7403_v25  ;;  %v7404_v29 = vunpack.i.l.bf16 %v7403_v25 }
0x10e3   : > { %7075 = vmatpush3.bf16.msra.mxu0 %v7074_v57  ;;  %7081 = vmatpush3.bf16.msra.mxu1 %v7080_v30  ;;  %v7104_v38 = vpack.c.bf16 %v7405_v28, %v7404_v29 }
0x10e4   : > { %7088 = vmatprep.subr.bf16.mxu1 %v7803_v15  ;;  %7082 = vmatprep.subr.bf16.mxu0 %v7803_v15  ;;  %v4379_v44 = vpop.permute.xlu1 %4378 }
0x10e6   : > { %6845 = vmatmul.mubr.msk.f32.vlgmr.msra.gmra.mrb[16].mxu1 %vm2648_vm6, %v8877_v1  ;;  %6834 = vmatmul.mubr.msk.f32.vlgmr.msra.gmra.mrb[20].mxu0 %vm2648_vm6, %v8877_v1 }
0x10e7   : > { %7084 = vmatpush3.bf16.msra.mxu0 %v7083_v26  ;;  %7090 = vmatpush3.bf16.msra.mxu1 %v7089_v34 }
0x10e8   : > { %7091 = vmatprep.subr.bf16.mxu1 %v7803_v15  ;;  %7085 = vmatprep.subr.bf16.mxu0 %v7803_v15  ;;  %v4464_v17 = vpop.permute.xlu1 %4463 }
0x10e9   : > { %6855 = vmatprep.mubr.msk.f32.mxu0 %vm7804_vm5, %v7805_v20  ;;  %6866 = vmatprep.mubr.msk.f32.mxu1 %vm7804_vm5, %v7805_v20 }
0x10eb   : > { %7087 = vmatpush3.bf16.msra.mxu0 %v7086_v12  ;;  %7093 = vmatpush3.bf16.msra.mxu1 %v7092_v39 }
0x10ec   : > { %7100 = vmatprep.subr.bf16.mxu1 %v7803_v15  ;;  %7094 = vmatprep.subr.bf16.mxu0 %v7803_v15  ;;  %v4549_v23 = vpop.permute.xlu1 %4548 }
0x10ee   : > { %6867 = vmatmul.mubr.msk.f32.vlgmr.msra.gmra.mrb[18].mxu1 %vm2648_vm6, %v2597_v35  ;;  %6856 = vmatmul.mubr.msk.f32.vlgmr.msra.gmra.mrb[22].mxu0 %vm2648_vm6, %v2597_v35 }
0x10ef   : > { %7096 = vmatpush3.bf16.msra.mxu0 %v7095_v31  ;;  %7102 = vmatpush3.bf16.msra.mxu1 %v7101_v37 }
0x10f0   : > { %7097 = vmatprep.subr.bf16.mxu0 %v7803_v15  ;;  %7103 = vmatprep.subr.bf16.mxu1 %v7803_v15  ;;  %v4206_v49 = vpop.permute.xlu1 %4205 }
0x10f1   : > { %6877 = vmatprep.mubr.msk.f32.mxu0 %vm7804_vm5, %v7805_v20  ;;  %6888 = vmatprep.mubr.msk.f32.mxu1 %vm7804_vm5, %v7805_v20 }
0x10f3   : > { %7099 = vmatpush3.bf16.msra.mxu0 %v7098_v40  ;;  %7105 = vmatpush3.bf16.msra.mxu1 %v7104_v38 }
0x10f4   : > { %6891 = vmatprep.subr.mxu0 %v7805_v20  ;;  %6896 = vmatprep.subr.mxu1 %v7805_v20 }
0x10f6   : > { %6878 = vmatmul.mubr.msk.f32.vlgmr.msra.gmra.mrb[24].mxu0 %vm2648_vm6, %v2597_v35  ;;  %6889 = vmatmul.mubr.msk.f32.vlgmr.msra.gmra.mrb[20].mxu1 %vm2648_vm6, %v2597_v35 }
0x10f7   : > { %6893 = vmatprep.mubr.msk.f32.mxu0 %vm7804_vm5, %v7805_v20  ;;  %6898 = vmatprep.mubr.msk.f32.mxu1 %vm7804_vm5, %v7805_v20 }
0x11b1   : > { %v4096_v5 = vpop.f32.mrb[14].mxu1  ;;  %v4007_v41 = vpop.f32.mrb[18].mxu0 }
0x11b2   : > { %v6813_v47 = vpop.f32.mrb[19].mxu0  ;;  %v6824_v46 = vpop.f32.mrb[15].mxu1  ;;  %v4097_v63 = vadd.f32 %v4096_v5, %v4028_v22  ;;  %v4008_v0 = vadd.f32 %v4007_v41, %v3936_v14 }
0x11b9   : > { %v4274_v50 = vpop.f32.mrb[16].mxu1  ;;  %v4185_v51 = vpop.f32.mrb[20].mxu0 }
0x11ba   : > { %v6835_v48 = vpop.f32.mrb[21].mxu0  ;;  %v6846_v52 = vpop.f32.mrb[17].mxu1  ;;  %v4275_v26 = vadd.f32 %v4274_v50, %v4206_v49  ;;  %v4186_v27 = vadd.f32 %v4185_v51, %v4117_v53 }
0x11c1   : > { %v4362_v56 = vpop.f32.mrb[22].mxu0  ;;  %v4447_v58 = vpop.f32.mrb[18].mxu1 }
0x11c2   : > { %v4363_v59 = vadd.f32 %v4362_v56, %v4291_v43  ;;  %v8919_v60 = vadd.f32 %v4447_v58, %v4379_v44  ;;  %v6857_v61 = vpop.f32.mrb[23].mxu0  ;;  %v6868_v62 = vpop.f32.mrb[19].mxu1 }
0x11c4   : > { %6892 = vmatpush3.xpose.msk.msra.mxu0 %vm2936_vm7, %v4363_v59  ;;  %6897 = vmatpush3.xpose.msk.msra.mxu1 %vm2936_vm7, %v8919_v60 }
0x11c5   : > { %6901 = vmatprep.subr.mxu0 %v7805_v20  ;;  %6906 = vmatprep.subr.mxu1 %v7805_v20 }
0x11c7   : > { %6894 = vmatmul.mubr.msk.f32.vlgmr.msra.gmra.mrb[26].mxu0 %vm2936_vm7, %v4008_v0  ;;  %6899 = vmatmul.mubr.msk.f32.vlgmr.msra.gmra.mrb[22].mxu1 %vm2936_vm7, %v4097_v63 }
0x11c8   : > { %6903 = vmatprep.mubr.msk.f32.mxu0 %vm7804_vm5, %v7805_v20  ;;  %6908 = vmatprep.mubr.msk.f32.mxu1 %vm7804_vm5, %v7805_v20 }
0x11c9   : > { %v4532_v45 = vpop.f32.mrb[24].mxu0  ;;  %v4617_v30 = vpop.f32.mrb[20].mxu1 }
0x11ca   : > { %v8932_v57 = vadd.f32 %v4532_v45, %v4464_v17  ;;  %v8934_v2 = vadd.f32 %v4617_v30, %v4549_v23  ;;  %v6879_v18 = vpop.f32.mrb[25].mxu0  ;;  %v6890_v19 = vpop.f32.mrb[21].mxu1 }
0x11cc   : > { %6902 = vmatpush3.xpose.msk.msra.mxu0 %vm2936_vm7, %v8932_v57  ;;  %6907 = vmatpush3.xpose.msk.msra.mxu1 %vm2936_vm7, %v8934_v2 }
0x11cd   : > { %6911 = vmatprep.subr.mxu0 %v7805_v20  ;;  %6916 = vmatprep.subr.mxu1 %v7805_v20 }
0x11cf   : > { %6904 = vmatmul.mubr.msk.f32.vlgmr.msra.gmra.mrb[28].mxu0 %vm2936_vm7, %v4186_v27  ;;  %6909 = vmatmul.mubr.msk.f32.vlgmr.msra.gmra.mrb[24].mxu1 %vm2936_vm7, %v4275_v26 }
0x11d0   : > { %6913 = vmatprep.mubr.msk.f32.mxu0 %vm7804_vm5, %v7805_v20  ;;  %6918 = vmatprep.mubr.msk.f32.mxu1 %vm7804_vm5, %v7805_v20 }
0x129a   : > { %v4694_v34 = vpop.f32.mrb[26].mxu0  ;;  %v4770_v11 = vpop.f32.mrb[22].mxu1 }
0x129b   : > { %v4695_v3 = vadd.f32 %v4694_v34, %v4621_v33  ;;  %v4771_v4 = vadd.f32 %v4770_v11, %v4621_v33  ;;  %v6895_v6 = vpop.f32.mrb[27].mxu0  ;;  %v6900_v7 = vpop.f32.mrb[23].mxu1 }
0x129d   : > { %v4929_v39 = vsel %vm2936_vm7, %v4771_v4, -inf  ;;  %v4926_v12 = vsel %vm2936_vm7, %v4695_v3, -inf }
0x129e   : > { %4930 = vmax.xlane.f32.xlu1 %v4929_v39  ;;  %4927 = vmax.xlane.f32.xlu0 %v4926_v12 }
0x12a2   : > { %v4846_v13 = vpop.f32.mrb[28].mxu0  ;;  %v4922_v21 = vpop.f32.mrb[24].mxu1 }
0x12a3   : > { %v4847_v24 = vadd.f32 %v4846_v13, %v4621_v33  ;;  %v6905_v25 = vpop.f32.mrb[29].mxu0  ;;  %v6910_v31 = vpop.f32.mrb[25].mxu1  ;;  %v4923_v32 = vadd.f32 %v4922_v21, %v4621_v33 }
0x12a5   : > { %v4932_v37 = vsel %vm2936_vm7, %v4847_v24, -inf  ;;  %v4935_v28 = vsel %vm2936_vm7, %v4923_v32, -inf }
0x12a6   : > { %4933 = vmax.xlane.f32.xlu0 %v4932_v37  ;;  %v5591_v37 = vsub.s32 1, %v8809_v42 }
0x12aa   : > { %4936 = vmax.xlane.f32.xlu0 %v4935_v28 }
0x12af   : > { %4970 = vrot.lane.b32.xlu1 %v4363_v59, %s7806_s19 }
0x132b   : > { %v4931_v29 = vpop.xlane.xlu1 %4930  ;;  %v4928_v35 = vpop.xlane.xlu0 %4927 }
0x132c   : > { %v4939_v36 = vsub.f32 %v4771_v4, %v4931_v29  ;;  %v4938_v38 = vsub.f32 %v4695_v3, %v4928_v35 }
0x132e   : > { %v4944_v40 = vmul.f32 1.442695, %v4939_v36  ;;  %v4942_v43 = vmul.f32 1.442695, %v4938_v38 }
0x132f   : > { %v4971_v44 = vpop.permute.xlu1 %4970 }
0x1330   : > { %7424 = vpow2.f32 %v4944_v40  ;;  %6912 = vmatpush3.msra.mxu0 %v4971_v44 }
0x1331   : > { %7426 = vpow2.f32 %v4942_v43  ;;  %6921 = vmatprep.subr.mxu0 %v7805_v20 }
0x1333   : > { %v4934_v5 = vpop.xlane.xlu0 %4933 }
0x1334   : > { %v4940_v41 = vsub.f32 %v4847_v24, %v4934_v5 }
0x1336   : > { %v4946_v47 = vmul.f32 1.442695, %v4940_v41 }
0x1337   : > { %v4937_v46 = vpop.xlane.xlu0 %4936 }
0x1338   : > { %7428 = vpow2.f32 %v4946_v47  ;;  %v4941_v14 = vsub.f32 %v4923_v32, %v4937_v46 }
0x133a   : > { %v7425_v17 = vpop.eup %7424  ;;  %v4948_v50 = vmul.f32 1.442695, %v4941_v14 }
0x133b   : > { %v7427_v51 = vpop.eup %7426  ;;  %v4953_v48 = vsel %vm2936_vm7, %v7425_v17, 0.0 }
0x133c   : > { %7430 = vpow2.f32 %v4948_v50  ;;  %v4950_v52 = vsel %vm2936_vm7, %v7427_v51, 0.0  ;;  %4954 = vadd.xlane.f32.xlu0 %v4953_v48  ;;  %v5619_v48 = vld [vmem:[%s8327_s24 + $0x8] sm:$0xff] }
0x133d   : > { %4951 = vadd.xlane.f32.xlu1 %v4950_v52 }
0x1342   : > { %v7429_v22 = vpop.eup %7428 }
0x1343   : > { %v4956_v23 = vsel %vm2936_vm7, %v7429_v22, 0.0 }
0x1344   : > { %4957 = vadd.xlane.f32.xlu1 %v4956_v23 }
0x1346   : > { %v7431_v56 = vpop.eup %7430 }
0x1347   : > { %v4959_v58 = vsel %vm2936_vm7, %v7431_v56, 0.0 }
0x1348   : > { %4960 = vadd.xlane.f32.xlu0 %v4959_v58  ;;  %v5623_v58 = vld [vmem:[%s8327_s24 + $0x28] sm:$0xff] }
0x1355   : > { %5122 = vrot.lane.b32.xlu1 %v8932_v57, %s7806_s19 }
0x1359   : > { %5198 = vrot.lane.b32.xlu1 %v8934_v2, %s7806_s19 }
0x135d   : > { %5352 = vrot.lane.b32.xlu1 %v8771_v9, %s7809_s13 }
0x135e   : > { %5046 = vrot.lane.b32.xlu0 %v8919_v60, %s7806_s19 }
0x1361   : > { %5506 = vrot.lane.b32.xlu1 %v8783_v16, %s7809_s13 }
0x1362   : > { %5275 = vrot.lane.b32.xlu0 %v8766_v8, %s7809_s13 }
0x1366   : > { %5429 = vrot.lane.b32.xlu0 %v8776_v10, %s7809_s13 }
0x13c9   : > { %v4955_v59 = vpop.xlane.xlu0 %4954 }
0x13ca   : > { %v4952_v61 = vpop.xlane.xlu1 %4951 }
0x13cb   : > { %7432 = vrcp.f32 %v4952_v61 }
0x13cc   : > { %7434 = vrcp.f32 %v4955_v59  ;;  %v5624_v59 = vld [vmem:[%s8327_s24 + $0x30] sm:$0xff] }
0x13d1   : > { %v4958_v62 = vpop.xlane.xlu1 %4957 }
0x13d2   : > { %7436 = vrcp.f32 %v4958_v62  ;;  %v5625_v62 = vld [vmem:[%s8327_s24 + $0x38] sm:$0xff] }
0x13d5   : > { %v7433_v63 = vpop.eup %7432  ;;  %v5123_v9 = vpop.permute.xlu1 %5122 }
0x13d6   : > { %v4961_v0 = vpop.xlane.xlu0 %4960  ;;  %v7435_v49 = vpop.eup %7434  ;;  %v4966_v60 = vmul.f32 %v7433_v63, %v7427_v51  ;;  %v5618_v51 = vld [vmem:[%s8327_s24] sm:$0xff]  ;;  %v7116_v63 = vpack.c.bf16 %v5625_v62, %v5624_v59 }
0x13d7   : > { %7438 = vrcp.f32 %v4961_v0  ;;  %v4967_v16 = vmul.f32 %v7435_v49, %v7425_v17  ;;  %v7107_v52 = vpack.c.bf16 %v5619_v48, %v5618_v51  ;;  %v5627_v0 = vld [vmem:[%s8327_s24 + $0x48] sm:$0xff] }
0x13d8   : > { %6914 = vmatmul.mubr.msk.f32.vlgmr.msra.gmra.mrb[30].mxu0 %vm2936_vm7, %v4966_v60 }
0x13d9   : > { %6922 = vmatpush3.msra.mxu0 %v5123_v9  ;;  %6923 = vmatprep.mubr.msk.f32.mxu0 %vm7804_vm5, %v7805_v20  ;;  %v5199_v10 = vpop.permute.xlu1 %5198  ;;  %v5626_v9 = vld [vmem:[%s8327_s24 + $0x40] sm:$0xff] }
0x13da   : > { %v5047_v8 = vpop.permute.xlu0 %5046  ;;  %6931 = vmatprep.subr.mxu0 %v7805_v20  ;;  %v7119_v49 = vpack.c.bf16 %v5627_v0, %v5626_v9 }
0x13db   : > { %6917 = vmatpush3.msra.mxu1 %v5047_v8 }
0x13dc   : > { %6919 = vmatmul.mubr.msk.f32.vlgmr.msra.gmra.mrb[26].mxu1 %vm2936_vm7, %v4967_v16  ;;  %6926 = vmatprep.subr.mxu1 %v7805_v20  ;;  %v7437_v53 = vpop.eup %7436 }
0x13dd   : > { %6927 = vmatpush3.msra.mxu1 %v5199_v10  ;;  %6928 = vmatprep.mubr.msk.f32.mxu1 %vm7804_vm5, %v7805_v20  ;;  %v4968_v45 = vmul.f32 %v7437_v53, %v7429_v22  ;;  %v5353_v18 = vpop.permute.xlu1 %5352  ;;  %v5621_v22 = vld [vmem:[%s8327_s24 + $0x18] sm:$0xff]  ;;  %v5610_v10 = vsub.s32 6, %v8809_v42  ;;  %v5615_v53 = vsub.s32 7, %v8809_v42 }
0x13de   : > { %v5276_v30 = vpop.permute.xlu0 %5275  ;;  %6936 = vmatprep.subr.mxu1 %v7805_v20 }
0x13df   : > { %6924 = vmatmul.mubr.msk.f32.vlgmr.msra.gmra.mrb[32].mxu0 %vm2936_vm7, %v4968_v45  ;;  %v5611_v45 = vrot.slane %v8816_v55, %v5610_v10 }
0x13e0   : > { %6932 = vmatpush3.msra.mxu0 %v5276_v30  ;;  %6933 = vmatprep.mubr.msk.f32.mxu0 %vm7804_vm5, %v7805_v20 }
0x13e1   : > { %v7439_v57 = vpop.eup %7438  ;;  %6941 = vmatprep.subr.mxu0 %v7805_v20  ;;  %v5507_v33 = vpop.permute.xlu1 %5506 }
0x13e2   : > { %v4969_v2 = vmul.f32 %v7439_v57, %v7431_v56  ;;  %v5430_v19 = vpop.permute.xlu0 %5429  ;;  %v5622_v56 = vld [vmem:[%s8327_s24 + $0x20] sm:$0xff] }
0x13e3   : > { %v7113_v61 = vpack.c.bf16 %v5623_v58, %v5622_v56 }
0x13e4   : > { %6929 = vmatmul.mubr.msk.f32.vlgmr.msra.gmra.mrb[28].mxu1 %vm2936_vm7, %v4969_v2  ;;  %v5616_v2 = vrot.slane %v8816_v55, %v5615_v53 }
0x13e5   : > { %6938 = vmatprep.mubr.msk.f32.mxu1 %vm7804_vm5, %v7805_v20  ;;  %6937 = vmatpush3.msra.mxu1 %v5353_v18 }
0x13e6   : > { %6946 = vmatprep.subr.mxu1 %v7805_v20 }
0x14ab   : > { %v5042_v26 = vpop.f32.mrb[30].mxu0 }
0x14ac   : > { %v6915_v27 = vpop.f32.mrb[31].mxu0  ;;  %6934 = vmatmul.mubr.msk.f32.vlgmr.msra.gmra.mrb[34].mxu0 %vm2936_vm7, %v5042_v26  ;;  %v5628_v26 = vld [vmem:[%s8327_s24 + $0x50] sm:$0xff] }
0x14ad   : > { %6942 = vmatpush3.msra.mxu0 %v5430_v19  ;;  %6943 = vmatprep.mubr.msk.f32.mxu0 %vm7804_vm5, %v7805_v20 }
0x14ae   : > { %7106 = vmatprep.subr.bf16.mxu0 %v7803_v15 }
0x14af   : > { %v5118_v34 = vpop.f32.mrb[26].mxu1 }
0x14b0   : > { %v6920_v11 = vpop.f32.mrb[27].mxu1  ;;  %6939 = vmatmul.mubr.msk.f32.vlgmr.msra.gmra.mrb[30].mxu1 %vm2936_vm7, %v5118_v34 }
0x14b1   : > { %6947 = vmatpush3.msra.mxu1 %v5507_v33  ;;  %6948 = vmatprep.mubr.msk.f32.mxu1 %vm7804_vm5, %v7805_v20  ;;  %v5632_v33 = vsub.s32 2, %v8809_v42 }
0x14b2   : > { %7112 = vmatprep.subr.bf16.mxu1 %v7803_v15  ;;  %v5194_v3 = vpop.f32.mrb[32].mxu0 }
0x14b3   : > { %v6925_v4 = vpop.f32.mrb[33].mxu0  ;;  %6944 = vmatmul.mubr.msk.f32.vlgmr.msra.gmra.mrb[36].mxu0 %vm2936_vm7, %v5194_v3  ;;  %v5633_v34 = vrot.slane %v8816_v55, %v5632_v33 }
0x14b4   : > { %6959 = vmatprep.mubr.msk.f32.mxu0 %vm7804_vm5, %v7805_v20  ;;  %7108 = vmatpush3.bf16.msra.mxu0 %v7107_v52 }
0x14b5   : > { %7109 = vmatprep.subr.bf16.mxu0 %v7803_v15 }
0x14b7   : > { %v5270_v6 = vpop.f32.mrb[28].mxu1 }
0x14b8   : > { %v6930_v7 = vpop.f32.mrb[29].mxu1  ;;  %6949 = vmatmul.mubr.msk.f32.vlgmr.msra.gmra.mrb[32].mxu1 %vm2936_vm7, %v5270_v6 }
0x14b9   : > { %6978 = vmatprep.mubr.msk.f32.mxu1 %vm7804_vm5, %v7805_v20  ;;  %v5592_v20 = vrot.slane %v8816_v55, %v5591_v37  ;;  %7114 = vmatpush3.bf16.msra.mxu1 %v7113_v61  ;;  %v5710_v7 = vsub.s32 3, %v8809_v42 }
0x14ba   : > { %7115 = vmatprep.subr.bf16.mxu1 %v7803_v15 }
0x14bd   : > { %7117 = vmatpush3.bf16.msra.mxu1 %v7116_v63 }
0x14be   : > { %7118 = vmatprep.subr.bf16.mxu1 %v7803_v15 }
0x14c1   : > { %7120 = vmatpush3.bf16.msra.mxu1 %v7119_v49 }
0x14c2   : > { %7121 = vmatprep.subr.bf16.mxu1 %v7803_v15  ;;  %v5629_v15 = vld [vmem:[%s8327_s24 + $0x58] sm:$0xff] }
0x14c3   : > { %v7122_v27 = vpack.c.bf16 %v5629_v15, %v5628_v26 }
0x14c5   : > { %7123 = vmatpush3.bf16.msra.mxu1 %v7122_v27 }
0x157f   : > { %v5347_v39 = vpop.f32.mrb[34].mxu0 }
0x1580   : > { %v6935_v12 = vpop.f32.mrb[35].mxu0  ;;  %v5582_v21 = vsel %vm2648_vm6, %v5347_v39, 0.0  ;;  %v5711_v39 = vrot.slane %v8816_v55, %v5710_v7  ;;  %v2599_v55 = vld [vmem:[%s8333_s12 + $0x8] sm:$0x3] }
0x1583   : > { %v5424_v13 = vpop.f32.mrb[30].mxu1 }
0x1584   : > { %v5583_v24 = vsel %vm2648_vm6, %v5424_v13, 0.0  ;;  %v6940_v25 = vpop.f32.mrb[31].mxu1 }
0x1585   : > { %v5584_v31 = vadd.f32 %v5583_v24, %v5582_v21 }
0x1586   : > { %v5501_v32 = vpop.f32.mrb[36].mxu0 }
0x1587   : > { %v5585_v28 = vsel %vm2648_vm6, %v5501_v32, 0.0  ;;  %v6945_v29 = vpop.f32.mrb[37].mxu0 }
0x1588   : > { %v5586_v35 = vadd.f32 %v5585_v28, %v5584_v31 }
0x158b   : > { %v5578_v36 = vpop.f32.mrb[32].mxu1 }
0x158c   : > { %v5587_v38 = vsel %vm2648_vm6, %v5578_v36, 0.0  ;;  %v6950_v40 = vpop.f32.mrb[33].mxu1 }
0x158d   : > { %v5588_v43 = vadd.f32 %v5587_v38, %v5586_v35  ;;  %v5803_v40 = vrot.slane %v2599_v55, %v3891_v54 }
0x158f   : > { %v5593_v44 = vadd.f32 %v5592_v20, %v5588_v43 }
0x1591   : > { %v5594_v5 = vadd.f32 %v5593_v44, %v8877_v1  ;;  %v5620_v1 = vld [vmem:[%s8327_s24 + $0x10] sm:$0xff]  ;;  %v5808_v44 = vrot.slane %v2599_v55, %v5591_v37 }
0x1592   : > { %v7110_v23 = vpack.c.bf16 %v5621_v22, %v5620_v1 }
0x1593   : > { %v5595_v41 = vsel %vm2648_vm6, %v5594_v5, 0.0 }
0x1594   : > { %5596 = vadd.xlane.f32.xlu0 %v5595_v41  ;;  %7111 = vmatpush3.bf16.msra.mxu0 %v7110_v23 }
0x1621   : > { %v5597_v47 = vpop.xlane.xlu0 %5596 }
0x1622   : > { %v5598_v46 = vmul.f32 0.03125, %v5597_v47 }
0x1624   : > { %v5599_v14 = vsub.f32 %v5594_v5, %v5598_v46 }
0x1626   : > { %v5600_v17 = vmul.f32 %v5599_v14, %v5599_v14 }
0x1628   : > { %v5601_v50 = vsel %vm2648_vm6, %v5600_v17, 0.0 }
0x1629   : > { %5602 = vadd.xlane.f32.xlu1 %v5601_v50 }
0x16b6   : > { %v5603_v60 = vpop.xlane.xlu1 %5602 }
0x16b7   : > { %v5604_v16 = vmul.f32 0.03125, %v5603_v60 }
0x16b9   : > { %v5605_v8 = vadd.f32 1e-06, %v5604_v16 }
0x16bb   : > { %7440 = vrsqrt.f32 %v5605_v8 }
0x16c5   : > { %v7441_v30 = vpop.eup %7440 }
0x16c6   : > { %v5607_v57 = vmul.f32 %v7441_v30, %v5599_v14 }
0x16c8   : > { %v5612_v18 = vmul.f32 %v5611_v45, %v5607_v57 }
0x16ca   : > { %v5617_v19 = vadd.f32 %v5616_v2, %v5612_v18 }
0x16cc   : > { %6960 = vmatmul.mubr.msk.f32.vlgmr.msra.gmra.mrb[38].mxu0 %vm2648_vm6, %v5617_v19 }
0x179f   : > { %v5703_v11 = vpop.f32.mrb[38].mxu0 }
0x17a0   : > { %v5704_v3 = vadd.f32 %v5703_v11, %v5633_v34  ;;  %v6961_v4 = vpop.f32.mrb[39].mxu0 }
0x17a2   : > { %v5707_v6 = vmax.f32 %v5704_v3, 0.0 }
0x17a4   : > { %6979 = vmatmul.mubr.msk.f32.vlgmr.msra.gmra.mrb[34].mxu1 %vm5712_vm8, %v5707_v6 }
0x1877   : > { %v5782_v12 = vpop.f32.mrb[34].mxu1 }
0x1878   : > { %v5783_v13 = vadd.f32 %v5782_v12, %v5711_v39  ;;  %v6980_v21 = vpop.f32.mrb[35].mxu1 }
0x187a   : > { %v5786_v24 = vadd.f32 %v5783_v13, %v5617_v19 }
0x187c   : > { %v5787_v25 = vsel %vm2648_vm6, %v5786_v24, 0.0 }
0x187d   : > { %5788 = vadd.xlane.f32.xlu0 %v5787_v25 }
0x190a   : > { %v5789_v31 = vpop.xlane.xlu0 %5788 }
0x190b   : > { %v5790_v32 = vmul.f32 0.03125, %v5789_v31 }
0x190d   : > { %v5791_v28 = vsub.f32 %v5786_v24, %v5790_v32 }
0x190f   : > { %v5792_v29 = vmul.f32 %v5791_v28, %v5791_v28 }
0x1911   : > { %v5793_v35 = vsel %vm2648_vm6, %v5792_v29, 0.0 }
0x1912   : > { %5794 = vadd.xlane.f32.xlu0 %v5793_v35 }
0x199f   : > { %v5795_v36 = vpop.xlane.xlu0 %5794 }
0x19a0   : > { %v5796_v20 = vmul.f32 0.03125, %v5795_v36 }
0x19a2   : > { %v5797_v38 = vadd.f32 1e-06, %v5796_v20 }
0x19a4   : > { %7442 = vrsqrt.f32 %v5797_v38 }
0x19ae   : > { %v7443_v43 = vpop.eup %7442 }
0x19af   : > { %v5799_v5 = vmul.f32 %v7443_v43, %v5791_v28 }
0x19b1   : > { %v5804_v41 = vmul.f32 %v5803_v40, %v5799_v5 }
0x19b3   : > { %v5809_v47 = vadd.f32 %v5808_v44, %v5804_v41 }
0x19b5   : > { %5810 = vst.msk [vmem:[#allocation3] sm:$0xff] %vm2648_vm6, %v5809_v47 }
0x19b6 PF: > { %s9282_s24 = sld [smem:[#allocation29_spill]] }
0x19bc   : > { %p6361_p11 = scmp.ne.s32.totalorder %s9282_s24, 3 }
0x19bd   : > { %s9283_s29 = sld [smem:[#allocation57_spill]] (!%p6361_p11)  ;;  %v7810_v37 = vmov (!%p6361_p11), 0.0|0.0   ;;  %vm7811_vm9 = vmmov (!%p6361_p11), 0   ;;  %v7812_v50 = vmov (!%p6361_p11), 0.0   ;;  %v5815_v48 = vld [vmem:[#allocation3] sm:$0xff] (!%p6361_p11)  ;;  %vm5827_vm10 = vcmask (!%p6361_p11), 261120  }
0x19be   : > { %5814 = sbr.rel (%p6361_p11) target bundleno = 6821 (0x1aa5), region = 128  ;;  %7124 = vmatprep.subr.bf16.mxu0 (!%p6361_p11), %v7810_v37  ;;  %6989 = vmatprep.mubr.msk.f32.mxu0 (!%p6361_p11), %vm7811_vm9, %v7812_v50  ;;  %s9285_s10 = sld [smem:[#allocation58_spill]] (!%p6361_p11) }
0x19c3   : > { %s9284_s11 = smov (!%p6361_p11), %s9283_s29  ;;  %v5816_v46 = vld [vmem:[%s9283_s29] sm:$0xff] (!%p6361_p11) }
0x19c4   : > { %v5817_v54 = vld [vmem:[%s9284_s11 + $0x8] sm:$0xff] (!%p6361_p11)  ;;  %v5818_v42 = vld [vmem:[%s9284_s11 + $0x10] sm:$0xff] (!%p6361_p11)  ;;  %v5819_v17 = vld [vmem:[%s9284_s11 + $0x18] sm:$0xff] (!%p6361_p11) }
0x19c5   : > { %v7125_v14 = vpack.c.bf16 %v5817_v54, %v5816_v46  ;;  %v7128_v51 = vpack.c.bf16 %v5819_v17, %v5818_v42  ;;  %v6362_v52 = vld [vmem:[%s9285_s10] ss:$0 sm:$0xff] }
0x19c7   : > { %7126 = vmatpush3.bf16.msra.mxu0 %v7125_v14 }
0x19c8   : > { %7127 = vmatprep.subr.bf16.mxu0 %v7810_v37 }
0x19cb   : > { %7129 = vmatpush3.bf16.msra.mxu0 %v7128_v51 }
0x19ce   : > { %6990 = vmatmul.mubr.msk.f32.vlgmr.msra.gmra.mrb[0].mxu0 %vm5827_vm10, %v5815_v48 }
0x1aa1   : > { %v5897_v1 = vpop.f32.mrb[0].mxu0 }
0x1aa2   : > { %v5898_v22 = vadd.f32 %v6362_v52, %v5897_v1  ;;  %v6991_v23 = vpop.f32.mrb[1].mxu0 }
0x1aa4   : > { %5901 = vst [vmem:[%s989_s5] sm:$0xff] %v5898_v22 }
0x1aa5 PF: > { %s9286_s3 = sld [smem:[#allocation30_spill]]  ;;  %s9287_s6 = sld [smem:[#allocation23_spill]] }
0x1aa6   : > { %s9288_s27 = sld [smem:[#allocation39_spill]]  ;;  %s9289_s26 = sld [smem:[#allocation59_spill]] }
0x1aa7   : > { %s5916_s1 = sshll.u32 %s989_s5, 4  ;;  %s7813_s14 = smov [#allocation15]   ;;  %s5917_s1 = int_to_ptr.vmem [resolvable:$true] %s5916_s1 }
0x1aa8   : > { %s7624_s7 = scalar_lea.vmem %s5917_s1, 128  ;;  %s7628_s16 = sshll.u32 %s7813_s14, 4  ;;  %s7629_s16 = int_to_ptr.vmem [resolvable:$false] %s7628_s16 }
0x1aa9   : > { %p7625_p7 = scmp.ne.s32.totalorder %s5917_s1, %s7624_s7  ;;  %s7630_s24 = scalar_lea.vmem %s7629_s16, 256 }
0x1aaa   : > { %p7631_p5 = scmp.lt.s32.totalorder %s5917_s1, %s7629_s16  ;;  %p7632_p6 = scmp.lt.s32.totalorder %s7630_s24, %s7624_s7 }
0x1aab   : > { %s6365_s19 = sshll.u32 %s9286_s3, 7  ;;  %s9291_s13 = sand.u32 1, %s9287_s6  }
0x1aac   : > { %s9290_s8 = smov %s9289_s26  ;;  %s9074_s18 = scalar_lea.hbm %s9289_s26, %s6365_s19 }
0x1aad   : > { %s5903_s9 = scalar_lea.sflag [#allocation6], %s9291_s13  ;;  %p9292_p13 = scmp.ne.s32.totalorder %s9288_s27, 0 }
0x1aae   : > { %p7633_p4 = por %p7632_p6, %p7631_p5 }
0x1aaf   : > { %p7626_p10 = pnand %p7625_p7, %p9292_p13 }
0x1ab1   : > { %p7627_p12 = pneg %p7626_p10 }
0x1ab3   : > { %p7634_p0 = pnand %p7633_p4, %p7627_p12 }
0x1ab5   : > { %7637 = shalt.err (!%p7634_p0)
}
0x1ab6   : > { %s7638_s4 = scalar_lea.hbm %s9074_s18, 128  ;;  %s7642_s20 = scalar_lea.hbm %s9290_s8, 256 }
0x1ab7   : > { %p7639_p9 = scmp.ne.s32.totalorder %s9074_s18, %s7638_s4  ;;  %p7643_p2 = scmp.lt.u32.totalorder %s9074_s18, %s9290_s8 }
0x1ab8   : > { %p7644_p3 = scmp.lt.u32.totalorder %s7642_s20, %s7638_s4  ;;  %p7646_p7 = scmp.lt.u32.totalorder %s7638_s4, %s9074_s18 }
0x1ab9   : > { %p7640_p8 = pnand %p7639_p9, %p9292_p13 }
0x1aba   : > { %p7645_p11 = por %p7644_p3, %p7643_p2 }
0x1abb   : > { %p7641_p1 = pneg %p7640_p8 }
0x1abc   : > { %p7647_p10 = por %p7646_p7, %p7645_p11 }
0x1abe   : > { %p7648_p12 = pnand %p7647_p10, %p7641_p1 }
0x1ac0   : > { %7651 = shalt.err (!%p7648_p12)
}
0x1ac1   : > { %7148 = dma.vmem_to_hbm [thread:$0]  (%p9292_p13), %s5917_s1, 128, %s9074_s18, %s5903_s9  }
0x1ac2 PF: > { %s9293_s28 = sld [smem:[#allocation33_spill]]  ;;  %s9294_s0 = sld [smem:[#allocation22_spill]] }
0x1ac3   : > { %s9295_s25 = sld [smem:[#allocation40_spill]] }
0x1ac8   : > { %p7174_p5 = scmp.ge.s32.totalorder %s9293_s28, 2  ;;  %s5928_s21 = sand.u32 1, %s9294_s0  }
0x1ac9   : > { %p9296_p6 = scmp.ne.s32.totalorder %s9295_s25, 0  ;;  %s5929_s30 = scalar_lea.sflag [#allocation6], %s5928_s21 }
0x1acb   : > { %p7170_p4 = pnand %p7174_p5, %p9296_p6 }
0x1acd   : > { %7729 = dma.done.wait (!%p7170_p4), %s5929_s30, 128  }
0x1ace   : > { %7731 = vsyncadd (!%p7170_p4), %s5929_s30, 4294967168  ;;  %s42_s22 = sadd.s32 1, %s9293_s28   ;;  %s9298_s24 = sld [smem:[#allocation23_spill]] }
0x1acf   : > { %p9102_p0 = scmp.ge.s32.totalorder %s42_s22, 10   ;;  %s9299_s25 = sld [smem:[#allocation24_spill]] }
0x1ad0   : > { %s9300_s26 = sld [smem:[#allocation38_spill]]  ;;  %s9301_s27 = sld [smem:[#allocation25_spill]] }
0x1ad1   : > { %s9302_s28 = sld [smem:[#allocation26_spill]]  ;;  %s9303_s29 = sld [smem:[#allocation41_spill]] }
0x1ad2   : > { %s9304_s0 = sld [smem:[#allocation27_spill]]  ;;  %s9305_s30 = sld [smem:[#allocation28_spill]] }
0x1ad3   : > { %s9306_s18 = sld [smem:[#allocation37_spill]]  ;;  %s9307_s19 = sld [smem:[#allocation31_spill]] }
0x1ad4   : > { %s9308_s1 = sld [smem:[#allocation32_spill]]  ;;  %s9309_s20 = sld [smem:[#allocation34_spill]] }
0x1ad5   : > { %s9310_s21 = sld [smem:[#allocation35_spill]]  ;;  %41 = sbr.rel (!%p9102_p0) target bundleno = 35 (0x23), region = 237 }
0x1adc   :  { %5934 = vsyncpa [#allocation5], 1 }
0x1add   :  { %5936 = vsyncpa [#allocation5 + $0x1], 1 }
0x1ade   :  { %5937 = vsyncpa [#allocation8], 1 }
0x1adf   :  { %5939 = vsyncpa [#allocation8 + $0x1], 1 }
0x1ae0   :  { %5940 = vsyncpa [#allocation11], 1 }
0x1ae1   :  { %5942 = vsyncpa [#allocation11 + $0x1], 1 }
0x1ae2   :  { %5943 = vsyncpa [#allocation14], 1 }
0x1ae3   :  { %5945 = vsyncpa [#allocation14 + $0x1], 1 }
0x1ae4   :  { %5946 = vsyncpa [#allocation6], 1 }
0x1ae5   :  { %5948 = vsyncpa [#allocation6 + $0x1], 1 }

</bundles_post_ra>
